<compile_context>
chip_gen: v7x
topology: tpu7x:2x2x1
jax: 0.10.0
libtpu: 0.0.40
codegen_flags: <defaults>
</compile_context>

<pallas_src>
import functools
import math

import jax
import jax.numpy as jnp
from jax.experimental import pallas as pl
from jax.experimental.pallas import tpu as pltpu


PARAM_NAMES = (
    "n1g", "n1b",
    "sa_wqkv", "sa_bqkv", "sa_wo", "sa_bo",
    "n2g", "n2b",
    "ff_w1", "ff_b1", "ff_w2", "ff_b2",
    "n3g", "n3b",
    "ca_wq", "ca_bq", "ca_wkv", "ca_bkv", "ca_wo", "ca_bo", "ca_gate",
    "n4g", "n4b",
)


# ----------------------------------------------------------------------------
# Kernel: one grid step = (one batch tile, one layer).
# ----------------------------------------------------------------------------
def dit_stack_kernel(x_ref, ctx_ref, *refs, num_heads):
    (n1g, n1b,
     sa_wqkv, sa_bqkv, sa_wo, sa_bo,
     n2g, n2b,
     ff_w1, ff_b1, ff_w2, ff_b2,
     n3g, n3b,
     ca_wq, ca_bq, ca_wkv, ca_bkv, ca_wo, ca_bo, ca_gate,
     n4g, n4b,
     o_ref, xs_ref) = refs

    layer = pl.program_id(1)

    BT, S, D = x_ref.shape
    _, Sc, _ = ctx_ref.shape
    H = num_heads
    HD = D // H
    scale = 1.0 / math.sqrt(HD)

    # Layer 0 of each batch tile: seed the layer-carried activation (f32).
    @pl.when(layer == 0)
    def _():
        xs_ref[...] = x_ref[...].astype(jnp.float32)

    def layer_norm(x, g_ref, b_ref):
        # single reduction pass: E[x] and E[x^2] together
        mu = jnp.mean(x, axis=-1, keepdims=True)
        msq = jnp.mean(x * x, axis=-1, keepdims=True)
        var = msq - mu * mu
        return (x - mu) * jax.lax.rsqrt(var + 1e-5) * g_ref[0] + b_ref[0]

    def gelu_exact(x):
        # matches torch.nn.GELU() (erf formulation), f32
        return 0.5 * x * (1.0 + jax.lax.erf(x * (1.0 / math.sqrt(2.0))))

    def heads_attention(q, k, v):
        # q: (BT, Sq, D) f32, k/v: (BT, Sk, D) f32 (head-packed last dim).
        # Per-head score/PV einsums, batched over the batch-tile axis.
        outs = []
        for h in range(H):           # static unroll; HD is inherently the N dim
            sl = slice(h * HD, (h + 1) * HD)
            qh = (q[:, :, sl] * scale).astype(jnp.bfloat16)
            kh = k[:, :, sl].astype(jnp.bfloat16)
            vh = v[:, :, sl].astype(jnp.bfloat16)
            s = jnp.einsum("bqd,bkd->bqk", qh, kh,
                           preferred_element_type=jnp.float32)
            s = s - jnp.max(s, axis=-1, keepdims=True)
            e = jnp.exp(s)
            p = e / jnp.sum(e, axis=-1, keepdims=True)   # exact divide
            outs.append(jnp.einsum("bqk,bkd->bqd", p.astype(jnp.bfloat16), vh,
                                   preferred_element_type=jnp.float32))
        return jnp.concatenate(outs, axis=-1)            # (BT, Sq, D) f32

    x = xs_ref[...]                                      # (BT, S, D) f32
    ctx = ctx_ref[...].astype(jnp.float32)               # (BT, Sc, D) f32

    # --- self-attention sub-block ---
    res = x
    hn = layer_norm(x, n1g, n1b)
    h2 = hn.reshape(BT * S, D).astype(jnp.bfloat16)
    qkv = jnp.dot(h2, sa_wqkv[0], preferred_element_type=jnp.float32) + sa_bqkv[0]
    qkv = qkv.reshape(BT, S, 3 * D)
    q = qkv[:, :, 0 * D:1 * D]
    k = qkv[:, :, 1 * D:2 * D]
    v = qkv[:, :, 2 * D:3 * D]
    attn = heads_attention(q, k, v)
    a2 = attn.reshape(BT * S, D).astype(jnp.bfloat16)
    o = jnp.dot(a2, sa_wo[0], preferred_element_type=jnp.float32) + sa_bo[0]
    x = res + o.reshape(BT, S, D)

    # --- FFN sub-block ---
    res = x
    hn = layer_norm(x, n2g, n2b)
    h2 = hn.reshape(BT * S, D).astype(jnp.bfloat16)
    f = jnp.dot(h2, ff_w1[0], preferred_element_type=jnp.float32) + ff_b1[0]
    f = gelu_exact(f)
    f = jnp.dot(f.astype(jnp.bfloat16), ff_w2[0],
                preferred_element_type=jnp.float32) + ff_b2[0]
    x = res + f.reshape(BT, S, D)

    # --- gated cross-attention sub-block ---
    res = x
    hn = layer_norm(x, n3g, n3b)
    h2 = hn.reshape(BT * S, D).astype(jnp.bfloat16)
    q = (jnp.dot(h2, ca_wq[0], preferred_element_type=jnp.float32)
         + ca_bq[0]).reshape(BT, S, D)
    c2 = ctx.reshape(BT * Sc, D).astype(jnp.bfloat16)
    kv = jnp.dot(c2, ca_wkv[0], preferred_element_type=jnp.float32) + ca_bkv[0]
    kv = kv.reshape(BT, Sc, 2 * D)
    k = kv[:, :, 0 * D:1 * D]
    v = kv[:, :, 1 * D:2 * D]
    attn = heads_attention(q, k, v)
    a2 = attn.reshape(BT * S, D).astype(jnp.bfloat16)
    o = jnp.dot(a2, ca_wo[0], preferred_element_type=jnp.float32) + ca_bo[0]
    x = res + jnp.tanh(ca_gate[0]) * o.reshape(BT, S, D)

    # --- final norm of the block ---
    x = layer_norm(x, n4g, n4b)

    xs_ref[...] = x                                      # carry to next layer

    @pl.when(layer == pl.num_programs(1) - 1)
    def _():
        o_ref[...] = x.astype(o_ref.dtype)


# ----------------------------------------------------------------------------
# Wrapper / glue
# ----------------------------------------------------------------------------
def student_dit_encoder(x, context, layer_params, num_heads, batch_tile=None):
    B, S, D = x.shape
    _, Sc, _ = context.shape
    L = len(layer_params)

    if batch_tile is None:
        batch_tile = B            # whole batch in one tile -> weights DMA'd once/layer
    assert B % batch_tile == 0
    nbt = B // batch_tile

    # Stack per-layer parameter dicts along a leading layer axis.
    stacked = {name: jnp.stack([p[name] for p in layer_params], axis=0)
               for name in PARAM_NAMES}

    def param_spec(arr):
        blk = (1,) + arr.shape[1:]
        zeros = (0,) * (arr.ndim - 1)
        return pl.BlockSpec(blk, lambda bt, l, z=zeros: (l,) + z)

    in_specs = [
        pl.BlockSpec((batch_tile, S, D), lambda bt, l: (bt, 0, 0)),    # x
        pl.BlockSpec((batch_tile, Sc, D), lambda bt, l: (bt, 0, 0)),   # context
    ] + [param_spec(stacked[name]) for name in PARAM_NAMES]

    # Explicit VMEM budget: double-buffered per-layer weights + activation
    # blocks + f32 carry scratch + headroom (clamped to v7x's 64 MiB).
    wbytes = sum(math.prod(stacked[n].shape[1:]) * stacked[n].dtype.itemsize
                 for n in PARAM_NAMES)
    abytes = (batch_tile * S * D + batch_tile * Sc * D) * x.dtype.itemsize
    est = 2 * (wbytes + 2 * abytes) + batch_tile * S * D * 4 + (8 << 20)
    vmem_limit = int(min(max(est, 32 << 20), 64 << 20))

    grid_spec = pltpu.PrefetchScalarGridSpec(
        num_scalar_prefetch=0,
        grid=(nbt, L),                      # batch tiles outer, layers inner (carry)
        in_specs=in_specs,
        out_specs=pl.BlockSpec((batch_tile, S, D), lambda bt, l: (bt, 0, 0)),
        scratch_shapes=[pltpu.VMEM((batch_tile, S, D), jnp.float32)],
    )

    return pl.pallas_call(
        functools.partial(dit_stack_kernel, num_heads=num_heads),
        out_shape=jax.ShapeDtypeStruct((B, S, D), x.dtype),
        grid_spec=grid_spec,
        compiler_params=pltpu.CompilerParams(
            dimension_semantics=("parallel", "arbitrary"),
            vmem_limit_bytes=vmem_limit,
        ),
    )(x, context, *[stacked[name] for name in PARAM_NAMES])


def init_layer_params(key, dim, num_heads):
    """Deterministic synthetic parameters for one DiTBlock (lane-dense layout)."""
    del num_heads  # head packing is just column ordering of the fused weights
    ks = jax.random.split(key, 8)
    w = lambda k, shape: jax.random.normal(k, shape, jnp.float32) * 0.02
    zeros = lambda shape: jnp.zeros(shape, jnp.float32)
    ones = lambda shape: jnp.ones(shape, jnp.float32)
    bf = lambda a: a.astype(jnp.bfloat16)

    p = {}
    # adaptive-norm (LayerNorm) affine params (f32)
    for n in ("n1", "n2", "n3", "n4"):
        p[n + "g"], p[n + "b"] = ones((1, dim)), zeros((1, dim))
    # self-attention: fused QKV (D, 3D), output projection (D, D), bf16 weights
    p["sa_wqkv"] = bf(w(ks[0], (dim, 3 * dim)))
    p["sa_bqkv"] = zeros((1, 3 * dim))
    p["sa_wo"] = bf(w(ks[1], (dim, dim)))
    p["sa_bo"] = zeros((1, dim))
    # FFN
    p["ff_w1"], p["ff_b1"] = bf(w(ks[2], (dim, 4 * dim))), zeros((1, 4 * dim))
    p["ff_w2"], p["ff_b2"] = bf(w(ks[3], (4 * dim, dim))), zeros((1, dim))
    # gated cross-attention: Q (D, D), fused KV (D, 2D), output (D, D)
    p["ca_wq"] = bf(w(ks[4], (dim, dim)))
    p["ca_bq"] = zeros((1, dim))
    p["ca_wkv"] = bf(w(ks[5], (dim, 2 * dim)))
    p["ca_bkv"] = zeros((1, 2 * dim))
    p["ca_wo"] = bf(w(ks[6], (dim, dim)))
    p["ca_bo"] = zeros((1, dim))
    p["ca_gate"] = w(ks[7], (1, dim)) + 0.5   # nonzero so the gated path is exercised
    return p


if __name__ == "__main__":
    # small config: batch=2, seq=8, context_seq=8, hidden_dim=32, heads=4, layers=2
    B, S, Sc, D, H, L = 2, 8, 8, 32, 4, 2

    key = jax.random.PRNGKey(0)
    kx, kc, kp = jax.random.split(key, 3)
    x = jax.random.normal(kx, (B, S, D), jnp.float32)
    context = jax.random.normal(kc, (B, Sc, D), jnp.float32)
    layer_params = [init_layer_params(k, D, H) for k in jax.random.split(kp, L)]

    out = student_dit_encoder(x, context, layer_params, H)
    out = jax.block_until_ready(out)

    assert out.shape == (B, S, D), out.shape
    assert bool(jnp.all(jnp.isfinite(out)))
    print("KERNEL_OK")
</pallas_src>

<mosaic_0001>
module attributes {stable_mosaic.version = 11 : i64} {
  func.func @dit_stack_kernel(%arg0: i32, %arg1: i32, %arg2: memref<2x8x32xf32, #tpu.memory_space<vmem>>, %arg3: memref<2x8x32xf32, #tpu.memory_space<vmem>>, %arg4: memref<1x1x32xf32, #tpu.memory_space<vmem>>, %arg5: memref<1x1x32xf32, #tpu.memory_space<vmem>>, %arg6: memref<1x32x96xbf16, #tpu.memory_space<vmem>>, %arg7: memref<1x1x96xf32, #tpu.memory_space<vmem>>, %arg8: memref<1x32x32xbf16, #tpu.memory_space<vmem>>, %arg9: memref<1x1x32xf32, #tpu.memory_space<vmem>>, %arg10: memref<1x1x32xf32, #tpu.memory_space<vmem>>, %arg11: memref<1x1x32xf32, #tpu.memory_space<vmem>>, %arg12: memref<1x32x128xbf16, #tpu.memory_space<vmem>>, %arg13: memref<1x1x128xf32, #tpu.memory_space<vmem>>, %arg14: memref<1x128x32xbf16, #tpu.memory_space<vmem>>, %arg15: memref<1x1x32xf32, #tpu.memory_space<vmem>>, %arg16: memref<1x1x32xf32, #tpu.memory_space<vmem>>, %arg17: memref<1x1x32xf32, #tpu.memory_space<vmem>>, %arg18: memref<1x32x32xbf16, #tpu.memory_space<vmem>>, %arg19: memref<1x1x32xf32, #tpu.memory_space<vmem>>, %arg20: memref<1x32x64xbf16, #tpu.memory_space<vmem>>, %arg21: memref<1x1x64xf32, #tpu.memory_space<vmem>>, %arg22: memref<1x32x32xbf16, #tpu.memory_space<vmem>>, %arg23: memref<1x1x32xf32, #tpu.memory_space<vmem>>, %arg24: memref<1x1x32xf32, #tpu.memory_space<vmem>>, %arg25: memref<1x1x32xf32, #tpu.memory_space<vmem>>, %arg26: memref<1x1x32xf32, #tpu.memory_space<vmem>>, %arg27: memref<2x8x32xf32, #tpu.memory_space<vmem>>, %arg28: memref<2x8x32xf32, #tpu.memory_space<vmem>>) attributes {dimension_semantics = [#tpu.dimension_semantics<parallel>, #tpu.dimension_semantics<arbitrary>], iteration_bounds = array<i64: 1, 2>, scalar_prefetch = 0 : i64, scratch_operands = 1 : i64, tpu.core_type = #tpu.core_type<tc>, window_params = [{transform_indices = @transform_0, window_bounds = array<i64: 2, 8, 32>}, {transform_indices = @transform_1, window_bounds = array<i64: 2, 8, 32>}, {transform_indices = @transform_2, window_bounds = array<i64: 1, 1, 32>}, {transform_indices = @transform_3, window_bounds = array<i64: 1, 1, 32>}, {transform_indices = @transform_4, window_bounds = array<i64: 1, 32, 96>}, {transform_indices = @transform_5, window_bounds = array<i64: 1, 1, 96>}, {transform_indices = @transform_6, window_bounds = array<i64: 1, 32, 32>}, {transform_indices = @transform_7, window_bounds = array<i64: 1, 1, 32>}, {transform_indices = @transform_8, window_bounds = array<i64: 1, 1, 32>}, {transform_indices = @transform_9, window_bounds = array<i64: 1, 1, 32>}, {transform_indices = @transform_10, window_bounds = array<i64: 1, 32, 128>}, {transform_indices = @transform_11, window_bounds = array<i64: 1, 1, 128>}, {transform_indices = @transform_12, window_bounds = array<i64: 1, 128, 32>}, {transform_indices = @transform_13, window_bounds = array<i64: 1, 1, 32>}, {transform_indices = @transform_14, window_bounds = array<i64: 1, 1, 32>}, {transform_indices = @transform_15, window_bounds = array<i64: 1, 1, 32>}, {transform_indices = @transform_16, window_bounds = array<i64: 1, 32, 32>}, {transform_indices = @transform_17, window_bounds = array<i64: 1, 1, 32>}, {transform_indices = @transform_18, window_bounds = array<i64: 1, 32, 64>}, {transform_indices = @transform_19, window_bounds = array<i64: 1, 1, 64>}, {transform_indices = @transform_20, window_bounds = array<i64: 1, 32, 32>}, {transform_indices = @transform_21, window_bounds = array<i64: 1, 1, 32>}, {transform_indices = @transform_22, window_bounds = array<i64: 1, 1, 32>}, {transform_indices = @transform_23, window_bounds = array<i64: 1, 1, 32>}, {transform_indices = @transform_24, window_bounds = array<i64: 1, 1, 32>}, {transform_indices = @transform_25, window_bounds = array<i64: 2, 8, 32>}]} {
    %c0_i32 = arith.constant 0 : i32
    %0 = arith.cmpi eq, %arg1, %c0_i32 : i32
    %1 = arith.extui %0 : i1 to i32
    %c0_i32_0 = arith.constant 0 : i32
    %2 = arith.cmpi ne, %1, %c0_i32_0 : i32
    scf.if %2 {
      %c0_148 = arith.constant 0 : index
      %c0_149 = arith.constant 0 : index
      %c0_150 = arith.constant 0 : index
      %373 = vector.load %arg2[%c0_148, %c0_149, %c0_150] : memref<2x8x32xf32, #tpu.memory_space<vmem>>, vector<2x8x32xf32>
      %c0_151 = arith.constant 0 : index
      %c0_152 = arith.constant 0 : index
      %c0_153 = arith.constant 0 : index
      %374 = vector.load %arg28[%c0_151, %c0_152, %c0_153] : memref<2x8x32xf32, #tpu.memory_space<vmem>>, vector<2x8x32xf32>
      tpu.vector_store %arg28[%c0_151, %c0_152, %c0_153], %373 {strides = array<i32>} : memref<2x8x32xf32, #tpu.memory_space<vmem>>, vector<2x8x32xf32>,
    } else {
    }
    %c0 = arith.constant 0 : index
    %c0_1 = arith.constant 0 : index
    %c0_2 = arith.constant 0 : index
    %3 = vector.load %arg28[%c0, %c0_1, %c0_2] : memref<2x8x32xf32, #tpu.memory_space<vmem>>, vector<2x8x32xf32>
    %c0_3 = arith.constant 0 : index
    %c0_4 = arith.constant 0 : index
    %c0_5 = arith.constant 0 : index
    %4 = vector.load %arg3[%c0_3, %c0_4, %c0_5] : memref<2x8x32xf32, #tpu.memory_space<vmem>>, vector<2x8x32xf32>
    %cst = arith.constant dense<0.000000e+00> : vector<2x8xf32>
    %5 = vector.multi_reduction <add>, %3, %cst [2] : vector<2x8x32xf32> to vector<2x8xf32>
    %6 = vector.shape_cast %5 : vector<2x8xf32> to vector<2x8x1xf32>
    %cst_6 = arith.constant 3.200000e+01 : f32
    %7 = vector.broadcast %cst_6 : f32 to vector<2x8x1xf32>
    %8 = arith.divf %6, %7 : vector<2x8x1xf32>
    %9 = arith.mulf %3, %3 : vector<2x8x32xf32>
    %cst_7 = arith.constant dense<0.000000e+00> : vector<2x8xf32>
    %10 = vector.multi_reduction <add>, %9, %cst_7 [2] : vector<2x8x32xf32> to vector<2x8xf32>
    %11 = vector.shape_cast %10 : vector<2x8xf32> to vector<2x8x1xf32>
    %cst_8 = arith.constant 3.200000e+01 : f32
    %12 = vector.broadcast %cst_8 : f32 to vector<2x8x1xf32>
    %13 = arith.divf %11, %12 : vector<2x8x1xf32>
    %14 = arith.mulf %8, %8 : vector<2x8x1xf32>
    %15 = arith.subf %13, %14 : vector<2x8x1xf32>
    %16 = vector.broadcast %8 : vector<2x8x1xf32> to vector<2x8x32xf32>
    %17 = arith.subf %3, %16 : vector<2x8x32xf32>
    %cst_9 = arith.constant 9.99999974E-6 : f32
    %18 = vector.broadcast %cst_9 : f32 to vector<2x8x1xf32>
    %19 = arith.addf %15, %18 : vector<2x8x1xf32>
    %20 = math.rsqrt %19 : vector<2x8x1xf32>
    %21 = vector.broadcast %20 : vector<2x8x1xf32> to vector<2x8x32xf32>
    %22 = arith.mulf %17, %21 : vector<2x8x32xf32>
    %c0_10 = arith.constant 0 : index
    %c0_11 = arith.constant 0 : index
    %c0_12 = arith.constant 0 : index
    %23 = vector.load %arg4[%c0_10, %c0_11, %c0_12] : memref<1x1x32xf32, #tpu.memory_space<vmem>>, vector<1x1x32xf32>
    %24 = vector.shape_cast %23 : vector<1x1x32xf32> to vector<1x32xf32>
    %25 = vector.shape_cast %24 : vector<1x32xf32> to vector<1x1x32xf32>
    %26 = vector.broadcast %25 : vector<1x1x32xf32> to vector<2x8x32xf32>
    %27 = arith.mulf %22, %26 : vector<2x8x32xf32>
    %c0_13 = arith.constant 0 : index
    %c0_14 = arith.constant 0 : index
    %c0_15 = arith.constant 0 : index
    %28 = vector.load %arg5[%c0_13, %c0_14, %c0_15] : memref<1x1x32xf32, #tpu.memory_space<vmem>>, vector<1x1x32xf32>
    %29 = vector.shape_cast %28 : vector<1x1x32xf32> to vector<1x32xf32>
    %30 = vector.shape_cast %29 : vector<1x32xf32> to vector<1x1x32xf32>
    %31 = vector.broadcast %30 : vector<1x1x32xf32> to vector<2x8x32xf32>
    %32 = arith.addf %27, %31 : vector<2x8x32xf32>
    %33 = vector.shape_cast %32 : vector<2x8x32xf32> to vector<16x32xf32>
    %34 = arith.truncf %33 : vector<16x32xf32> to vector<16x32xbf16>
    %c0_16 = arith.constant 0 : index
    %c0_17 = arith.constant 0 : index
    %c0_18 = arith.constant 0 : index
    %35 = vector.load %arg6[%c0_16, %c0_17, %c0_18] : memref<1x32x96xbf16, #tpu.memory_space<vmem>>, vector<1x32x96xbf16>
    %36 = vector.shape_cast %35 : vector<1x32x96xbf16> to vector<32x96xbf16>
    %cst_19 = arith.constant dense<0.000000e+00> : vector<16x96xf32>
    %37 = tpu.matmul %34, %36, %cst_19 {dimension_numbers = #tpu.dot_dimension_numbers<[1], [0], [0], [1], [0, 0, 1, 1], [], []>} : vector<16x32xbf16>, vector<32x96xbf16>, vector<16x96xf32> -> vector<16x96xf32>
    %c0_20 = arith.constant 0 : index
    %c0_21 = arith.constant 0 : index
    %c0_22 = arith.constant 0 : index
    %38 = vector.load %arg7[%c0_20, %c0_21, %c0_22] : memref<1x1x96xf32, #tpu.memory_space<vmem>>, vector<1x1x96xf32>
    %39 = vector.shape_cast %38 : vector<1x1x96xf32> to vector<1x96xf32>
    %40 = vector.broadcast %39 : vector<1x96xf32> to vector<16x96xf32>
    %41 = arith.addf %37, %40 : vector<16x96xf32>
    %42 = vector.shape_cast %41 : vector<16x96xf32> to vector<2x8x96xf32>
    %43 = vector.extract_strided_slice %42 {offsets = [0, 0, 0], sizes = [2, 8, 32], strides = [1, 1, 1]} : vector<2x8x96xf32> to vector<2x8x32xf32>
    %44 = vector.extract_strided_slice %42 {offsets = [0, 0, 32], sizes = [2, 8, 32], strides = [1, 1, 1]} : vector<2x8x96xf32> to vector<2x8x32xf32>
    %45 = vector.extract_strided_slice %42 {offsets = [0, 0, 64], sizes = [2, 8, 32], strides = [1, 1, 1]} : vector<2x8x96xf32> to vector<2x8x32xf32>
    %46 = vector.extract_strided_slice %43 {offsets = [0, 0, 0], sizes = [2, 8, 8], strides = [1, 1, 1]} : vector<2x8x32xf32> to vector<2x8x8xf32>
    %cst_23 = arith.constant 0.353553385 : f32
    %47 = vector.broadcast %cst_23 : f32 to vector<2x8x8xf32>
    %48 = arith.mulf %46, %47 : vector<2x8x8xf32>
    %49 = arith.truncf %48 : vector<2x8x8xf32> to vector<2x8x8xbf16>
    %50 = vector.extract_strided_slice %44 {offsets = [0, 0, 0], sizes = [2, 8, 8], strides = [1, 1, 1]} : vector<2x8x32xf32> to vector<2x8x8xf32>
    %51 = arith.truncf %50 : vector<2x8x8xf32> to vector<2x8x8xbf16>
    %52 = vector.extract_strided_slice %45 {offsets = [0, 0, 0], sizes = [2, 8, 8], strides = [1, 1, 1]} : vector<2x8x32xf32> to vector<2x8x8xf32>
    %53 = arith.truncf %52 : vector<2x8x8xf32> to vector<2x8x8xbf16>
    "tpu.trace_start"() <{level = 10 : i32, message = "bqd,bkd->bqk"}> : () -> ()
    %cst_24 = arith.constant dense<0.000000e+00> : vector<2x8x8xf32>
    %54 = tpu.matmul %49, %51, %cst_24 {dimension_numbers = #tpu.dot_dimension_numbers<[2], [2], [1], [1], [0, 0, 0, 1, 1, 1], [0], [0]>} : vector<2x8x8xbf16>, vector<2x8x8xbf16>, vector<2x8x8xf32> -> vector<2x8x8xf32>
    "tpu.trace_stop"() : () -> ()
    %cst_25 = arith.constant dense<0xFF800000> : vector<2x8xf32>
    %55 = vector.multi_reduction <maximumf>, %54, %cst_25 [2] : vector<2x8x8xf32> to vector<2x8xf32>
    %56 = vector.shape_cast %55 : vector<2x8xf32> to vector<2x8x1xf32>
    %57 = vector.broadcast %56 : vector<2x8x1xf32> to vector<2x8x8xf32>
    %58 = arith.subf %54, %57 : vector<2x8x8xf32>
    %59 = math.exp %58 : vector<2x8x8xf32>
    %cst_26 = arith.constant dense<0.000000e+00> : vector<2x8xf32>
    %60 = vector.multi_reduction <add>, %59, %cst_26 [2] : vector<2x8x8xf32> to vector<2x8xf32>
    %61 = vector.shape_cast %60 : vector<2x8xf32> to vector<2x8x1xf32>
    %62 = vector.broadcast %61 : vector<2x8x1xf32> to vector<2x8x8xf32>
    %63 = arith.divf %59, %62 : vector<2x8x8xf32>
    %64 = arith.truncf %63 : vector<2x8x8xf32> to vector<2x8x8xbf16>
    "tpu.trace_start"() <{level = 10 : i32, message = "bqk,bkd->bqd"}> : () -> ()
    %cst_27 = arith.constant dense<0.000000e+00> : vector<2x8x8xf32>
    %65 = tpu.matmul %64, %53, %cst_27 {dimension_numbers = #tpu.dot_dimension_numbers<[2], [1], [1], [2], [0, 0, 0, 1, 1, 2], [0], [0]>} : vector<2x8x8xbf16>, vector<2x8x8xbf16>, vector<2x8x8xf32> -> vector<2x8x8xf32>
    "tpu.trace_stop"() : () -> ()
    %66 = vector.extract_strided_slice %43 {offsets = [0, 0, 8], sizes = [2, 8, 8], strides = [1, 1, 1]} : vector<2x8x32xf32> to vector<2x8x8xf32>
    %cst_28 = arith.constant 0.353553385 : f32
    %67 = vector.broadcast %cst_28 : f32 to vector<2x8x8xf32>
    %68 = arith.mulf %66, %67 : vector<2x8x8xf32>
    %69 = arith.truncf %68 : vector<2x8x8xf32> to vector<2x8x8xbf16>
    %70 = vector.extract_strided_slice %44 {offsets = [0, 0, 8], sizes = [2, 8, 8], strides = [1, 1, 1]} : vector<2x8x32xf32> to vector<2x8x8xf32>
    %71 = arith.truncf %70 : vector<2x8x8xf32> to vector<2x8x8xbf16>
    %72 = vector.extract_strided_slice %45 {offsets = [0, 0, 8], sizes = [2, 8, 8], strides = [1, 1, 1]} : vector<2x8x32xf32> to vector<2x8x8xf32>
    %73 = arith.truncf %72 : vector<2x8x8xf32> to vector<2x8x8xbf16>
    "tpu.trace_start"() <{level = 10 : i32, message = "bqd,bkd->bqk"}> : () -> ()
    %cst_29 = arith.constant dense<0.000000e+00> : vector<2x8x8xf32>
    %74 = tpu.matmul %69, %71, %cst_29 {dimension_numbers = #tpu.dot_dimension_numbers<[2], [2], [1], [1], [0, 0, 0, 1, 1, 1], [0], [0]>} : vector<2x8x8xbf16>, vector<2x8x8xbf16>, vector<2x8x8xf32> -> vector<2x8x8xf32>
    "tpu.trace_stop"() : () -> ()
    %cst_30 = arith.constant dense<0xFF800000> : vector<2x8xf32>
    %75 = vector.multi_reduction <maximumf>, %74, %cst_30 [2] : vector<2x8x8xf32> to vector<2x8xf32>
    %76 = vector.shape_cast %75 : vector<2x8xf32> to vector<2x8x1xf32>
    %77 = vector.broadcast %76 : vector<2x8x1xf32> to vector<2x8x8xf32>
    %78 = arith.subf %74, %77 : vector<2x8x8xf32>
    %79 = math.exp %78 : vector<2x8x8xf32>
    %cst_31 = arith.constant dense<0.000000e+00> : vector<2x8xf32>
    %80 = vector.multi_reduction <add>, %79, %cst_31 [2] : vector<2x8x8xf32> to vector<2x8xf32>
    %81 = vector.shape_cast %80 : vector<2x8xf32> to vector<2x8x1xf32>
    %82 = vector.broadcast %81 : vector<2x8x1xf32> to vector<2x8x8xf32>
    %83 = arith.divf %79, %82 : vector<2x8x8xf32>
    %84 = arith.truncf %83 : vector<2x8x8xf32> to vector<2x8x8xbf16>
    "tpu.trace_start"() <{level = 10 : i32, message = "bqk,bkd->bqd"}> : () -> ()
    %cst_32 = arith.constant dense<0.000000e+00> : vector<2x8x8xf32>
    %85 = tpu.matmul %84, %73, %cst_32 {dimension_numbers = #tpu.dot_dimension_numbers<[2], [1], [1], [2], [0, 0, 0, 1, 1, 2], [0], [0]>} : vector<2x8x8xbf16>, vector<2x8x8xbf16>, vector<2x8x8xf32> -> vector<2x8x8xf32>
    "tpu.trace_stop"() : () -> ()
    %86 = vector.extract_strided_slice %43 {offsets = [0, 0, 16], sizes = [2, 8, 8], strides = [1, 1, 1]} : vector<2x8x32xf32> to vector<2x8x8xf32>
    %cst_33 = arith.constant 0.353553385 : f32
    %87 = vector.broadcast %cst_33 : f32 to vector<2x8x8xf32>
    %88 = arith.mulf %86, %87 : vector<2x8x8xf32>
    %89 = arith.truncf %88 : vector<2x8x8xf32> to vector<2x8x8xbf16>
    %90 = vector.extract_strided_slice %44 {offsets = [0, 0, 16], sizes = [2, 8, 8], strides = [1, 1, 1]} : vector<2x8x32xf32> to vector<2x8x8xf32>
    %91 = arith.truncf %90 : vector<2x8x8xf32> to vector<2x8x8xbf16>
    %92 = vector.extract_strided_slice %45 {offsets = [0, 0, 16], sizes = [2, 8, 8], strides = [1, 1, 1]} : vector<2x8x32xf32> to vector<2x8x8xf32>
    %93 = arith.truncf %92 : vector<2x8x8xf32> to vector<2x8x8xbf16>
    "tpu.trace_start"() <{level = 10 : i32, message = "bqd,bkd->bqk"}> : () -> ()
    %cst_34 = arith.constant dense<0.000000e+00> : vector<2x8x8xf32>
    %94 = tpu.matmul %89, %91, %cst_34 {dimension_numbers = #tpu.dot_dimension_numbers<[2], [2], [1], [1], [0, 0, 0, 1, 1, 1], [0], [0]>} : vector<2x8x8xbf16>, vector<2x8x8xbf16>, vector<2x8x8xf32> -> vector<2x8x8xf32>
    "tpu.trace_stop"() : () -> ()
    %cst_35 = arith.constant dense<0xFF800000> : vector<2x8xf32>
    %95 = vector.multi_reduction <maximumf>, %94, %cst_35 [2] : vector<2x8x8xf32> to vector<2x8xf32>
    %96 = vector.shape_cast %95 : vector<2x8xf32> to vector<2x8x1xf32>
    %97 = vector.broadcast %96 : vector<2x8x1xf32> to vector<2x8x8xf32>
    %98 = arith.subf %94, %97 : vector<2x8x8xf32>
    %99 = math.exp %98 : vector<2x8x8xf32>
    %cst_36 = arith.constant dense<0.000000e+00> : vector<2x8xf32>
    %100 = vector.multi_reduction <add>, %99, %cst_36 [2] : vector<2x8x8xf32> to vector<2x8xf32>
    %101 = vector.shape_cast %100 : vector<2x8xf32> to vector<2x8x1xf32>
    %102 = vector.broadcast %101 : vector<2x8x1xf32> to vector<2x8x8xf32>
    %103 = arith.divf %99, %102 : vector<2x8x8xf32>
    %104 = arith.truncf %103 : vector<2x8x8xf32> to vector<2x8x8xbf16>
    "tpu.trace_start"() <{level = 10 : i32, message = "bqk,bkd->bqd"}> : () -> ()
    %cst_37 = arith.constant dense<0.000000e+00> : vector<2x8x8xf32>
    %105 = tpu.matmul %104, %93, %cst_37 {dimension_numbers = #tpu.dot_dimension_numbers<[2], [1], [1], [2], [0, 0, 0, 1, 1, 2], [0], [0]>} : vector<2x8x8xbf16>, vector<2x8x8xbf16>, vector<2x8x8xf32> -> vector<2x8x8xf32>
    "tpu.trace_stop"() : () -> ()
    %106 = vector.extract_strided_slice %43 {offsets = [0, 0, 24], sizes = [2, 8, 8], strides = [1, 1, 1]} : vector<2x8x32xf32> to vector<2x8x8xf32>
    %cst_38 = arith.constant 0.353553385 : f32
    %107 = vector.broadcast %cst_38 : f32 to vector<2x8x8xf32>
    %108 = arith.mulf %106, %107 : vector<2x8x8xf32>
    %109 = arith.truncf %108 : vector<2x8x8xf32> to vector<2x8x8xbf16>
    %110 = vector.extract_strided_slice %44 {offsets = [0, 0, 24], sizes = [2, 8, 8], strides = [1, 1, 1]} : vector<2x8x32xf32> to vector<2x8x8xf32>
    %111 = arith.truncf %110 : vector<2x8x8xf32> to vector<2x8x8xbf16>
    %112 = vector.extract_strided_slice %45 {offsets = [0, 0, 24], sizes = [2, 8, 8], strides = [1, 1, 1]} : vector<2x8x32xf32> to vector<2x8x8xf32>
    %113 = arith.truncf %112 : vector<2x8x8xf32> to vector<2x8x8xbf16>
    "tpu.trace_start"() <{level = 10 : i32, message = "bqd,bkd->bqk"}> : () -> ()
    %cst_39 = arith.constant dense<0.000000e+00> : vector<2x8x8xf32>
    %114 = tpu.matmul %109, %111, %cst_39 {dimension_numbers = #tpu.dot_dimension_numbers<[2], [2], [1], [1], [0, 0, 0, 1, 1, 1], [0], [0]>} : vector<2x8x8xbf16>, vector<2x8x8xbf16>, vector<2x8x8xf32> -> vector<2x8x8xf32>
    "tpu.trace_stop"() : () -> ()
    %cst_40 = arith.constant dense<0xFF800000> : vector<2x8xf32>
    %115 = vector.multi_reduction <maximumf>, %114, %cst_40 [2] : vector<2x8x8xf32> to vector<2x8xf32>
    %116 = vector.shape_cast %115 : vector<2x8xf32> to vector<2x8x1xf32>
    %117 = vector.broadcast %116 : vector<2x8x1xf32> to vector<2x8x8xf32>
    %118 = arith.subf %114, %117 : vector<2x8x8xf32>
    %119 = math.exp %118 : vector<2x8x8xf32>
    %cst_41 = arith.constant dense<0.000000e+00> : vector<2x8xf32>
    %120 = vector.multi_reduction <add>, %119, %cst_41 [2] : vector<2x8x8xf32> to vector<2x8xf32>
    %121 = vector.shape_cast %120 : vector<2x8xf32> to vector<2x8x1xf32>
    %122 = vector.broadcast %121 : vector<2x8x1xf32> to vector<2x8x8xf32>
    %123 = arith.divf %119, %122 : vector<2x8x8xf32>
    %124 = arith.truncf %123 : vector<2x8x8xf32> to vector<2x8x8xbf16>
    "tpu.trace_start"() <{level = 10 : i32, message = "bqk,bkd->bqd"}> : () -> ()
    %cst_42 = arith.constant dense<0.000000e+00> : vector<2x8x8xf32>
    %125 = tpu.matmul %124, %113, %cst_42 {dimension_numbers = #tpu.dot_dimension_numbers<[2], [1], [1], [2], [0, 0, 0, 1, 1, 2], [0], [0]>} : vector<2x8x8xbf16>, vector<2x8x8xbf16>, vector<2x8x8xf32> -> vector<2x8x8xf32>
    "tpu.trace_stop"() : () -> ()
    %126 = tpu.concatenate %65, %85, %105, %125 in 2 : vector<2x8x8xf32>, vector<2x8x8xf32>, vector<2x8x8xf32>, vector<2x8x8xf32> -> vector<2x8x32xf32>
    %127 = vector.shape_cast %126 : vector<2x8x32xf32> to vector<16x32xf32>
    %128 = arith.truncf %127 : vector<16x32xf32> to vector<16x32xbf16>
    %c0_43 = arith.constant 0 : index
    %c0_44 = arith.constant 0 : index
    %c0_45 = arith.constant 0 : index
    %129 = vector.load %arg8[%c0_43, %c0_44, %c0_45] : memref<1x32x32xbf16, #tpu.memory_space<vmem>>, vector<1x32x32xbf16>
    %130 = vector.shape_cast %129 : vector<1x32x32xbf16> to vector<32x32xbf16>
    %cst_46 = arith.constant dense<0.000000e+00> : vector<16x32xf32>
    %131 = tpu.matmul %128, %130, %cst_46 {dimension_numbers = #tpu.dot_dimension_numbers<[1], [0], [0], [1], [0, 0, 1, 1], [], []>} : vector<16x32xbf16>, vector<32x32xbf16>, vector<16x32xf32> -> vector<16x32xf32>
    %c0_47 = arith.constant 0 : index
    %c0_48 = arith.constant 0 : index
    %c0_49 = arith.constant 0 : index
    %132 = vector.load %arg9[%c0_47, %c0_48, %c0_49] : memref<1x1x32xf32, #tpu.memory_space<vmem>>, vector<1x1x32xf32>
    %133 = vector.shape_cast %132 : vector<1x1x32xf32> to vector<1x32xf32>
    %134 = vector.broadcast %133 : vector<1x32xf32> to vector<16x32xf32>
    %135 = arith.addf %131, %134 : vector<16x32xf32>
    %136 = vector.shape_cast %135 : vector<16x32xf32> to vector<2x8x32xf32>
    %137 = arith.addf %3, %136 : vector<2x8x32xf32>
    %cst_50 = arith.constant dense<0.000000e+00> : vector<2x8xf32>
    %138 = vector.multi_reduction <add>, %137, %cst_50 [2] : vector<2x8x32xf32> to vector<2x8xf32>
    %139 = vector.shape_cast %138 : vector<2x8xf32> to vector<2x8x1xf32>
    %cst_51 = arith.constant 3.200000e+01 : f32
    %140 = vector.broadcast %cst_51 : f32 to vector<2x8x1xf32>
    %141 = arith.divf %139, %140 : vector<2x8x1xf32>
    %142 = arith.mulf %137, %137 : vector<2x8x32xf32>
    %cst_52 = arith.constant dense<0.000000e+00> : vector<2x8xf32>
    %143 = vector.multi_reduction <add>, %142, %cst_52 [2] : vector<2x8x32xf32> to vector<2x8xf32>
    %144 = vector.shape_cast %143 : vector<2x8xf32> to vector<2x8x1xf32>
    %cst_53 = arith.constant 3.200000e+01 : f32
    %145 = vector.broadcast %cst_53 : f32 to vector<2x8x1xf32>
    %146 = arith.divf %144, %145 : vector<2x8x1xf32>
    %147 = arith.mulf %141, %141 : vector<2x8x1xf32>
    %148 = arith.subf %146, %147 : vector<2x8x1xf32>
    %149 = vector.broadcast %141 : vector<2x8x1xf32> to vector<2x8x32xf32>
    %150 = arith.subf %137, %149 : vector<2x8x32xf32>
    %cst_54 = arith.constant 9.99999974E-6 : f32
    %151 = vector.broadcast %cst_54 : f32 to vector<2x8x1xf32>
    %152 = arith.addf %148, %151 : vector<2x8x1xf32>
    %153 = math.rsqrt %152 : vector<2x8x1xf32>
    %154 = vector.broadcast %153 : vector<2x8x1xf32> to vector<2x8x32xf32>
    %155 = arith.mulf %150, %154 : vector<2x8x32xf32>
    %c0_55 = arith.constant 0 : index
    %c0_56 = arith.constant 0 : index
    %c0_57 = arith.constant 0 : index
    %156 = vector.load %arg10[%c0_55, %c0_56, %c0_57] : memref<1x1x32xf32, #tpu.memory_space<vmem>>, vector<1x1x32xf32>
    %157 = vector.shape_cast %156 : vector<1x1x32xf32> to vector<1x32xf32>
    %158 = vector.shape_cast %157 : vector<1x32xf32> to vector<1x1x32xf32>
    %159 = vector.broadcast %158 : vector<1x1x32xf32> to vector<2x8x32xf32>
    %160 = arith.mulf %155, %159 : vector<2x8x32xf32>
    %c0_58 = arith.constant 0 : index
    %c0_59 = arith.constant 0 : index
    %c0_60 = arith.constant 0 : index
    %161 = vector.load %arg11[%c0_58, %c0_59, %c0_60] : memref<1x1x32xf32, #tpu.memory_space<vmem>>, vector<1x1x32xf32>
    %162 = vector.shape_cast %161 : vector<1x1x32xf32> to vector<1x32xf32>
    %163 = vector.shape_cast %162 : vector<1x32xf32> to vector<1x1x32xf32>
    %164 = vector.broadcast %163 : vector<1x1x32xf32> to vector<2x8x32xf32>
    %165 = arith.addf %160, %164 : vector<2x8x32xf32>
    %166 = vector.shape_cast %165 : vector<2x8x32xf32> to vector<16x32xf32>
    %167 = arith.truncf %166 : vector<16x32xf32> to vector<16x32xbf16>
    %c0_61 = arith.constant 0 : index
    %c0_62 = arith.constant 0 : index
    %c0_63 = arith.constant 0 : index
    %168 = vector.load %arg12[%c0_61, %c0_62, %c0_63] : memref<1x32x128xbf16, #tpu.memory_space<vmem>>, vector<1x32x128xbf16>
    %169 = vector.shape_cast %168 : vector<1x32x128xbf16> to vector<32x128xbf16>
    %cst_64 = arith.constant dense<0.000000e+00> : vector<16x128xf32>
    %170 = tpu.matmul %167, %169, %cst_64 {dimension_numbers = #tpu.dot_dimension_numbers<[1], [0], [0], [1], [0, 0, 1, 1], [], []>} : vector<16x32xbf16>, vector<32x128xbf16>, vector<16x128xf32> -> vector<16x128xf32>
    %c0_65 = arith.constant 0 : index
    %c0_66 = arith.constant 0 : index
    %c0_67 = arith.constant 0 : index
    %171 = vector.load %arg13[%c0_65, %c0_66, %c0_67] : memref<1x1x128xf32, #tpu.memory_space<vmem>>, vector<1x1x128xf32>
    %172 = vector.shape_cast %171 : vector<1x1x128xf32> to vector<1x128xf32>
    %173 = vector.broadcast %172 : vector<1x128xf32> to vector<16x128xf32>
    %174 = arith.addf %170, %173 : vector<16x128xf32>
    %cst_68 = arith.constant 5.000000e-01 : f32
    %175 = vector.broadcast %cst_68 : f32 to vector<16x128xf32>
    %176 = arith.mulf %175, %174 : vector<16x128xf32>
    %cst_69 = arith.constant 0.707106769 : f32
    %177 = vector.broadcast %cst_69 : f32 to vector<16x128xf32>
    %178 = arith.mulf %174, %177 : vector<16x128xf32>
    %179 = math.erf %178 : vector<16x128xf32>
    %cst_70 = arith.constant 1.000000e+00 : f32
    %180 = vector.broadcast %cst_70 : f32 to vector<16x128xf32>
    %181 = arith.addf %180, %179 : vector<16x128xf32>
    %182 = arith.mulf %176, %181 : vector<16x128xf32>
    %183 = arith.truncf %182 : vector<16x128xf32> to vector<16x128xbf16>
    %c0_71 = arith.constant 0 : index
    %c0_72 = arith.constant 0 : index
    %c0_73 = arith.constant 0 : index
    %184 = vector.load %arg14[%c0_71, %c0_72, %c0_73] : memref<1x128x32xbf16, #tpu.memory_space<vmem>>, vector<1x128x32xbf16>
    %185 = vector.shape_cast %184 : vector<1x128x32xbf16> to vector<128x32xbf16>
    %cst_74 = arith.constant dense<0.000000e+00> : vector<16x32xf32>
    %186 = tpu.matmul %183, %185, %cst_74 {dimension_numbers = #tpu.dot_dimension_numbers<[1], [0], [0], [1], [0, 0, 1, 1], [], []>} : vector<16x128xbf16>, vector<128x32xbf16>, vector<16x32xf32> -> vector<16x32xf32>
    %c0_75 = arith.constant 0 : index
    %c0_76 = arith.constant 0 : index
    %c0_77 = arith.constant 0 : index
    %187 = vector.load %arg15[%c0_75, %c0_76, %c0_77] : memref<1x1x32xf32, #tpu.memory_space<vmem>>, vector<1x1x32xf32>
    %188 = vector.shape_cast %187 : vector<1x1x32xf32> to vector<1x32xf32>
    %189 = vector.broadcast %188 : vector<1x32xf32> to vector<16x32xf32>
    %190 = arith.addf %186, %189 : vector<16x32xf32>
    %191 = vector.shape_cast %190 : vector<16x32xf32> to vector<2x8x32xf32>
    %192 = arith.addf %137, %191 : vector<2x8x32xf32>
    %cst_78 = arith.constant dense<0.000000e+00> : vector<2x8xf32>
    %193 = vector.multi_reduction <add>, %192, %cst_78 [2] : vector<2x8x32xf32> to vector<2x8xf32>
    %194 = vector.shape_cast %193 : vector<2x8xf32> to vector<2x8x1xf32>
    %cst_79 = arith.constant 3.200000e+01 : f32
    %195 = vector.broadcast %cst_79 : f32 to vector<2x8x1xf32>
    %196 = arith.divf %194, %195 : vector<2x8x1xf32>
    %197 = arith.mulf %192, %192 : vector<2x8x32xf32>
    %cst_80 = arith.constant dense<0.000000e+00> : vector<2x8xf32>
    %198 = vector.multi_reduction <add>, %197, %cst_80 [2] : vector<2x8x32xf32> to vector<2x8xf32>
    %199 = vector.shape_cast %198 : vector<2x8xf32> to vector<2x8x1xf32>
    %cst_81 = arith.constant 3.200000e+01 : f32
    %200 = vector.broadcast %cst_81 : f32 to vector<2x8x1xf32>
    %201 = arith.divf %199, %200 : vector<2x8x1xf32>
    %202 = arith.mulf %196, %196 : vector<2x8x1xf32>
    %203 = arith.subf %201, %202 : vector<2x8x1xf32>
    %204 = vector.broadcast %196 : vector<2x8x1xf32> to vector<2x8x32xf32>
    %205 = arith.subf %192, %204 : vector<2x8x32xf32>
    %cst_82 = arith.constant 9.99999974E-6 : f32
    %206 = vector.broadcast %cst_82 : f32 to vector<2x8x1xf32>
    %207 = arith.addf %203, %206 : vector<2x8x1xf32>
    %208 = math.rsqrt %207 : vector<2x8x1xf32>
    %209 = vector.broadcast %208 : vector<2x8x1xf32> to vector<2x8x32xf32>
    %210 = arith.mulf %205, %209 : vector<2x8x32xf32>
    %c0_83 = arith.constant 0 : index
    %c0_84 = arith.constant 0 : index
    %c0_85 = arith.constant 0 : index
    %211 = vector.load %arg16[%c0_83, %c0_84, %c0_85] : memref<1x1x32xf32, #tpu.memory_space<vmem>>, vector<1x1x32xf32>
    %212 = vector.shape_cast %211 : vector<1x1x32xf32> to vector<1x32xf32>
    %213 = vector.shape_cast %212 : vector<1x32xf32> to vector<1x1x32xf32>
    %214 = vector.broadcast %213 : vector<1x1x32xf32> to vector<2x8x32xf32>
    %215 = arith.mulf %210, %214 : vector<2x8x32xf32>
    %c0_86 = arith.constant 0 : index
    %c0_87 = arith.constant 0 : index
    %c0_88 = arith.constant 0 : index
    %216 = vector.load %arg17[%c0_86, %c0_87, %c0_88] : memref<1x1x32xf32, #tpu.memory_space<vmem>>, vector<1x1x32xf32>
    %217 = vector.shape_cast %216 : vector<1x1x32xf32> to vector<1x32xf32>
    %218 = vector.shape_cast %217 : vector<1x32xf32> to vector<1x1x32xf32>
    %219 = vector.broadcast %218 : vector<1x1x32xf32> to vector<2x8x32xf32>
    %220 = arith.addf %215, %219 : vector<2x8x32xf32>
    %221 = vector.shape_cast %220 : vector<2x8x32xf32> to vector<16x32xf32>
    %222 = arith.truncf %221 : vector<16x32xf32> to vector<16x32xbf16>
    %c0_89 = arith.constant 0 : index
    %c0_90 = arith.constant 0 : index
    %c0_91 = arith.constant 0 : index
    %223 = vector.load %arg18[%c0_89, %c0_90, %c0_91] : memref<1x32x32xbf16, #tpu.memory_space<vmem>>, vector<1x32x32xbf16>
    %224 = vector.shape_cast %223 : vector<1x32x32xbf16> to vector<32x32xbf16>
    %cst_92 = arith.constant dense<0.000000e+00> : vector<16x32xf32>
    %225 = tpu.matmul %222, %224, %cst_92 {dimension_numbers = #tpu.dot_dimension_numbers<[1], [0], [0], [1], [0, 0, 1, 1], [], []>} : vector<16x32xbf16>, vector<32x32xbf16>, vector<16x32xf32> -> vector<16x32xf32>
    %c0_93 = arith.constant 0 : index
    %c0_94 = arith.constant 0 : index
    %c0_95 = arith.constant 0 : index
    %226 = vector.load %arg19[%c0_93, %c0_94, %c0_95] : memref<1x1x32xf32, #tpu.memory_space<vmem>>, vector<1x1x32xf32>
    %227 = vector.shape_cast %226 : vector<1x1x32xf32> to vector<1x32xf32>
    %228 = vector.broadcast %227 : vector<1x32xf32> to vector<16x32xf32>
    %229 = arith.addf %225, %228 : vector<16x32xf32>
    %230 = vector.shape_cast %229 : vector<16x32xf32> to vector<2x8x32xf32>
    %231 = vector.shape_cast %4 : vector<2x8x32xf32> to vector<16x32xf32>
    %232 = arith.truncf %231 : vector<16x32xf32> to vector<16x32xbf16>
    %c0_96 = arith.constant 0 : index
    %c0_97 = arith.constant 0 : index
    %c0_98 = arith.constant 0 : index
    %233 = vector.load %arg20[%c0_96, %c0_97, %c0_98] : memref<1x32x64xbf16, #tpu.memory_space<vmem>>, vector<1x32x64xbf16>
    %234 = vector.shape_cast %233 : vector<1x32x64xbf16> to vector<32x64xbf16>
    %cst_99 = arith.constant dense<0.000000e+00> : vector<16x64xf32>
    %235 = tpu.matmul %232, %234, %cst_99 {dimension_numbers = #tpu.dot_dimension_numbers<[1], [0], [0], [1], [0, 0, 1, 1], [], []>} : vector<16x32xbf16>, vector<32x64xbf16>, vector<16x64xf32> -> vector<16x64xf32>
    %c0_100 = arith.constant 0 : index
    %c0_101 = arith.constant 0 : index
    %c0_102 = arith.constant 0 : index
    %236 = vector.load %arg21[%c0_100, %c0_101, %c0_102] : memref<1x1x64xf32, #tpu.memory_space<vmem>>, vector<1x1x64xf32>
    %237 = vector.shape_cast %236 : vector<1x1x64xf32> to vector<1x64xf32>
    %238 = vector.broadcast %237 : vector<1x64xf32> to vector<16x64xf32>
    %239 = arith.addf %235, %238 : vector<16x64xf32>
    %240 = vector.shape_cast %239 : vector<16x64xf32> to vector<2x8x64xf32>
    %241 = vector.extract_strided_slice %240 {offsets = [0, 0, 0], sizes = [2, 8, 32], strides = [1, 1, 1]} : vector<2x8x64xf32> to vector<2x8x32xf32>
    %242 = vector.extract_strided_slice %240 {offsets = [0, 0, 32], sizes = [2, 8, 32], strides = [1, 1, 1]} : vector<2x8x64xf32> to vector<2x8x32xf32>
    %243 = vector.extract_strided_slice %230 {offsets = [0, 0, 0], sizes = [2, 8, 8], strides = [1, 1, 1]} : vector<2x8x32xf32> to vector<2x8x8xf32>
    %cst_103 = arith.constant 0.353553385 : f32
    %244 = vector.broadcast %cst_103 : f32 to vector<2x8x8xf32>
    %245 = arith.mulf %243, %244 : vector<2x8x8xf32>
    %246 = arith.truncf %245 : vector<2x8x8xf32> to vector<2x8x8xbf16>
    %247 = vector.extract_strided_slice %241 {offsets = [0, 0, 0], sizes = [2, 8, 8], strides = [1, 1, 1]} : vector<2x8x32xf32> to vector<2x8x8xf32>
    %248 = arith.truncf %247 : vector<2x8x8xf32> to vector<2x8x8xbf16>
    %249 = vector.extract_strided_slice %242 {offsets = [0, 0, 0], sizes = [2, 8, 8], strides = [1, 1, 1]} : vector<2x8x32xf32> to vector<2x8x8xf32>
    %250 = arith.truncf %249 : vector<2x8x8xf32> to vector<2x8x8xbf16>
    "tpu.trace_start"() <{level = 10 : i32, message = "bqd,bkd->bqk"}> : () -> ()
    %cst_104 = arith.constant dense<0.000000e+00> : vector<2x8x8xf32>
    %251 = tpu.matmul %246, %248, %cst_104 {dimension_numbers = #tpu.dot_dimension_numbers<[2], [2], [1], [1], [0, 0, 0, 1, 1, 1], [0], [0]>} : vector<2x8x8xbf16>, vector<2x8x8xbf16>, vector<2x8x8xf32> -> vector<2x8x8xf32>
    "tpu.trace_stop"() : () -> ()
    %cst_105 = arith.constant dense<0xFF800000> : vector<2x8xf32>
    %252 = vector.multi_reduction <maximumf>, %251, %cst_105 [2] : vector<2x8x8xf32> to vector<2x8xf32>
    %253 = vector.shape_cast %252 : vector<2x8xf32> to vector<2x8x1xf32>
    %254 = vector.broadcast %253 : vector<2x8x1xf32> to vector<2x8x8xf32>
    %255 = arith.subf %251, %254 : vector<2x8x8xf32>
    %256 = math.exp %255 : vector<2x8x8xf32>
    %cst_106 = arith.constant dense<0.000000e+00> : vector<2x8xf32>
    %257 = vector.multi_reduction <add>, %256, %cst_106 [2] : vector<2x8x8xf32> to vector<2x8xf32>
    %258 = vector.shape_cast %257 : vector<2x8xf32> to vector<2x8x1xf32>
    %259 = vector.broadcast %258 : vector<2x8x1xf32> to vector<2x8x8xf32>
    %260 = arith.divf %256, %259 : vector<2x8x8xf32>
    %261 = arith.truncf %260 : vector<2x8x8xf32> to vector<2x8x8xbf16>
    "tpu.trace_start"() <{level = 10 : i32, message = "bqk,bkd->bqd"}> : () -> ()
    %cst_107 = arith.constant dense<0.000000e+00> : vector<2x8x8xf32>
    %262 = tpu.matmul %261, %250, %cst_107 {dimension_numbers = #tpu.dot_dimension_numbers<[2], [1], [1], [2], [0, 0, 0, 1, 1, 2], [0], [0]>} : vector<2x8x8xbf16>, vector<2x8x8xbf16>, vector<2x8x8xf32> -> vector<2x8x8xf32>
    "tpu.trace_stop"() : () -> ()
    %263 = vector.extract_strided_slice %230 {offsets = [0, 0, 8], sizes = [2, 8, 8], strides = [1, 1, 1]} : vector<2x8x32xf32> to vector<2x8x8xf32>
    %cst_108 = arith.constant 0.353553385 : f32
    %264 = vector.broadcast %cst_108 : f32 to vector<2x8x8xf32>
    %265 = arith.mulf %263, %264 : vector<2x8x8xf32>
    %266 = arith.truncf %265 : vector<2x8x8xf32> to vector<2x8x8xbf16>
    %267 = vector.extract_strided_slice %241 {offsets = [0, 0, 8], sizes = [2, 8, 8], strides = [1, 1, 1]} : vector<2x8x32xf32> to vector<2x8x8xf32>
    %268 = arith.truncf %267 : vector<2x8x8xf32> to vector<2x8x8xbf16>
    %269 = vector.extract_strided_slice %242 {offsets = [0, 0, 8], sizes = [2, 8, 8], strides = [1, 1, 1]} : vector<2x8x32xf32> to vector<2x8x8xf32>
    %270 = arith.truncf %269 : vector<2x8x8xf32> to vector<2x8x8xbf16>
    "tpu.trace_start"() <{level = 10 : i32, message = "bqd,bkd->bqk"}> : () -> ()
    %cst_109 = arith.constant dense<0.000000e+00> : vector<2x8x8xf32>
    %271 = tpu.matmul %266, %268, %cst_109 {dimension_numbers = #tpu.dot_dimension_numbers<[2], [2], [1], [1], [0, 0, 0, 1, 1, 1], [0], [0]>} : vector<2x8x8xbf16>, vector<2x8x8xbf16>, vector<2x8x8xf32> -> vector<2x8x8xf32>
    "tpu.trace_stop"() : () -> ()
    %cst_110 = arith.constant dense<0xFF800000> : vector<2x8xf32>
    %272 = vector.multi_reduction <maximumf>, %271, %cst_110 [2] : vector<2x8x8xf32> to vector<2x8xf32>
    %273 = vector.shape_cast %272 : vector<2x8xf32> to vector<2x8x1xf32>
    %274 = vector.broadcast %273 : vector<2x8x1xf32> to vector<2x8x8xf32>
    %275 = arith.subf %271, %274 : vector<2x8x8xf32>
    %276 = math.exp %275 : vector<2x8x8xf32>
    %cst_111 = arith.constant dense<0.000000e+00> : vector<2x8xf32>
    %277 = vector.multi_reduction <add>, %276, %cst_111 [2] : vector<2x8x8xf32> to vector<2x8xf32>
    %278 = vector.shape_cast %277 : vector<2x8xf32> to vector<2x8x1xf32>
    %279 = vector.broadcast %278 : vector<2x8x1xf32> to vector<2x8x8xf32>
    %280 = arith.divf %276, %279 : vector<2x8x8xf32>
    %281 = arith.truncf %280 : vector<2x8x8xf32> to vector<2x8x8xbf16>
    "tpu.trace_start"() <{level = 10 : i32, message = "bqk,bkd->bqd"}> : () -> ()
    %cst_112 = arith.constant dense<0.000000e+00> : vector<2x8x8xf32>
    %282 = tpu.matmul %281, %270, %cst_112 {dimension_numbers = #tpu.dot_dimension_numbers<[2], [1], [1], [2], [0, 0, 0, 1, 1, 2], [0], [0]>} : vector<2x8x8xbf16>, vector<2x8x8xbf16>, vector<2x8x8xf32> -> vector<2x8x8xf32>
    "tpu.trace_stop"() : () -> ()
    %283 = vector.extract_strided_slice %230 {offsets = [0, 0, 16], sizes = [2, 8, 8], strides = [1, 1, 1]} : vector<2x8x32xf32> to vector<2x8x8xf32>
    %cst_113 = arith.constant 0.353553385 : f32
    %284 = vector.broadcast %cst_113 : f32 to vector<2x8x8xf32>
    %285 = arith.mulf %283, %284 : vector<2x8x8xf32>
    %286 = arith.truncf %285 : vector<2x8x8xf32> to vector<2x8x8xbf16>
    %287 = vector.extract_strided_slice %241 {offsets = [0, 0, 16], sizes = [2, 8, 8], strides = [1, 1, 1]} : vector<2x8x32xf32> to vector<2x8x8xf32>
    %288 = arith.truncf %287 : vector<2x8x8xf32> to vector<2x8x8xbf16>
    %289 = vector.extract_strided_slice %242 {offsets = [0, 0, 16], sizes = [2, 8, 8], strides = [1, 1, 1]} : vector<2x8x32xf32> to vector<2x8x8xf32>
    %290 = arith.truncf %289 : vector<2x8x8xf32> to vector<2x8x8xbf16>
    "tpu.trace_start"() <{level = 10 : i32, message = "bqd,bkd->bqk"}> : () -> ()
    %cst_114 = arith.constant dense<0.000000e+00> : vector<2x8x8xf32>
    %291 = tpu.matmul %286, %288, %cst_114 {dimension_numbers = #tpu.dot_dimension_numbers<[2], [2], [1], [1], [0, 0, 0, 1, 1, 1], [0], [0]>} : vector<2x8x8xbf16>, vector<2x8x8xbf16>, vector<2x8x8xf32> -> vector<2x8x8xf32>
    "tpu.trace_stop"() : () -> ()
    %cst_115 = arith.constant dense<0xFF800000> : vector<2x8xf32>
    %292 = vector.multi_reduction <maximumf>, %291, %cst_115 [2] : vector<2x8x8xf32> to vector<2x8xf32>
    %293 = vector.shape_cast %292 : vector<2x8xf32> to vector<2x8x1xf32>
    %294 = vector.broadcast %293 : vector<2x8x1xf32> to vector<2x8x8xf32>
    %295 = arith.subf %291, %294 : vector<2x8x8xf32>
    %296 = math.exp %295 : vector<2x8x8xf32>
    %cst_116 = arith.constant dense<0.000000e+00> : vector<2x8xf32>
    %297 = vector.multi_reduction <add>, %296, %cst_116 [2] : vector<2x8x8xf32> to vector<2x8xf32>
    %298 = vector.shape_cast %297 : vector<2x8xf32> to vector<2x8x1xf32>
    %299 = vector.broadcast %298 : vector<2x8x1xf32> to vector<2x8x8xf32>
    %300 = arith.divf %296, %299 : vector<2x8x8xf32>
    %301 = arith.truncf %300 : vector<2x8x8xf32> to vector<2x8x8xbf16>
    "tpu.trace_start"() <{level = 10 : i32, message = "bqk,bkd->bqd"}> : () -> ()
    %cst_117 = arith.constant dense<0.000000e+00> : vector<2x8x8xf32>
    %302 = tpu.matmul %301, %290, %cst_117 {dimension_numbers = #tpu.dot_dimension_numbers<[2], [1], [1], [2], [0, 0, 0, 1, 1, 2], [0], [0]>} : vector<2x8x8xbf16>, vector<2x8x8xbf16>, vector<2x8x8xf32> -> vector<2x8x8xf32>
    "tpu.trace_stop"() : () -> ()
    %303 = vector.extract_strided_slice %230 {offsets = [0, 0, 24], sizes = [2, 8, 8], strides = [1, 1, 1]} : vector<2x8x32xf32> to vector<2x8x8xf32>
    %cst_118 = arith.constant 0.353553385 : f32
    %304 = vector.broadcast %cst_118 : f32 to vector<2x8x8xf32>
    %305 = arith.mulf %303, %304 : vector<2x8x8xf32>
    %306 = arith.truncf %305 : vector<2x8x8xf32> to vector<2x8x8xbf16>
    %307 = vector.extract_strided_slice %241 {offsets = [0, 0, 24], sizes = [2, 8, 8], strides = [1, 1, 1]} : vector<2x8x32xf32> to vector<2x8x8xf32>
    %308 = arith.truncf %307 : vector<2x8x8xf32> to vector<2x8x8xbf16>
    %309 = vector.extract_strided_slice %242 {offsets = [0, 0, 24], sizes = [2, 8, 8], strides = [1, 1, 1]} : vector<2x8x32xf32> to vector<2x8x8xf32>
    %310 = arith.truncf %309 : vector<2x8x8xf32> to vector<2x8x8xbf16>
    "tpu.trace_start"() <{level = 10 : i32, message = "bqd,bkd->bqk"}> : () -> ()
    %cst_119 = arith.constant dense<0.000000e+00> : vector<2x8x8xf32>
    %311 = tpu.matmul %306, %308, %cst_119 {dimension_numbers = #tpu.dot_dimension_numbers<[2], [2], [1], [1], [0, 0, 0, 1, 1, 1], [0], [0]>} : vector<2x8x8xbf16>, vector<2x8x8xbf16>, vector<2x8x8xf32> -> vector<2x8x8xf32>
    "tpu.trace_stop"() : () -> ()
    %cst_120 = arith.constant dense<0xFF800000> : vector<2x8xf32>
    %312 = vector.multi_reduction <maximumf>, %311, %cst_120 [2] : vector<2x8x8xf32> to vector<2x8xf32>
    %313 = vector.shape_cast %312 : vector<2x8xf32> to vector<2x8x1xf32>
    %314 = vector.broadcast %313 : vector<2x8x1xf32> to vector<2x8x8xf32>
    %315 = arith.subf %311, %314 : vector<2x8x8xf32>
    %316 = math.exp %315 : vector<2x8x8xf32>
    %cst_121 = arith.constant dense<0.000000e+00> : vector<2x8xf32>
    %317 = vector.multi_reduction <add>, %316, %cst_121 [2] : vector<2x8x8xf32> to vector<2x8xf32>
    %318 = vector.shape_cast %317 : vector<2x8xf32> to vector<2x8x1xf32>
    %319 = vector.broadcast %318 : vector<2x8x1xf32> to vector<2x8x8xf32>
    %320 = arith.divf %316, %319 : vector<2x8x8xf32>
    %321 = arith.truncf %320 : vector<2x8x8xf32> to vector<2x8x8xbf16>
    "tpu.trace_start"() <{level = 10 : i32, message = "bqk,bkd->bqd"}> : () -> ()
    %cst_122 = arith.constant dense<0.000000e+00> : vector<2x8x8xf32>
    %322 = tpu.matmul %321, %310, %cst_122 {dimension_numbers = #tpu.dot_dimension_numbers<[2], [1], [1], [2], [0, 0, 0, 1, 1, 2], [0], [0]>} : vector<2x8x8xbf16>, vector<2x8x8xbf16>, vector<2x8x8xf32> -> vector<2x8x8xf32>
    "tpu.trace_stop"() : () -> ()
    %323 = tpu.concatenate %262, %282, %302, %322 in 2 : vector<2x8x8xf32>, vector<2x8x8xf32>, vector<2x8x8xf32>, vector<2x8x8xf32> -> vector<2x8x32xf32>
    %324 = vector.shape_cast %323 : vector<2x8x32xf32> to vector<16x32xf32>
    %325 = arith.truncf %324 : vector<16x32xf32> to vector<16x32xbf16>
    %c0_123 = arith.constant 0 : index
    %c0_124 = arith.constant 0 : index
    %c0_125 = arith.constant 0 : index
    %326 = vector.load %arg22[%c0_123, %c0_124, %c0_125] : memref<1x32x32xbf16, #tpu.memory_space<vmem>>, vector<1x32x32xbf16>
    %327 = vector.shape_cast %326 : vector<1x32x32xbf16> to vector<32x32xbf16>
    %cst_126 = arith.constant dense<0.000000e+00> : vector<16x32xf32>
    %328 = tpu.matmul %325, %327, %cst_126 {dimension_numbers = #tpu.dot_dimension_numbers<[1], [0], [0], [1], [0, 0, 1, 1], [], []>} : vector<16x32xbf16>, vector<32x32xbf16>, vector<16x32xf32> -> vector<16x32xf32>
    %c0_127 = arith.constant 0 : index
    %c0_128 = arith.constant 0 : index
    %c0_129 = arith.constant 0 : index
    %329 = vector.load %arg23[%c0_127, %c0_128, %c0_129] : memref<1x1x32xf32, #tpu.memory_space<vmem>>, vector<1x1x32xf32>
    %330 = vector.shape_cast %329 : vector<1x1x32xf32> to vector<1x32xf32>
    %331 = vector.broadcast %330 : vector<1x32xf32> to vector<16x32xf32>
    %332 = arith.addf %328, %331 : vector<16x32xf32>
    %c0_130 = arith.constant 0 : index
    %c0_131 = arith.constant 0 : index
    %c0_132 = arith.constant 0 : index
    %333 = vector.load %arg24[%c0_130, %c0_131, %c0_132] : memref<1x1x32xf32, #tpu.memory_space<vmem>>, vector<1x1x32xf32>
    %334 = vector.shape_cast %333 : vector<1x1x32xf32> to vector<1x32xf32>
    %335 = math.tanh %334 : vector<1x32xf32>
    %336 = vector.shape_cast %332 : vector<16x32xf32> to vector<2x8x32xf32>
    %337 = vector.shape_cast %335 : vector<1x32xf32> to vector<1x1x32xf32>
    %338 = vector.broadcast %337 : vector<1x1x32xf32> to vector<2x8x32xf32>
    %339 = arith.mulf %338, %336 : vector<2x8x32xf32>
    %340 = arith.addf %192, %339 : vector<2x8x32xf32>
    %cst_133 = arith.constant dense<0.000000e+00> : vector<2x8xf32>
    %341 = vector.multi_reduction <add>, %340, %cst_133 [2] : vector<2x8x32xf32> to vector<2x8xf32>
    %342 = vector.shape_cast %341 : vector<2x8xf32> to vector<2x8x1xf32>
    %cst_134 = arith.constant 3.200000e+01 : f32
    %343 = vector.broadcast %cst_134 : f32 to vector<2x8x1xf32>
    %344 = arith.divf %342, %343 : vector<2x8x1xf32>
    %345 = arith.mulf %340, %340 : vector<2x8x32xf32>
    %cst_135 = arith.constant dense<0.000000e+00> : vector<2x8xf32>
    %346 = vector.multi_reduction <add>, %345, %cst_135 [2] : vector<2x8x32xf32> to vector<2x8xf32>
    %347 = vector.shape_cast %346 : vector<2x8xf32> to vector<2x8x1xf32>
    %cst_136 = arith.constant 3.200000e+01 : f32
    %348 = vector.broadcast %cst_136 : f32 to vector<2x8x1xf32>
    %349 = arith.divf %347, %348 : vector<2x8x1xf32>
    %350 = arith.mulf %344, %344 : vector<2x8x1xf32>
    %351 = arith.subf %349, %350 : vector<2x8x1xf32>
    %352 = vector.broadcast %344 : vector<2x8x1xf32> to vector<2x8x32xf32>
    %353 = arith.subf %340, %352 : vector<2x8x32xf32>
    %cst_137 = arith.constant 9.99999974E-6 : f32
    %354 = vector.broadcast %cst_137 : f32 to vector<2x8x1xf32>
    %355 = arith.addf %351, %354 : vector<2x8x1xf32>
    %356 = math.rsqrt %355 : vector<2x8x1xf32>
    %357 = vector.broadcast %356 : vector<2x8x1xf32> to vector<2x8x32xf32>
    %358 = arith.mulf %353, %357 : vector<2x8x32xf32>
    %c0_138 = arith.constant 0 : index
    %c0_139 = arith.constant 0 : index
    %c0_140 = arith.constant 0 : index
    %359 = vector.load %arg25[%c0_138, %c0_139, %c0_140] : memref<1x1x32xf32, #tpu.memory_space<vmem>>, vector<1x1x32xf32>
    %360 = vector.shape_cast %359 : vector<1x1x32xf32> to vector<1x32xf32>
    %361 = vector.shape_cast %360 : vector<1x32xf32> to vector<1x1x32xf32>
    %362 = vector.broadcast %361 : vector<1x1x32xf32> to vector<2x8x32xf32>
    %363 = arith.mulf %358, %362 : vector<2x8x32xf32>
    %c0_141 = arith.constant 0 : index
    %c0_142 = arith.constant 0 : index
    %c0_143 = arith.constant 0 : index
    %364 = vector.load %arg26[%c0_141, %c0_142, %c0_143] : memref<1x1x32xf32, #tpu.memory_space<vmem>>, vector<1x1x32xf32>
    %365 = vector.shape_cast %364 : vector<1x1x32xf32> to vector<1x32xf32>
    %366 = vector.shape_cast %365 : vector<1x32xf32> to vector<1x1x32xf32>
    %367 = vector.broadcast %366 : vector<1x1x32xf32> to vector<2x8x32xf32>
    %368 = arith.addf %363, %367 : vector<2x8x32xf32>
    %c0_144 = arith.constant 0 : index
    %c0_145 = arith.constant 0 : index
    %c0_146 = arith.constant 0 : index
    %369 = vector.load %arg28[%c0_144, %c0_145, %c0_146] : memref<2x8x32xf32, #tpu.memory_space<vmem>>, vector<2x8x32xf32>
    tpu.vector_store %arg28[%c0_144, %c0_145, %c0_146], %368 {strides = array<i32>} : memref<2x8x32xf32, #tpu.memory_space<vmem>>, vector<2x8x32xf32>,
    %c1_i32 = arith.constant 1 : i32
    %370 = arith.cmpi eq, %arg1, %c1_i32 : i32
    %371 = arith.extui %370 : i1 to i32
    %c0_i32_147 = arith.constant 0 : i32
    %372 = arith.cmpi ne, %371, %c0_i32_147 : i32
    scf.if %372 {
      %c0_148 = arith.constant 0 : index
      %c0_149 = arith.constant 0 : index
      %c0_150 = arith.constant 0 : index
      %373 = vector.load %arg27[%c0_148, %c0_149, %c0_150] : memref<2x8x32xf32, #tpu.memory_space<vmem>>, vector<2x8x32xf32>
      tpu.vector_store %arg27[%c0_148, %c0_149, %c0_150], %368 {strides = array<i32>} : memref<2x8x32xf32, #tpu.memory_space<vmem>>, vector<2x8x32xf32>,
    } else {
    }
    return
  }
  func.func @transform_0(%arg0: i32, %arg1: i32) -> (i32, i32, i32) {
    %c0_i32 = arith.constant 0 : i32
    %c0_i32_0 = arith.constant 0 : i32
    %c0_i32_1 = arith.constant 0 : i32
    return %arg0, %c0_i32, %c0_i32_0 : i32, i32, i32
  }
  func.func @transform_1(%arg0: i32, %arg1: i32) -> (i32, i32, i32) {
    %c0_i32 = arith.constant 0 : i32
    %c0_i32_0 = arith.constant 0 : i32
    %c0_i32_1 = arith.constant 0 : i32
    return %arg0, %c0_i32, %c0_i32_0 : i32, i32, i32
  }
  func.func @transform_2(%arg0: i32, %arg1: i32) -> (i32, i32, i32) {
    %c0_i32 = arith.constant 0 : i32
    %c0_i32_0 = arith.constant 0 : i32
    %c0_i32_1 = arith.constant 0 : i32
    return %arg1, %c0_i32, %c0_i32_0 : i32, i32, i32
  }
  func.func @transform_3(%arg0: i32, %arg1: i32) -> (i32, i32, i32) {
    %c0_i32 = arith.constant 0 : i32
    %c0_i32_0 = arith.constant 0 : i32
    %c0_i32_1 = arith.constant 0 : i32
    return %arg1, %c0_i32, %c0_i32_0 : i32, i32, i32
  }
  func.func @transform_4(%arg0: i32, %arg1: i32) -> (i32, i32, i32) {
    %c0_i32 = arith.constant 0 : i32
    %c0_i32_0 = arith.constant 0 : i32
    %c0_i32_1 = arith.constant 0 : i32
    return %arg1, %c0_i32, %c0_i32_0 : i32, i32, i32
  }
  func.func @transform_5(%arg0: i32, %arg1: i32) -> (i32, i32, i32) {
    %c0_i32 = arith.constant 0 : i32
    %c0_i32_0 = arith.constant 0 : i32
    %c0_i32_1 = arith.constant 0 : i32
    return %arg1, %c0_i32, %c0_i32_0 : i32, i32, i32
  }
  func.func @transform_6(%arg0: i32, %arg1: i32) -> (i32, i32, i32) {
    %c0_i32 = arith.constant 0 : i32
    %c0_i32_0 = arith.constant 0 : i32
    %c0_i32_1 = arith.constant 0 : i32
    return %arg1, %c0_i32, %c0_i32_0 : i32, i32, i32
  }
  func.func @transform_7(%arg0: i32, %arg1: i32) -> (i32, i32, i32) {
    %c0_i32 = arith.constant 0 : i32
    %c0_i32_0 = arith.constant 0 : i32
    %c0_i32_1 = arith.constant 0 : i32
    return %arg1, %c0_i32, %c0_i32_0 : i32, i32, i32
  }
  func.func @transform_8(%arg0: i32, %arg1: i32) -> (i32, i32, i32) {
    %c0_i32 = arith.constant 0 : i32
    %c0_i32_0 = arith.constant 0 : i32
    %c0_i32_1 = arith.constant 0 : i32
    return %arg1, %c0_i32, %c0_i32_0 : i32, i32, i32
  }
  func.func @transform_9(%arg0: i32, %arg1: i32) -> (i32, i32, i32) {
    %c0_i32 = arith.constant 0 : i32
    %c0_i32_0 = arith.constant 0 : i32
    %c0_i32_1 = arith.constant 0 : i32
    return %arg1, %c0_i32, %c0_i32_0 : i32, i32, i32
  }
  func.func @transform_10(%arg0: i32, %arg1: i32) -> (i32, i32, i32) {
    %c0_i32 = arith.constant 0 : i32
    %c0_i32_0 = arith.constant 0 : i32
    %c0_i32_1 = arith.constant 0 : i32
    return %arg1, %c0_i32, %c0_i32_0 : i32, i32, i32
  }
  func.func @transform_11(%arg0: i32, %arg1: i32) -> (i32, i32, i32) {
    %c0_i32 = arith.constant 0 : i32
    %c0_i32_0 = arith.constant 0 : i32
    %c0_i32_1 = arith.constant 0 : i32
    return %arg1, %c0_i32, %c0_i32_0 : i32, i32, i32
  }
  func.func @transform_12(%arg0: i32, %arg1: i32) -> (i32, i32, i32) {
    %c0_i32 = arith.constant 0 : i32
    %c0_i32_0 = arith.constant 0 : i32
    %c0_i32_1 = arith.constant 0 : i32
    return %arg1, %c0_i32, %c0_i32_0 : i32, i32, i32
  }
  func.func @transform_13(%arg0: i32, %arg1: i32) -> (i32, i32, i32) {
    %c0_i32 = arith.constant 0 : i32
    %c0_i32_0 = arith.constant 0 : i32
    %c0_i32_1 = arith.constant 0 : i32
    return %arg1, %c0_i32, %c0_i32_0 : i32, i32, i32
  }
  func.func @transform_14(%arg0: i32, %arg1: i32) -> (i32, i32, i32) {
    %c0_i32 = arith.constant 0 : i32
    %c0_i32_0 = arith.constant 0 : i32
    %c0_i32_1 = arith.constant 0 : i32
    return %arg1, %c0_i32, %c0_i32_0 : i32, i32, i32
  }
  func.func @transform_15(%arg0: i32, %arg1: i32) -> (i32, i32, i32) {
    %c0_i32 = arith.constant 0 : i32
    %c0_i32_0 = arith.constant 0 : i32
    %c0_i32_1 = arith.constant 0 : i32
    return %arg1, %c0_i32, %c0_i32_0 : i32, i32, i32
  }
  func.func @transform_16(%arg0: i32, %arg1: i32) -> (i32, i32, i32) {
    %c0_i32 = arith.constant 0 : i32
    %c0_i32_0 = arith.constant 0 : i32
    %c0_i32_1 = arith.constant 0 : i32
    return %arg1, %c0_i32, %c0_i32_0 : i32, i32, i32
  }
  func.func @transform_17(%arg0: i32, %arg1: i32) -> (i32, i32, i32) {
    %c0_i32 = arith.constant 0 : i32
    %c0_i32_0 = arith.constant 0 : i32
    %c0_i32_1 = arith.constant 0 : i32
    return %arg1, %c0_i32, %c0_i32_0 : i32, i32, i32
  }
  func.func @transform_18(%arg0: i32, %arg1: i32) -> (i32, i32, i32) {
    %c0_i32 = arith.constant 0 : i32
    %c0_i32_0 = arith.constant 0 : i32
    %c0_i32_1 = arith.constant 0 : i32
    return %arg1, %c0_i32, %c0_i32_0 : i32, i32, i32
  }
  func.func @transform_19(%arg0: i32, %arg1: i32) -> (i32, i32, i32) {
    %c0_i32 = arith.constant 0 : i32
    %c0_i32_0 = arith.constant 0 : i32
    %c0_i32_1 = arith.constant 0 : i32
    return %arg1, %c0_i32, %c0_i32_0 : i32, i32, i32
  }
  func.func @transform_20(%arg0: i32, %arg1: i32) -> (i32, i32, i32) {
    %c0_i32 = arith.constant 0 : i32
    %c0_i32_0 = arith.constant 0 : i32
    %c0_i32_1 = arith.constant 0 : i32
    return %arg1, %c0_i32, %c0_i32_0 : i32, i32, i32
  }
  func.func @transform_21(%arg0: i32, %arg1: i32) -> (i32, i32, i32) {
    %c0_i32 = arith.constant 0 : i32
    %c0_i32_0 = arith.constant 0 : i32
    %c0_i32_1 = arith.constant 0 : i32
    return %arg1, %c0_i32, %c0_i32_0 : i32, i32, i32
  }
  func.func @transform_22(%arg0: i32, %arg1: i32) -> (i32, i32, i32) {
    %c0_i32 = arith.constant 0 : i32
    %c0_i32_0 = arith.constant 0 : i32
    %c0_i32_1 = arith.constant 0 : i32
    return %arg1, %c0_i32, %c0_i32_0 : i32, i32, i32
  }
  func.func @transform_23(%arg0: i32, %arg1: i32) -> (i32, i32, i32) {
    %c0_i32 = arith.constant 0 : i32
    %c0_i32_0 = arith.constant 0 : i32
    %c0_i32_1 = arith.constant 0 : i32
    return %arg1, %c0_i32, %c0_i32_0 : i32, i32, i32
  }
  func.func @transform_24(%arg0: i32, %arg1: i32) -> (i32, i32, i32) {
    %c0_i32 = arith.constant 0 : i32
    %c0_i32_0 = arith.constant 0 : i32
    %c0_i32_1 = arith.constant 0 : i32
    return %arg1, %c0_i32, %c0_i32_0 : i32, i32, i32
  }
  func.func @transform_25(%arg0: i32, %arg1: i32) -> (i32, i32, i32) {
    %c0_i32 = arith.constant 0 : i32
    %c0_i32_0 = arith.constant 0 : i32
    %c0_i32_1 = arith.constant 0 : i32
    return %arg0, %c0_i32, %c0_i32_0 : i32, i32, i32
  }
}

</mosaic_0001>

<bundles_post_ra>
// kernel: tpu_custom_call.1
= control target key start
LH: loop header
LB: loop body
LE: loop exit
PB: predicated region body
PF: predicated region fallthrough
CT: control target
= control target key end

     0   :  { %s6801_s0 = inlined_call_operand.hbm [shape: f32[2,8,32], index: 0, kind: input, shape index: {}]   ;;  %s6802_s1 = inlined_call_operand.hbm [shape: f32[2,8,32], index: 1, kind: input, shape index: {}]   ;;  %s6803_s2 = inlined_call_operand.hbm [shape: f32[2,1,32], index: 2, kind: input, shape index: {}]   ;;  %s6804_s3 = inlined_call_operand.hbm [shape: f32[2,1,32], index: 3, kind: input, shape index: {}]   ;;  %s6805_s4 = inlined_call_operand.vmem [shape: bf16[2,32,96], index: 4, kind: input, shape index: {}]   ;;  %s6806_s5 = inlined_call_operand.hbm [shape: f32[2,1,96], index: 5, kind: input, shape index: {}]   ;;  %s6807_s6 = inlined_call_operand.vmem [shape: bf16[2,32,32], index: 6, kind: input, shape index: {}]   ;;  %s6808_s7 = inlined_call_operand.hbm [shape: f32[2,1,32], index: 7, kind: input, shape index: {}]   ;;  %s6809_s8 = inlined_call_operand.hbm [shape: f32[2,1,32], index: 8, kind: input, shape index: {}]   ;;  %s6810_s9 = inlined_call_operand.hbm [shape: f32[2,1,32], index: 9, kind: input, shape index: {}]   ;;  %s6811_s10 = inlined_call_operand.vmem [shape: bf16[2,32,128], index: 10, kind: input, shape index: {}]   ;;  %s6812_s11 = inlined_call_operand.hbm [shape: f32[2,1,128], index: 11, kind: input, shape index: {}]   ;;  %s6813_s12 = inlined_call_operand.vmem [shape: bf16[2,128,32], index: 12, kind: input, shape index: {}]   ;;  %s6814_s13 = inlined_call_operand.hbm [shape: f32[2,1,32], index: 13, kind: input, shape index: {}]   ;;  %s6815_s14 = inlined_call_operand.hbm [shape: f32[2,1,32], index: 14, kind: input, shape index: {}]   ;;  %s6816_s15 = inlined_call_operand.hbm [shape: f32[2,1,32], index: 15, kind: input, shape index: {}]   ;;  %s6817_s16 = inlined_call_operand.vmem [shape: bf16[2,32,32], index: 16, kind: input, shape index: {}]   ;;  %s6818_s17 = inlined_call_operand.hbm [shape: f32[2,1,32], index: 17, kind: input, shape index: {}]   ;;  %s6819_s18 = inlined_call_operand.vmem [shape: bf16[2,32,64], index: 18, kind: input, shape index: {}]   ;;  %s6820_s19 = inlined_call_operand.vmem [shape: f32[2,1,64], index: 19, kind: input, shape index: {}]   ;;  %s6821_s20 = inlined_call_operand.vmem [shape: bf16[2,32,32], index: 20, kind: input, shape index: {}]   ;;  %s6822_s21 = inlined_call_operand.vmem [shape: f32[2,1,32], index: 21, kind: input, shape index: {}]   ;;  %s6823_s22 = inlined_call_operand.vmem [shape: f32[2,1,32], index: 22, kind: input, shape index: {}]   ;;  %s6824_s23 = inlined_call_operand.vmem [shape: f32[2,1,32], index: 23, kind: input, shape index: {}]   ;;  %s6825_s24 = inlined_call_operand.vmem [shape: f32[2,1,32], index: 24, kind: input, shape index: {}]   ;;  %s6826_s25 = inlined_call_operand.hbm [shape: f32[2,8,32], index: 25, kind: output, shape index: {}]  }
   0x1   :  { %6868 = sst [smem:[#allocation34_spill]] %s6801_s0 }
   0x2   :  { %6869 = sst [smem:[#allocation35_spill]] %s6802_s1 }
   0x3   :  { %6870 = sst [smem:[#allocation36_spill]] %s6803_s2 }
   0x4   :  { %6871 = sst [smem:[#allocation37_spill]] %s6804_s3 }
   0x5   :  { %6872 = sst [smem:[#allocation38_spill]] %s6805_s4 }
   0x6   :  { %6873 = sst [smem:[#allocation39_spill]] %s6806_s5 }
   0x7   :  { %6874 = sst [smem:[#allocation40_spill]] %s6807_s6 }
   0x8   :  { %6875 = sst [smem:[#allocation41_spill]] %s6808_s7 }
   0x9   :  { %6876 = sst [smem:[#allocation42_spill]] %s6809_s8 }
   0xa   :  { %6877 = sst [smem:[#allocation43_spill]] %s6810_s9 }
   0xb   :  { %6878 = sst [smem:[#allocation44_spill]] %s6811_s10 }
   0xc   :  { %6879 = sst [smem:[#allocation45_spill]] %s6812_s11 }
   0xd   :  { %6880 = sst [smem:[#allocation46_spill]] %s6813_s12 }
   0xe   :  { %6881 = sst [smem:[#allocation47_spill]] %s6814_s13 }
   0xf   :  { %6882 = sst [smem:[#allocation48_spill]] %s6815_s14 }
  0x10   :  { %6883 = sst [smem:[#allocation49_spill]] %s6816_s15 }
  0x11   :  { %6884 = sst [smem:[#allocation50_spill]] %s6817_s16 }
  0x12   :  { %6885 = sst [smem:[#allocation51_spill]] %s6818_s17 }
  0x13   :  { %6886 = sst [smem:[#allocation52_spill]] %s6819_s18 }
  0x14   :  { %6887 = sst [smem:[#allocation53_spill]] %s6820_s19 }
  0x15   :  { %6888 = sst [smem:[#allocation54_spill]] %s6821_s20 }
  0x16   :  { %6889 = sst [smem:[#allocation55_spill]] %s6822_s21 }
  0x17   :  { %6890 = sst [smem:[#allocation56_spill]] %s6823_s22 }
  0x18   :  { %6891 = sst [smem:[#allocation57_spill]] %s6824_s23 }
  0x19   :  { %6892 = sst [smem:[#allocation58_spill]] %s6825_s24 }
  0x1a   :  { %6893 = sst [smem:[#allocation59_spill]] %s6826_s25 }
  0x1b   :  { %30 = vsyncpa [#allocation4], 0 }
  0x1c   :  { %31 = vsyncpa [#allocation7], 0 }
  0x1d   :  { %32 = vsyncpa [#allocation5], 0  ;;  %s5732_s29 = smov 0   ;;  %s5734_s2 = smov 0  }
  0x1e   :  { %s5736_s6 = smov 0   ;;  %s5738_s30 = smov 0  }
  0x1f   :  { %s5740_s7 = smov 0   ;;  %s5742_s3 = smov 0  }
  0x20 LB: > { %6894 = sst [smem:[#allocation24_spill]] %s5551_s2  ;;  %s5761_s26 = sadd.s32 4294967295, %s5567_s3   ;;  %s5567_s3 = sphi %s5742_s3, %s38_s3   ;;  %s5563_s7 = sphi %s5740_s7, %s6981_s7   ;;  %s5559_s30 = sphi %s5738_s30, %s6980_s30   ;;  %s5555_s6 = sphi %s5736_s6, %s6979_s6   ;;  %s5551_s2 = sphi %s5734_s2, %s6978_s2   ;;  %s5547_s29 = sphi %s5732_s29, %s6977_s29  }
  0x21   : > { %6895 = sst [smem:[#allocation25_spill]] %s5555_s6  ;;  %s47_s1 = sadd.s32 1, %s5563_s7 }
  0x22   : > { %6896 = sst [smem:[#allocation26_spill]] %s5559_s30  ;;  %p48_p0 = scmp.ge.s32.totalorder %s47_s1, 2 }
  0x23   : > { %6897 = sst [smem:[#allocation27_spill]] %s5563_s7  ;;  %s109_s8 = sadd.s32 1, %s5555_s6 }
  0x24   : > { %6898 = sst [smem:[#allocation28_spill]] %s5567_s3  ;;  %p116_p1 = scmp.ne.s32.totalorder %s5555_s6, %s5551_s2 }
  0x25   : > { %6899 = sst [smem:[#allocation29_spill]] %s5761_s26  ;;  %p117_p2 = scmp.eq.s32.totalorder %s5567_s3, 0 }
  0x26   : > { %s6983_s1 = smov (%p48_p0, %s47_s1), 0  ;;  %p122_p4 = scmp.ne.s32.totalorder %s5551_s2, %s5547_s29 }
  0x27   : > { %6900 = sst [smem:[#allocation30_spill]] %s6983_s1  ;;  %p5770_p3 = por %p117_p2, %p116_p1 }
  0x28   : > { %s106_s4 = ssub.s32 %s5563_s7, %s6983_s1  ;;  %p6838_p5 = scmp.eq.s32.totalorder %s5761_s26, 0 }
  0x29   : > { %s6901_s27 = scalar_select %p5770_p3, 1, 0 }
  0x2a   : > { %p107_p6 = scmp.eq.s32.totalorder %s106_s4, 0  ;;  %p4336_p7 = scmp.ge.s32.totalorder %s5567_s3, 1 }
  0x2b   : > { %p5781_p8 = por %p6838_p5, %p122_p4  ;;  %p731_p9 = scmp.lt.s32.totalorder %s5567_s3, 3 }
  0x2c   : > { %s5787_s9 = scalar_select %p107_p6, %s5555_s6, %s109_s8  }
  0x2d   : > { %s6902_s28 = scalar_select %p5781_p8, 1, 0 }
  0x2e   : > { %6904 = sst [smem:[#allocation32_spill]] %s5787_s9  ;;  %p5789_p10 = pnand %p4336_p7, %p731_p9 }
  0x2f   : > { %6903 = sst [smem:[#allocation31_spill]] %s6902_s28  ;;  %s5569_s0 = smov [#allocation3]  }
  0x30   : > { %s6905_s5 = scalar_select %p5789_p10, 1, 0 }
  0x31   : > { %p4839_p11 = pneg %p5789_p10  ;;  %s746_s29 = sshll.u32 %s5569_s0, 4  ;;  %s747_s29 = int_to_ptr.vmem [resolvable:$true] %s746_s29 }
  0x32   : > { %s5803_s8 = sand.u32 1, %s5555_s6   ;;  %s5806_s1 = sshll.u32 %s5563_s7, 4 }
  0x33   : > { %p5797_p12 = pnand %p4839_p11, %p6838_p5  ;;  %s6907_s24 = sld [smem:[#allocation34_spill]] }
  0x35   : > { %s6906_s4 = scalar_select %p5797_p12, 1, 0 }
  0x36   : > { %p6845_p1 = pneg %p5797_p12 }
  0x39   : > { %s5093_s23 = scalar_lea.hbm %s6907_s24, 256 }
  0x3a   : > { %p5094_p0 = scmp.ne.s32.totalorder %s6907_s24, %s5093_s23  ;;  %p5100_p6 = scmp.lt.u32.totalorder %s5093_s23, %s6907_s24 }
  0x3c   : > { %p5096_p2 = pnand %p6845_p1, %p5094_p0 }
  0x3e   : > { %p5097_p4 = pneg %p5096_p2 }
  0x40   : > { %p5102_p7 = pnand %p5100_p6, %p5097_p4 }
  0x42   : > { %5105 = shalt.err (!%p5102_p7)
}
  0x43   : > { %s5106_s7 = scalar_lea.vmem %s747_s29, 256  ;;  %p5114_p13 = scmp.lt.s32.totalorder %s747_s29, %s747_s29 }
  0x44   : > { %p5107_p9 = scmp.ne.s32.totalorder %s747_s29, %s5106_s7  ;;  %p5115_p8 = scmp.lt.s32.totalorder %s5106_s7, %s5106_s7 }
  0x46   : > { %p5109_p11 = pnand %p5107_p9, %p6845_p1  ;;  %p5116_p10 = por %p5115_p8, %p5114_p13 }
  0x48   : > { %p5110_p5 = pneg %p5109_p11 }
  0x4a   : > { %p5117_p3 = pnand %p5116_p10, %p5110_p5 }
  0x4c   : > { %5120 = shalt.err (!%p5117_p3)
}
  0x4d   : > { %s6842_s21 = smov 128   ;;  %s6843_s20 = smov 8  }
  0x4e   : > { %4842 = dma.hbm_to_vmem [thread:$0]  (!%p5797_p12), %s6907_s24, 256, %s747_s29, [#allocation4], %s6842_s21, %s6842_s21, %s6843_s20  }
  0x4f   : > { %p6908_p8 = scmp.ne.s32.totalorder %s6901_s27, 0  ;;  %p6909_p5 = scmp.lt.s32.totalorder %s5567_s3, 2 }
  0x50   : > { %s776_s7 = sand.u32 1, %s5567_s3   ;;  %s6911_s6 = sld [smem:[#allocation36_spill]] }
  0x51   : > { %p5837_p3 = pnand %p6909_p5, %p6908_p8  ;;  %s779_s16 = scalar_lea.vmem [#allocation8], %s5803_s8 }
  0x52   : > { %s786_s22 = sshll.u32 %s779_s16, 4  ;;  %s6913_s23 = sld [smem:[#allocation37_spill]]  ;;  %s5849_s22 = int_to_ptr.vmem [resolvable:$true] %s786_s22 }
  0x53   : > { %s6910_s25 = scalar_select %p5837_p3, 1, 0 }
  0x54   : > { %s5857_s20 = scalar_lea.sflag [#allocation4], %s776_s7  ;;  %p5863_p13 = pneg %p5837_p3 }
  0x56   : > { %s6912_s19 = smov %s6911_s6  ;;  %s5846_s18 = scalar_lea.hbm %s6911_s6, %s5806_s1 }
  0x57   : > { %s5121_s24 = scalar_lea.hbm %s5846_s18, 16  ;;  %s5126_s0 = scalar_lea.hbm %s6912_s19, 32 }
  0x58   : > { %s5855_s21 = scalar_lea.hbm %s6913_s23, %s5806_s1  ;;  %p5122_p10 = scmp.ne.s32.totalorder %s5846_s18, %s5121_s24 }
  0x59   : > { %s6914_s6 = scalar_select %p5863_p13, 1, 0 }
  0x5a   : > { %p5124_p0 = pnand %p5863_p13, %p5122_p10  ;;  %p5127_p4 = scmp.lt.u32.totalorder %s5846_s18, %s6912_s19 }
  0x5b   : > { %p5128_p6 = scmp.lt.u32.totalorder %s5126_s0, %s5121_s24  ;;  %p5130_p9 = scmp.lt.u32.totalorder %s5121_s24, %s5846_s18 }
  0x5c   : > { %p5125_p2 = pneg %p5124_p0 }
  0x5d   : > { %p5129_p7 = por %p5128_p6, %p5127_p4 }
  0x5f   : > { %p5131_p11 = por %p5130_p9, %p5129_p7 }
  0x61   : > { %p5132_p8 = pnand %p5131_p11, %p5125_p2 }
  0x63   : > { %5135 = shalt.err (!%p5132_p8)
}
  0x64   : > { %s5136_s7 = scalar_lea.vmem %s5849_s22, 16  ;;  %s5572_s16 = smov [#allocation8]  }
  0x65   : > { %p5137_p5 = scmp.ne.s32.totalorder %s5849_s22, %s5136_s7  ;;  %s5141_s9 = sshll.u32 %s5572_s16, 4  ;;  %s5142_s9 = int_to_ptr.vmem [resolvable:$false] %s5141_s9 }
  0x66   : > { %s5143_s27 = scalar_lea.vmem %s5142_s9, 32  ;;  %p5144_p1 = scmp.lt.s32.totalorder %s5849_s22, %s5142_s9 }
  0x67   : > { %p5139_p10 = pnand %p5137_p5, %p5863_p13  ;;  %p5145_p12 = scmp.lt.s32.totalorder %s5143_s27, %s5136_s7 }
  0x69   : > { %p5140_p0 = pneg %p5139_p10  ;;  %p5146_p4 = por %p5145_p12, %p5144_p1 }
  0x6b   : > { %p5147_p6 = pnand %p5146_p4, %p5140_p0 }
  0x6d   : > { %5150 = shalt.err (!%p5147_p6)
}
  0x6e   : > { %4849 = dma.hbm_to_vmem [thread:$0]  (!%p5837_p3), %s5846_s18, 16, %s5849_s22, %s5857_s20  }
  0x6f   : > { %s796_s24 = scalar_lea.vmem [#allocation9], %s5803_s8  ;;  %s6915_s16 = sld [smem:[#allocation39_spill]] }
  0x70   : > { %s803_s0 = sshll.u32 %s796_s24, 4  ;;  %s5151_s27 = scalar_lea.hbm %s5855_s21, 16  ;;  %s804_s0 = int_to_ptr.vmem [resolvable:$true] %s803_s0 }
  0x71   : > { %p5152_p12 = scmp.ne.s32.totalorder %s5855_s21, %s5151_s27  ;;  %s5156_s12 = scalar_lea.hbm %s6913_s23, 32 }
  0x72   : > { %p5157_p7 = scmp.lt.u32.totalorder %s5855_s21, %s6913_s23  ;;  %p5158_p9 = scmp.lt.u32.totalorder %s5156_s12, %s5151_s27 }
  0x73   : > { %p5154_p1 = pnand %p5152_p12, %p5863_p13  ;;  %p5160_p8 = scmp.lt.u32.totalorder %s5151_s27, %s5855_s21 }
  0x74   : > { %p5159_p11 = por %p5158_p9, %p5157_p7 }
  0x75   : > { %s5892_s9 = scalar_lea.hbm %s6915_s16, %s5806_s1  ;;  %p5155_p2 = pneg %p5154_p1 }
  0x76   : > { %p5161_p5 = por %p5160_p8, %p5159_p11 }
  0x78   : > { %p5162_p10 = pnand %p5161_p5, %p5155_p2 }
  0x7a   : > { %5165 = shalt.err (!%p5162_p10)
}
  0x7b   : > { %s5166_s18 = scalar_lea.vmem %s804_s0, 16  ;;  %s5573_s22 = smov [#allocation9]  }
  0x7c   : > { %p5167_p0 = scmp.ne.s32.totalorder %s804_s0, %s5166_s18  ;;  %s5171_s24 = sshll.u32 %s5573_s22, 4  ;;  %s5172_s24 = int_to_ptr.vmem [resolvable:$false] %s5171_s24 }
  0x7d   : > { %s5173_s19 = scalar_lea.vmem %s5172_s24, 32  ;;  %p5174_p12 = scmp.lt.s32.totalorder %s804_s0, %s5172_s24 }
  0x7e   : > { %p5169_p4 = pnand %p5167_p0, %p5863_p13  ;;  %p5175_p1 = scmp.lt.s32.totalorder %s5173_s19, %s5166_s18 }
  0x80   : > { %p5170_p6 = pneg %p5169_p4  ;;  %p5176_p3 = por %p5175_p1, %p5174_p12 }
  0x82   : > { %p5177_p7 = pnand %p5176_p3, %p5170_p6 }
  0x84   : > { %5180 = shalt.err (!%p5177_p7)
}
  0x85   : > { %p6916_p9 = scmp.ne.s32.totalorder %s6910_s25, 0  ;;  %s821_s10 = scalar_lea.vmem [#allocation10], %s5803_s8 }
  0x86   : > { %s828_s12 = sshll.u32 %s821_s10, 4  ;;  %s6917_s29 = sld [smem:[#allocation41_spill]]  ;;  %s829_s12 = int_to_ptr.vmem [resolvable:$true] %s828_s12 }
  0x87   : > { %4852 = dma.hbm_to_vmem [thread:$0]  (!%p6916_p9), %s5855_s21, 16, %s804_s0, %s5857_s20  }
  0x88   : > { %s5181_s18 = scalar_lea.hbm %s5892_s9, 16  ;;  %s5186_s19 = scalar_lea.hbm %s6915_s16, 32 }
  0x89   : > { %p5182_p3 = scmp.ne.s32.totalorder %s5892_s9, %s5181_s18  ;;  %p5187_p8 = scmp.lt.u32.totalorder %s5892_s9, %s6915_s16 }
  0x8a   : > { %p5188_p5 = scmp.lt.u32.totalorder %s5186_s19, %s5181_s18  ;;  %p5190_p0 = scmp.lt.u32.totalorder %s5181_s18, %s5892_s9 }
  0x8b   : > { %p5184_p2 = pnand %p5182_p3, %p5863_p13 }
  0x8c   : > { %s6918_s27 = smov %s6917_s29  ;;  %s5917_s7 = scalar_lea.hbm %s6917_s29, %s5806_s1 }
  0x8d   : > { %p5185_p11 = pneg %p5184_p2  ;;  %p5189_p10 = por %p5188_p5, %p5187_p8 }
  0x8f   : > { %p5191_p4 = por %p5190_p0, %p5189_p10 }
  0x91   : > { %p5192_p6 = pnand %p5191_p4, %p5185_p11 }
  0x93   : > { %5195 = shalt.err (!%p5192_p6)
}
  0x94   : > { %s5196_s21 = scalar_lea.vmem %s829_s12, 16  ;;  %s5574_s0 = smov [#allocation10]  }
  0x95   : > { %p5197_p12 = scmp.ne.s32.totalorder %s829_s12, %s5196_s21  ;;  %s5201_s10 = sshll.u32 %s5574_s0, 4  ;;  %s5202_s10 = int_to_ptr.vmem [resolvable:$false] %s5201_s10 }
  0x96   : > { %s5203_s30 = scalar_lea.vmem %s5202_s10, 32  ;;  %p5204_p3 = scmp.lt.s32.totalorder %s829_s12, %s5202_s10 }
  0x97   : > { %p5199_p1 = pnand %p5197_p12, %p5863_p13  ;;  %p5205_p2 = scmp.lt.s32.totalorder %s5203_s30, %s5196_s21 }
  0x99   : > { %p5200_p7 = pneg %p5199_p1  ;;  %p5206_p9 = por %p5205_p2, %p5204_p3 }
  0x9b   : > { %p5207_p5 = pnand %p5206_p9, %p5200_p7 }
  0x9d   : > { %5210 = shalt.err (!%p5207_p5)
}
  0x9e   : > { %p6919_p8 = scmp.ne.s32.totalorder %s6910_s25, 0  ;;  %s846_s28 = scalar_lea.vmem [#allocation11], %s5803_s8 }
  0x9f   : > { %s853_s23 = sshll.u32 %s846_s28, 4  ;;  %s6920_s18 = sld [smem:[#allocation42_spill]]  ;;  %s854_s23 = int_to_ptr.vmem [resolvable:$true] %s853_s23 }
  0xa0   : > { %4855 = dma.hbm_to_vmem [thread:$0]  (!%p6919_p8), %s5892_s9, 16, %s829_s12, %s5857_s20  }
  0xa1   : > { %s5211_s24 = scalar_lea.hbm %s5917_s7, 16  ;;  %s5216_s0 = scalar_lea.hbm %s6918_s27, 32 }
  0xa2   : > { %p5212_p9 = scmp.ne.s32.totalorder %s5917_s7, %s5211_s24  ;;  %p5217_p0 = scmp.lt.u32.totalorder %s5917_s7, %s6918_s27 }
  0xa3   : > { %p5218_p4 = scmp.lt.u32.totalorder %s5216_s0, %s5211_s24  ;;  %p5220_p12 = scmp.lt.u32.totalorder %s5211_s24, %s5917_s7 }
  0xa4   : > { %p5214_p11 = pnand %p5212_p9, %p5863_p13 }
  0xa5   : > { %s5942_s22 = scalar_lea.hbm %s6920_s18, %s5806_s1  ;;  %p5219_p6 = por %p5218_p4, %p5217_p0 }
  0xa6   : > { %p5215_p10 = pneg %p5214_p11 }
  0xa7   : > { %p5221_p1 = por %p5220_p12, %p5219_p6 }
  0xa9   : > { %p5222_p7 = pnand %p5221_p1, %p5215_p10 }
  0xab   : > { %5225 = shalt.err (!%p5222_p7)
}
  0xac   : > { %s5226_s9 = scalar_lea.vmem %s854_s23, 16  ;;  %s5575_s12 = smov [#allocation11]  }
  0xad   : > { %p5227_p3 = scmp.ne.s32.totalorder %s854_s23, %s5226_s9  ;;  %s5231_s28 = sshll.u32 %s5575_s12, 4  ;;  %s5232_s28 = int_to_ptr.vmem [resolvable:$false] %s5231_s28 }
  0xae   : > { %s5233_s3 = scalar_lea.vmem %s5232_s28, 32  ;;  %p5234_p9 = scmp.lt.s32.totalorder %s854_s23, %s5232_s28 }
  0xaf   : > { %p5229_p2 = pnand %p5227_p3, %p5863_p13  ;;  %p5235_p11 = scmp.lt.s32.totalorder %s5233_s3, %s5226_s9 }
  0xb1   : > { %p5230_p5 = pneg %p5229_p2  ;;  %p5236_p8 = por %p5235_p11, %p5234_p9 }
  0xb3   : > { %p5237_p0 = pnand %p5236_p8, %p5230_p5 }
  0xb5   : > { %5240 = shalt.err (!%p5237_p0)
}
  0xb6   : > { %p6921_p4 = scmp.ne.s32.totalorder %s6910_s25, 0  ;;  %s863_s29 = scalar_lea.vmem [#allocation12], %s5803_s8 }
  0xb7   : > { %s870_s24 = sshll.u32 %s863_s29, 4  ;;  %s6922_s0 = sld [smem:[#allocation43_spill]]  ;;  %s871_s24 = int_to_ptr.vmem [resolvable:$true] %s870_s24 }
  0xb8   : > { %4858 = dma.hbm_to_vmem [thread:$0]  (!%p6921_p4), %s5917_s7, 16, %s854_s23, %s5857_s20  }
  0xb9   : > { %s5241_s30 = scalar_lea.hbm %s5942_s22, 16  ;;  %s5246_s28 = scalar_lea.hbm %s6920_s18, 32 }
  0xba   : > { %p5242_p8 = scmp.ne.s32.totalorder %s5942_s22, %s5241_s30  ;;  %p5247_p12 = scmp.lt.u32.totalorder %s5942_s22, %s6920_s18 }
  0xbb   : > { %p5248_p1 = scmp.lt.u32.totalorder %s5246_s28, %s5241_s30  ;;  %p5250_p3 = scmp.lt.u32.totalorder %s5241_s30, %s5942_s22 }
  0xbc   : > { %p5244_p10 = pnand %p5242_p8, %p5863_p13 }
  0xbd   : > { %s5967_s10 = scalar_lea.hbm %s6922_s0, %s5806_s1  ;;  %p5249_p7 = por %p5248_p1, %p5247_p12 }
  0xbe   : > { %p5245_p6 = pneg %p5244_p10 }
  0xbf   : > { %p5251_p2 = por %p5250_p3, %p5249_p7 }
  0xc1   : > { %p5252_p5 = pnand %p5251_p2, %p5245_p6 }
  0xc3   : > { %5255 = shalt.err (!%p5252_p5)
}
  0xc4   : > { %s5256_s7 = scalar_lea.vmem %s871_s24, 16  ;;  %s5576_s23 = smov [#allocation12]  }
  0xc5   : > { %p5257_p9 = scmp.ne.s32.totalorder %s871_s24, %s5256_s7  ;;  %s5261_s29 = sshll.u32 %s5576_s23, 4  ;;  %s5262_s29 = int_to_ptr.vmem [resolvable:$false] %s5261_s29 }
  0xc6   : > { %s5263_s19 = scalar_lea.vmem %s5262_s29, 32  ;;  %p5264_p8 = scmp.lt.s32.totalorder %s871_s24, %s5262_s29 }
  0xc7   : > { %p5259_p11 = pnand %p5257_p9, %p5863_p13  ;;  %p5265_p10 = scmp.lt.s32.totalorder %s5263_s19, %s5256_s7 }
  0xc9   : > { %p5260_p0 = pneg %p5259_p11  ;;  %p5266_p4 = por %p5265_p10, %p5264_p8 }
  0xcb   : > { %p5267_p1 = pnand %p5266_p4, %p5260_p0 }
  0xcd   : > { %5270 = shalt.err (!%p5267_p1)
}
  0xce   : > { %p6923_p12 = scmp.ne.s32.totalorder %s6910_s25, 0  ;;  %s880_s16 = scalar_lea.vmem [#allocation13], %s5803_s8 }
  0xcf   : > { %s887_s21 = sshll.u32 %s880_s16, 4  ;;  %s6924_s11 = sld [smem:[#allocation45_spill]]  ;;  %s888_s21 = int_to_ptr.vmem [resolvable:$true] %s887_s21 }
  0xd0   : > { %4861 = dma.hbm_to_vmem [thread:$0]  (!%p6923_p12), %s5942_s22, 16, %s871_s24, %s5857_s20  }
  0xd1   : > { %s5271_s28 = scalar_lea.hbm %s5967_s10, 16  ;;  %s5276_s23 = scalar_lea.hbm %s6922_s0, 32 }
  0xd2   : > { %p5272_p4 = scmp.ne.s32.totalorder %s5967_s10, %s5271_s28  ;;  %p5277_p3 = scmp.lt.u32.totalorder %s5967_s10, %s6922_s0 }
  0xd3   : > { %p5278_p2 = scmp.lt.u32.totalorder %s5276_s23, %s5271_s28  ;;  %p5280_p9 = scmp.lt.u32.totalorder %s5271_s28, %s5967_s10 }
  0xd4   : > { %p5274_p6 = pnand %p5272_p4, %p5863_p13 }
  0xd5   : > { %s5992_s12 = scalar_lea.hbm %s6924_s11, %s5806_s1  ;;  %p5279_p5 = por %p5278_p2, %p5277_p3 }
  0xd6   : > { %p5275_p7 = pneg %p5274_p6 }
  0xd7   : > { %p5281_p11 = por %p5280_p9, %p5279_p5 }
  0xd9   : > { %p5282_p0 = pnand %p5281_p11, %p5275_p7 }
  0xdb   : > { %5285 = shalt.err (!%p5282_p0)
}
  0xdc   : > { %s5286_s22 = scalar_lea.vmem %s888_s21, 16  ;;  %s5577_s24 = smov [#allocation13]  }
  0xdd   : > { %p5287_p8 = scmp.ne.s32.totalorder %s888_s21, %s5286_s22  ;;  %s5291_s16 = sshll.u32 %s5577_s24, 4  ;;  %s5292_s16 = int_to_ptr.vmem [resolvable:$false] %s5291_s16 }
  0xde   : > { %s5293_s30 = scalar_lea.vmem %s5292_s16, 32  ;;  %p5294_p4 = scmp.lt.s32.totalorder %s888_s21, %s5292_s16 }
  0xdf   : > { %p5289_p10 = pnand %p5287_p8, %p5863_p13  ;;  %p5295_p6 = scmp.lt.s32.totalorder %s5293_s30, %s5286_s22 }
  0xe1   : > { %p5290_p1 = pneg %p5289_p10  ;;  %p5296_p12 = por %p5295_p6, %p5294_p4 }
  0xe3   : > { %p5297_p2 = pnand %p5296_p12, %p5290_p1 }
  0xe5   : > { %5300 = shalt.err (!%p5297_p2)
}
  0xe6   : > { %p6925_p3 = scmp.ne.s32.totalorder %s6910_s25, 0  ;;  %s905_s9 = scalar_lea.vmem [#allocation14], %s5803_s8 }
  0xe7   : > { %s912_s28 = sshll.u32 %s905_s9, 4  ;;  %s6926_s13 = sld [smem:[#allocation47_spill]]  ;;  %s913_s28 = int_to_ptr.vmem [resolvable:$true] %s912_s28 }
  0xe8   : > { %4864 = dma.hbm_to_vmem [thread:$0]  (!%p6925_p3), %s5967_s10, 16, %s888_s21, %s5857_s20  }
  0xe9   : > { %s5301_s29 = scalar_lea.hbm %s5992_s12, 16  ;;  %s5306_s24 = scalar_lea.hbm %s6924_s11, 32 }
  0xea   : > { %p5302_p12 = scmp.ne.s32.totalorder %s5992_s12, %s5301_s29  ;;  %p5307_p9 = scmp.lt.u32.totalorder %s5992_s12, %s6924_s11 }
  0xeb   : > { %p5308_p11 = scmp.lt.u32.totalorder %s5306_s24, %s5301_s29  ;;  %p5310_p8 = scmp.lt.u32.totalorder %s5301_s29, %s5992_s12 }
  0xec   : > { %p5304_p7 = pnand %p5302_p12, %p5863_p13 }
  0xed   : > { %s6017_s23 = scalar_lea.hbm %s6926_s13, %s5806_s1  ;;  %p5309_p0 = por %p5308_p11, %p5307_p9 }
  0xee   : > { %p5305_p5 = pneg %p5304_p7 }
  0xef   : > { %p5311_p10 = por %p5310_p8, %p5309_p0 }
  0xf1   : > { %p5312_p1 = pnand %p5311_p10, %p5305_p5 }
  0xf3   : > { %5315 = shalt.err (!%p5312_p1)
}
  0xf4   : > { %s5316_s10 = scalar_lea.vmem %s913_s28, 16  ;;  %s5578_s21 = smov [#allocation14]  }
  0xf5   : > { %p5317_p4 = scmp.ne.s32.totalorder %s913_s28, %s5316_s10  ;;  %s5321_s9 = sshll.u32 %s5578_s21, 4  ;;  %s5322_s9 = int_to_ptr.vmem [resolvable:$false] %s5321_s9 }
  0xf6   : > { %s5323_s3 = scalar_lea.vmem %s5322_s9, 32  ;;  %p5324_p12 = scmp.lt.s32.totalorder %s913_s28, %s5322_s9 }
  0xf7   : > { %p5319_p6 = pnand %p5317_p4, %p5863_p13  ;;  %p5325_p7 = scmp.lt.s32.totalorder %s5323_s3, %s5316_s10 }
  0xf9   : > { %p5320_p2 = pneg %p5319_p6  ;;  %p5326_p3 = por %p5325_p7, %p5324_p12 }
  0xfb   : > { %p5327_p9 = pnand %p5326_p3, %p5320_p2 }
  0xfd   : > { %5330 = shalt.err (!%p5327_p9)
}
  0xfe   : > { %p6927_p11 = scmp.ne.s32.totalorder %s6910_s25, 0  ;;  %s930_s7 = scalar_lea.vmem [#allocation15], %s5803_s8 }
  0xff   : > { %s937_s29 = sshll.u32 %s930_s7, 4  ;;  %s6928_s14 = sld [smem:[#allocation48_spill]]  ;;  %s938_s29 = int_to_ptr.vmem [resolvable:$true] %s937_s29 }
 0x100   : > { %4867 = dma.hbm_to_vmem [thread:$0]  (!%p6927_p11), %s5992_s12, 16, %s913_s28, %s5857_s20  }
 0x101   : > { %s5331_s16 = scalar_lea.hbm %s6017_s23, 16  ;;  %s5336_s21 = scalar_lea.hbm %s6926_s13, 32 }
 0x102   : > { %p5332_p3 = scmp.ne.s32.totalorder %s6017_s23, %s5331_s16  ;;  %p5337_p8 = scmp.lt.u32.totalorder %s6017_s23, %s6926_s13 }
 0x103   : > { %p5338_p10 = scmp.lt.u32.totalorder %s5336_s21, %s5331_s16  ;;  %p5340_p4 = scmp.lt.u32.totalorder %s5331_s16, %s6017_s23 }
 0x104   : > { %p5334_p5 = pnand %p5332_p3, %p5863_p13 }
 0x105   : > { %s6042_s24 = scalar_lea.hbm %s6928_s14, %s5806_s1  ;;  %p5339_p1 = por %p5338_p10, %p5337_p8 }
 0x106   : > { %p5335_p0 = pneg %p5334_p5 }
 0x107   : > { %p5341_p6 = por %p5340_p4, %p5339_p1 }
 0x109   : > { %p5342_p2 = pnand %p5341_p6, %p5335_p0 }
 0x10b   : > { %5345 = shalt.err (!%p5342_p2)
}
 0x10c   : > { %s5346_s12 = scalar_lea.vmem %s938_s29, 16  ;;  %s5579_s28 = smov [#allocation15]  }
 0x10d   : > { %p5347_p12 = scmp.ne.s32.totalorder %s938_s29, %s5346_s12  ;;  %s5351_s7 = sshll.u32 %s5579_s28, 4  ;;  %s5352_s7 = int_to_ptr.vmem [resolvable:$false] %s5351_s7 }
 0x10e   : > { %s5353_s19 = scalar_lea.vmem %s5352_s7, 32  ;;  %p5354_p3 = scmp.lt.s32.totalorder %s938_s29, %s5352_s7 }
 0x10f   : > { %p5349_p7 = pnand %p5347_p12, %p5863_p13  ;;  %p5355_p5 = scmp.lt.s32.totalorder %s5353_s19, %s5346_s12 }
 0x111   : > { %p5350_p9 = pneg %p5349_p7  ;;  %p5356_p11 = por %p5355_p5, %p5354_p3 }
 0x113   : > { %p5357_p8 = pnand %p5356_p11, %p5350_p9 }
 0x115   : > { %5360 = shalt.err (!%p5357_p8)
}
 0x116   : > { %p6929_p10 = scmp.ne.s32.totalorder %s6910_s25, 0  ;;  %s947_s22 = scalar_lea.vmem [#allocation16], %s5803_s8 }
 0x117   : > { %s954_s16 = sshll.u32 %s947_s22, 4  ;;  %s6930_s15 = sld [smem:[#allocation49_spill]]  ;;  %s955_s16 = int_to_ptr.vmem [resolvable:$true] %s954_s16 }
 0x118   : > { %4870 = dma.hbm_to_vmem [thread:$0]  (!%p6929_p10), %s6017_s23, 16, %s938_s29, %s5857_s20  }
 0x119   : > { %s5361_s9 = scalar_lea.hbm %s6042_s24, 16  ;;  %s5366_s28 = scalar_lea.hbm %s6928_s14, 32 }
 0x11a   : > { %p5362_p11 = scmp.ne.s32.totalorder %s6042_s24, %s5361_s9  ;;  %p5367_p4 = scmp.lt.u32.totalorder %s6042_s24, %s6928_s14 }
 0x11b   : > { %p5368_p6 = scmp.lt.u32.totalorder %s5366_s28, %s5361_s9  ;;  %p5370_p12 = scmp.lt.u32.totalorder %s5361_s9, %s6042_s24 }
 0x11c   : > { %p5364_p0 = pnand %p5362_p11, %p5863_p13 }
 0x11d   : > { %s6067_s21 = scalar_lea.hbm %s6930_s15, %s5806_s1  ;;  %p5369_p2 = por %p5368_p6, %p5367_p4 }
 0x11e   : > { %p5365_p1 = pneg %p5364_p0 }
 0x11f   : > { %p5371_p7 = por %p5370_p12, %p5369_p2 }
 0x121   : > { %p5372_p9 = pnand %p5371_p7, %p5365_p1 }
 0x123   : > { %5375 = shalt.err (!%p5372_p9)
}
 0x124   : > { %s5376_s23 = scalar_lea.vmem %s955_s16, 16  ;;  %s5580_s29 = smov [#allocation16]  }
 0x125   : > { %p5377_p3 = scmp.ne.s32.totalorder %s955_s16, %s5376_s23  ;;  %s5381_s22 = sshll.u32 %s5580_s29, 4  ;;  %s5382_s22 = int_to_ptr.vmem [resolvable:$false] %s5381_s22 }
 0x126   : > { %s5383_s30 = scalar_lea.vmem %s5382_s22, 32  ;;  %p5384_p11 = scmp.lt.s32.totalorder %s955_s16, %s5382_s22 }
 0x127   : > { %p5379_p5 = pnand %p5377_p3, %p5863_p13  ;;  %p5385_p0 = scmp.lt.s32.totalorder %s5383_s30, %s5376_s23 }
 0x129   : > { %p5380_p8 = pneg %p5379_p5  ;;  %p5386_p10 = por %p5385_p0, %p5384_p11 }
 0x12b   : > { %p5387_p4 = pnand %p5386_p10, %p5380_p8 }
 0x12d   : > { %5390 = shalt.err (!%p5387_p4)
}
 0x12e   : > { %p6931_p6 = scmp.ne.s32.totalorder %s6910_s25, 0  ;;  %s964_s10 = scalar_lea.vmem [#allocation17], %s5803_s8 }
 0x12f   : > { %s971_s9 = sshll.u32 %s964_s10, 4  ;;  %s5581_s3 = smov [#allocation6]   ;;  %s6088_s9 = int_to_ptr.vmem [resolvable:$true] %s971_s9 }
 0x130   : > { %4873 = dma.hbm_to_vmem [thread:$0]  (!%p6931_p6), %s6042_s24, 16, %s955_s16, %s5857_s20  }
 0x131   : > { %s762_s12 = sshll.u32 %s5581_s3, 4  ;;  %s5391_s28 = scalar_lea.hbm %s6067_s21, 16  ;;  %s763_s12 = int_to_ptr.vmem [resolvable:$true] %s762_s12 }
 0x132   : > { %p5392_p10 = scmp.ne.s32.totalorder %s6067_s21, %s5391_s28  ;;  %s5396_s23 = scalar_lea.hbm %s6930_s15, 32 }
 0x133   : > { %p5397_p12 = scmp.lt.u32.totalorder %s6067_s21, %s6930_s15  ;;  %p5398_p7 = scmp.lt.u32.totalorder %s5396_s23, %s5391_s28 }
 0x134   : > { %p5394_p1 = pnand %p5392_p10, %p5863_p13  ;;  %p5400_p3 = scmp.lt.u32.totalorder %s5391_s28, %s6067_s21 }
 0x135   : > { %p5399_p9 = por %p5398_p7, %p5397_p12 }
 0x136   : > { %p5395_p2 = pneg %p5394_p1 }
 0x137   : > { %p5401_p5 = por %p5400_p3, %p5399_p9 }
 0x139   : > { %p5402_p8 = pnand %p5401_p5, %p5395_p2 }
 0x13b   : > { %5405 = shalt.err (!%p5402_p8)
}
 0x13c   : > { %s5406_s24 = scalar_lea.vmem %s6088_s9, 16  ;;  %s5582_s16 = smov [#allocation17]  }
 0x13d   : > { %p5407_p11 = scmp.ne.s32.totalorder %s6088_s9, %s5406_s24  ;;  %s5411_s30 = sshll.u32 %s5582_s16, 4  ;;  %s5412_s30 = int_to_ptr.vmem [resolvable:$false] %s5411_s30 }
 0x13e   : > { %s5413_s10 = scalar_lea.vmem %s5412_s30, 32  ;;  %p5414_p10 = scmp.lt.s32.totalorder %s6088_s9, %s5412_s30 }
 0x13f   : > { %p5409_p0 = pnand %p5407_p11, %p5863_p13  ;;  %p5415_p1 = scmp.lt.s32.totalorder %s5413_s10, %s5406_s24 }
 0x141   : > { %p5410_p4 = pneg %p5409_p0  ;;  %p5416_p12 = por %p5415_p1, %p5414_p10 }
 0x143   : > { %p5417_p7 = pnand %p5416_p12, %p5410_p4 }
 0x145   : > { %5420 = shalt.err (!%p5417_p7)
}
 0x146   : > { %4876 = dma.hbm_to_vmem [thread:$0]  (!%p6931_p6), %s6067_s21, 16, %s6088_s9, %s5857_s20  }
 0x147   : > { %s6932_s7 = sld [smem:[#allocation35_spill]]  ;;  %p6934_p9 = scmp.ne.s32.totalorder %s6906_s4, 0 }
 0x149   : > { %p6935_p3 = pneg %p6934_p9 }
 0x14d   : > { %s6933_s19 = smov %s6932_s7  ;;  %s5421_s23 = scalar_lea.hbm %s6932_s7, 256 }
 0x14e   : > { %p5422_p2 = scmp.ne.s32.totalorder %s6933_s19, %s5421_s23  ;;  %p5428_p11 = scmp.lt.u32.totalorder %s5421_s23, %s6933_s19 }
 0x150   : > { %p5424_p5 = pnand %p5422_p2, %p6935_p3 }
 0x152   : > { %p5425_p8 = pneg %p5424_p5 }
 0x154   : > { %p5430_p0 = pnand %p5428_p11, %p5425_p8 }
 0x156   : > { %5433 = shalt.err (!%p5430_p0)
}
 0x157   : > { %s5434_s21 = scalar_lea.vmem %s763_s12, 256  ;;  %p6936_p10 = pmov %p6935_p3 }
 0x158   : > { %p5435_p4 = scmp.ne.s32.totalorder %s763_s12, %s5434_s21  ;;  %p5442_p7 = scmp.lt.s32.totalorder %s763_s12, %s763_s12 }
 0x159   : > { %p5443_p6 = scmp.lt.s32.totalorder %s5434_s21, %s5434_s21 }
 0x15a   : > { %p5437_p1 = pnand %p5435_p4, %p6936_p10 }
 0x15b   : > { %p5444_p13 = por %p5443_p6, %p5442_p7 }
 0x15c   : > { %p5438_p12 = pneg %p5437_p1 }
 0x15e   : > { %p5445_p2 = pnand %p5444_p13, %p5438_p12 }
 0x160   : > { %5448 = shalt.err (!%p5445_p2)
}
 0x161   : > { %s6937_s9 = smov 8   ;;  %s6938_s30 = smov 128  }
 0x162   : > { %4845 = dma.hbm_to_vmem [thread:$0]  (!%p6934_p9), %s6933_s19, 256, %s763_s12, [#allocation7], %s6938_s30, %s6938_s30, %s6937_s9  }
 0x163   : > { %s6939_s17 = sld [smem:[#allocation51_spill]]  ;;  %s989_s4 = scalar_lea.vmem [#allocation18], %s5803_s8 }
 0x164   : > { %s996_s29 = sshll.u32 %s989_s4, 4  ;;  %p6940_p6 = scmp.ne.s32.totalorder %s6914_s6, 0  ;;  %s997_s29 = int_to_ptr.vmem [resolvable:$true] %s996_s29 }
 0x169   : > { %s6139_s23 = scalar_lea.hbm %s6939_s17, %s5806_s1  ;;  %s5454_s12 = scalar_lea.hbm %s6939_s17, 32 }
 0x16a   : > { %s5449_s22 = scalar_lea.hbm %s6139_s23, 16  ;;  %p5455_p9 = scmp.lt.u32.totalorder %s6139_s23, %s6939_s17 }
 0x16b   : > { %p5450_p13 = scmp.ne.s32.totalorder %s6139_s23, %s5449_s22  ;;  %p5456_p8 = scmp.lt.u32.totalorder %s5454_s12, %s5449_s22 }
 0x16c   : > { %p5458_p0 = scmp.lt.u32.totalorder %s5449_s22, %s6139_s23 }
 0x16d   : > { %p5452_p3 = pnand %p5450_p13, %p6940_p6  ;;  %p5457_p11 = por %p5456_p8, %p5455_p9 }
 0x16f   : > { %p5453_p5 = pneg %p5452_p3  ;;  %p5459_p4 = por %p5458_p0, %p5457_p11 }
 0x171   : > { %p5460_p10 = pnand %p5459_p4, %p5453_p5 }
 0x173   : > { %5463 = shalt.err (!%p5460_p10)
}
 0x174   : > { %s5464_s1 = scalar_lea.vmem %s997_s29, 16  ;;  %s5583_s8 = smov [#allocation18]  }
 0x175   : > { %p5465_p1 = scmp.ne.s32.totalorder %s997_s29, %s5464_s1  ;;  %s5469_s30 = sshll.u32 %s5583_s8, 4  ;;  %s5470_s30 = int_to_ptr.vmem [resolvable:$false] %s5469_s30 }
 0x176   : > { %s5471_s10 = scalar_lea.vmem %s5470_s30, 32  ;;  %p5472_p2 = scmp.lt.s32.totalorder %s997_s29, %s5470_s30 }
 0x177   : > { %p5467_p12 = pnand %p5465_p1, %p6940_p6  ;;  %p5473_p13 = scmp.lt.s32.totalorder %s5471_s10, %s5464_s1 }
 0x179   : > { %p5468_p7 = pneg %p5467_p12  ;;  %p5474_p3 = por %p5473_p13, %p5472_p2 }
 0x17b   : > { %p5475_p8 = pnand %p5474_p3, %p5468_p7 }
 0x17d   : > { %5478 = shalt.err (!%p5475_p8)
}
 0x17e   : > { %p6941_p9 = scmp.ne.s32.totalorder %s6910_s25, 0  ;;  %p6942_p5 = scmp.ne.s32.totalorder %s6905_s5, 0 }
 0x180   : > { %4879 = dma.hbm_to_vmem [thread:$0]  (!%p6941_p9), %s6139_s23, 16, %s997_s29, %s5857_s20  }
 0x181   : > { %1051 = sbr.rel (%p6942_p5) target bundleno = 7580 (0x1d9c), region = 120 }
 0x188   : > { %p6943_p6 = scmp.eq.s32.totalorder %s5761_s26, 0 }
 0x18a   : > { %5530 = dma.done.wait (%p6943_p6), [#allocation4], 256   ;;  %p6944_p11 = pmov %p6943_p6 }
 0x18b   : > { %p6945_p0 = pmov %p6943_p6 }
 0x18c   : > { %5532 = vsyncadd (%p6944_p11), [#allocation4], 4294967040 }
 0x18d   : > { %5534 = dma.done.wait (%p6945_p0), [#allocation7], 256   ;;  %p6946_p4 = pmov %p6945_p0 }
 0x18e   : > { %s6947_s25 = sld [smem:[#allocation31_spill]]  ;;  %s1061_s6 = sand.u32 1, %s5761_s26  }
 0x18f   : > { %5536 = vsyncadd (%p6946_p4), [#allocation7], 4294967040  ;;  %s6172_s20 = sand.u32 1, %s5551_s2   ;;  %s1062_s5 = scalar_lea.sflag [#allocation4], %s1061_s6 }
 0x194   : > { %p6948_p10 = scmp.ne.s32.totalorder %s6947_s25, 0 }
 0x196   : > { %5538 = dma.done.wait (%p6948_p10), %s1062_s5, 176  }
 0x197   : > { %5540 = vsyncadd (%p6948_p10), %s1062_s5, 4294967120  ;;  %s6949_s28 = sld [smem:[#allocation26_spill]]  ;;  %s6950_s24 = sld [smem:[#allocation38_spill]] }
 0x198   : > { %s6951_s9 = sld [smem:[#allocation40_spill]]  ;;  %s6952_s10 = sld [smem:[#allocation44_spill]] }
 0x199   : > { %s6953_s3 = sld [smem:[#allocation46_spill]]  ;;  %s6954_s0 = sld [smem:[#allocation50_spill]] }
 0x19a   : > { %s6955_s11 = sld [smem:[#allocation52_spill]]  ;;  %s6960_s21 = sld [smem:[#allocation56_spill]] }
 0x19b   : > { %s6961_s27 = sld [smem:[#allocation57_spill]]  ;;  %s6962_s13 = sld [smem:[#allocation58_spill]] }
 0x19c   : > { %s1072_s26 = scalar_lea.vmem [#allocation9], %s6172_s20  ;;  %s1080_s5 = scalar_lea.vmem [#allocation10], %s6172_s20 }
 0x19d   : > { %p1297_p1 = scmp.lt.s32.totalorder %s6949_s28, 1  ;;  %s1120_s22 = scalar_lea.vmem [#allocation15], %s6172_s20 }
 0x19e   : > { %s1144_s15 = scalar_lea.vmem [#allocation18], %s6172_s20  ;;  %p4368_p12 = scmp.ne.s32.totalorder %s6949_s28, 0 }
 0x19f   : > { %s6181_s7 = scalar_select %p1297_p1, %s6949_s28, 1 }
 0x1a0   : > { %v1353_v0 = vld [vmem:[#allocation3] sm:$0xff] (!%p4368_p12)  ;;  %vm1355_vm0 = vcmask (!%p4368_p12), 261120   ;;  %v1354_v1 = vld [vmem:[#allocation3 + $0x8] sm:$0xff] (!%p4368_p12) }
 0x1a1   : > { %s4447_s23 = sshll.u32 %s6181_s7, 4  ;;  %s4450_s4 = sshll.u32 %s6181_s7, 6  ;;  %1356 = vst.msk [vmem:[#allocation2] sm:$0xff] (!%p4368_p12), %vm1355_vm0, %v1353_v0  ;;  %1357 = vst.msk [vmem:[#allocation2 + $0x8] sm:$0xff] (!%p4368_p12), %vm1355_vm0, %v1354_v1 }
 0x1a2   : > { %s6188_s16 = scalar_lea.vmem %s6950_s24, %s4447_s23  ;;  %s6193_s1 = scalar_lea.vmem %s6951_s9, %s4447_s23 }
 0x1a3   : > { %s6198_s25 = scalar_lea.vmem %s6952_s10, %s4447_s23  ;;  %s6203_s29 = scalar_lea.vmem %s6953_s3, %s4450_s4 }
 0x1a4   : > { %s6208_s12 = scalar_lea.vmem %s6954_s0, %s4447_s23  ;;  %s6213_s8 = scalar_lea.vmem %s6955_s11, %s4447_s23 }
 0x1a5   : > { %s6957_s4 = sld [smem:[#allocation54_spill]]  ;;  %s1340_s9 = scalar_lea.vmem %s6960_s21, %s6181_s7 }
 0x1a6   : > { %s1343_s2 = scalar_lea.vmem %s6961_s27, %s6181_s7  ;;  %s1346_s6 = scalar_lea.vmem %s6962_s13, %s6181_s7 }
 0x1a7   : > { %s1096_s3 = scalar_lea.vmem [#allocation12], %s6172_s20  ;;  %s1128_s24 = scalar_lea.vmem [#allocation16], %s6172_s20 }
 0x1a8   : > { %s1136_s0 = scalar_lea.vmem [#allocation17], %s6172_s20  ;;  %1352 = sbr.rel (%p4368_p12) target bundleno = 431 (0x1af), region = 176 }
 0x1ab   : > { %s6222_s14 = scalar_lea.vmem %s6957_s4, %s4447_s23  ;;  %s1088_s23 = scalar_lea.vmem [#allocation11], %s6172_s20 }
 0x1ac   : > { %6958 = sst [smem:[#allocation33_spill]] %s6222_s14  ;;  %s1104_s4 = scalar_lea.vmem [#allocation13], %s6172_s20 }
 0x1ad   : > { %s1112_s14 = scalar_lea.vmem [#allocation14], %s6172_s20 }
 0x1af PF: > { %v6251_v2 = vld [vmem:[#allocation2] sm:$0xff]  ;;  %vm1362_vm1 = vcmask 261120   ;;  %v6253_v3 = vld [vmem:[#allocation2 + $0x8] sm:$0xff]  ;;  %v5584_v11 = vmov 0.0   ;;  %vm5585_vm2 = vmmov 0   ;;  %s6963_s17 = scalar_lea.vmem [#allocation8], %s6172_s20 }
 0x1b0   : > { %v1363_v4 = vsel %vm1362_vm1, %v6251_v2, 0.0  ;;  %v1372_v5 = vmul.f32 %v6251_v2, %v6251_v2  ;;  %v1366_v6 = vsel %vm1362_vm1, %v6253_v3, 0.0  ;;  %v1373_v7 = vmul.f32 %v6253_v3, %v6253_v3  ;;  %v4987_v10 = vld [vmem:[%s6188_s16] sm:$0xff]   ;;  %4545 = vmatprep.subr.bf16.mxu0 %v5584_v11  ;;  %4549 = vmatprep.mubr.msk.bf16.mxu0 %vm5585_vm2, %v5584_v11  ;;  %v4988_v12 = vld [vmem:[%s6188_s16 + $0x8] sm:$0xff]   ;;  %s5587_s27 = smov 64   ;;  %s5588_s18 = smov 88  }
 0x1b1   : > { %1364 = vadd.xlane.f32.xlu0 %v1363_v4  ;;  %4546 = vmatpush3.bf16.msra.mxu0 %v4987_v10  ;;  %v4369_v30 = vld [vmem:[%s6963_s17] ss:$0 sm:$0xff]  ;;  %vm1489_vm3 = vcmask 64512   ;;  %vm1614_vm4 = vcmask 1043456   ;;  %s5589_s19 = smov 120   ;;  %s5590_s28 = smov 56  }
 0x1b2   : > { %v1374_v8 = vsel %vm1362_vm1, %v1372_v5, 0.0  ;;  %v1377_v9 = vsel %vm1362_vm1, %v1373_v7, 0.0  ;;  %4553 = vmatprep.subr.bf16.mxu1 %v5584_v11  ;;  %4547 = vmatprep.subr.bf16.mxu0 %v5584_v11  ;;  %v4370_v35 = vld [vmem:[%s1072_s26] ss:$0 sm:$0xff]  ;;  %s5586_s26 = smov 96   ;;  %s5591_s16 = smov 80  }
 0x1b3   : > { %1375 = vadd.xlane.f32.xlu1 %v1374_v8  ;;  %4555 = vmatprep.mubr.msk.bf16.mxu1 %vm5585_vm2, %v5584_v11  ;;  %v4371_v40 = vld [vmem:[%s1080_s5] ss:$0 sm:$0xff]  ;;  %s5592_s21 = smov 112   ;;  %s5593_s11 = smov 48   ;;  %vm2394_vm5 = vcmask 130048   ;;  %vm2397_vm6 = vcmask 195584  }
 0x1b4   : > { %s5594_s30 = smov 72   ;;  %s5595_s10 = smov 104  }
 0x1b5   : > { %1367 = vadd.xlane.f32.xlu0 %v1366_v6  ;;  %4548 = vmatpush3.bf16.msra.mxu0 %v4988_v12  ;;  %s5596_s13 = smov 40   ;;  %s5597_s5 = smov 8  }
 0x1b6   : > { %4559 = vmatprep.subr.bf16.mxu0 %v5584_v11  ;;  %s5598_s17 = smov 16  }
 0x1b7   : > { %1378 = vadd.xlane.f32.xlu1 %v1377_v9 }
 0x23e   : > { %v1365_v13 = vpop.xlane.xlu0 %1364 }
 0x23f   : > { %v1370_v14 = vmul.f32 0.03125, %v1365_v13 }
 0x240   : > { %v1376_v15 = vpop.xlane.xlu1 %1375 }
 0x241   : > { %v1382_v16 = vmul.f32 %v1370_v14, %v1370_v14  ;;  %v1380_v17 = vmul.f32 0.03125, %v1376_v15  ;;  %v1386_v27 = vsub.f32 %v6251_v2, %v1370_v14 }
 0x242   : > { %v1368_v18 = vpop.xlane.xlu0 %1367 }
 0x243   : > { %v1384_v19 = vsub.f32 %v1380_v17, %v1382_v16  ;;  %v1371_v20 = vmul.f32 0.03125, %v1368_v18 }
 0x244   : > { %v1379_v21 = vpop.xlane.xlu1 %1378 }
 0x245   : > { %v1388_v22 = vadd.f32 1e-05, %v1384_v19  ;;  %v1383_v23 = vmul.f32 %v1371_v20, %v1371_v20  ;;  %v1381_v24 = vmul.f32 0.03125, %v1379_v21  ;;  %v1387_v31 = vsub.f32 %v6253_v3, %v1371_v20 }
 0x247   : > { %5007 = vrsqrt.f32 %v1388_v22  ;;  %v1385_v25 = vsub.f32 %v1381_v24, %v1383_v23 }
 0x249   : > { %v1389_v26 = vadd.f32 1e-05, %v1385_v25 }
 0x24b   : > { %5009 = vrsqrt.f32 %v1389_v26 }
 0x251   : > { %v5008_v28 = vpop.eup %5007 }
 0x252   : > { %v1392_v29 = vmul.f32 %v5008_v28, %v1386_v27 }
 0x254   : > { %v1401_v34 = vmul.f32 %v4369_v30, %v1392_v29 }
 0x255   : > { %v5010_v32 = vpop.eup %5009 }
 0x256   : > { %v1393_v33 = vmul.f32 %v5010_v32, %v1387_v31  ;;  %v1410_v37 = vadd.f32 %v4370_v35, %v1401_v34 }
 0x258   : > { %v1402_v36 = vmul.f32 %v4369_v30, %v1393_v33 }
 0x25a   : > { %v1411_v38 = vadd.f32 %v4370_v35, %v1402_v36 }
 0x25c   : > { %v1412_v39 = vpack.c.bf16 %v1411_v38, %v1410_v37 }
 0x25e   : > { %4550 = vmatmul.mubr.msk.bf16.vlgmr.msra.gmra.mrb[0].mxu0 %vm1362_vm1, %v1412_v39 }
 0x25f   : > { %4561 = vmatprep.mubr.msk.bf16.mxu0 %vm5585_vm2, %v5584_v11 }
 0x331   : > { %v1473_v41 = vpop.f32.mrb[0].mxu0 }
 0x332   : > { %v1474_v42 = vadd.f32 %v4371_v40, %v1473_v41  ;;  %v4551_v43 = vpop.f32.mrb[1].mxu0 }
 0x333   : > { %v1476_v44 = vpop.f32.mrb[2].mxu0 }
 0x334   : > { %v6286_v45 = vpack.c.bf16 %v1474_v42, %v1474_v42  ;;  %v1477_v46 = vadd.f32 %v4371_v40, %v1476_v44  ;;  %v4552_v47 = vpop.f32.mrb[3].mxu0  ;;  %v1480_v52 = vmul.f32 0.35355338, %v1474_v42 }
 0x336   : > { %v6288_v48 = vpack.c.bf16 %v1477_v46, %v1477_v46  ;;  %1487 = vrot.lane.b32.xlu0 %v6286_v45, %s5586_s26  ;;  %v1481_v54 = vmul.f32 0.35355338, %v1477_v46  ;;  %v6298_v55 = vpack.c.bf16 %v1480_v52, %v1480_v52 }
 0x338   : > { %1537 = vrot.lane.b32.xlu1 %v6288_v48, %s5586_s26  ;;  %v6300_v56 = vpack.c.bf16 %v1481_v54, %v1481_v54 }
 0x3a8   : > { %v1488_v49 = vpop.permute.xlu0 %1487 }
 0x3a9   : > { %v1494_v50 = vsel %vm1489_vm3, %v1488_v49, 0 }
 0x3aa   : > { %4554 = vmatpush3.bf16.xpose.msra.mxu1 %v1494_v50  ;;  %v1538_v51 = vpop.permute.xlu1 %1537 }
 0x3ab   : > { %v1543_v53 = vsel %vm1489_vm3, %v1538_v51, 0  ;;  %4565 = vmatprep.subr.bf16.mxu1 %v5584_v11 }
 0x3ac   : > { %4560 = vmatpush3.bf16.xpose.msra.mxu0 %v1543_v53 }
 0x3ad   : > { %4571 = vmatprep.subr.bf16.mxu0 %v5584_v11 }
 0x3b1   : > { %4556 = vmatmul.mubr.msk.bf16.vlgmr.msra.gmra.mrb[0].mxu1 %vm1489_vm3, %v6298_v55 }
 0x3b2   : > { %4567 = vmatprep.mubr.msk.bf16.mxu1 %vm5585_vm2, %v5584_v11 }
 0x3b3   : > { %4562 = vmatmul.mubr.msk.bf16.vlgmr.msra.gmra.mrb[4].mxu0 %vm1489_vm3, %v6300_v56 }
 0x3b4   : > { %4573 = vmatprep.mubr.msk.bf16.mxu0 %vm5585_vm2, %v5584_v11 }
 0x484   : > { %v1530_v57 = vpop.f32.mrb[0].mxu1 }
 0x485   : > { %v4557_v58 = vpop.f32.mrb[1].mxu1  ;;  %v1585_v59 = vsel %vm1489_vm3, %v1530_v57, -inf }
 0x486   : > { %v1533_v60 = vpop.f32.mrb[2].mxu1  ;;  %1586 = vmax.xlane.f32.xlu1 %v1585_v59  ;;  %v1579_v61 = vpop.f32.mrb[4].mxu0 }
 0x487   : > { %v4558_v62 = vpop.f32.mrb[3].mxu1  ;;  %v4563_v63 = vpop.f32.mrb[5].mxu0  ;;  %v1588_v0 = vsel %vm1489_vm3, %v1579_v61, -inf }
 0x488   : > { %1589 = vmax.xlane.f32.xlu0 %v1588_v0  ;;  %v1582_v1 = vpop.f32.mrb[6].mxu0 }
 0x489   : > { %v4564_v4 = vpop.f32.mrb[7].mxu0 }
 0x497   : > { %1658 = vrot.lane.b32.xlu1 %v6288_v48, %s5587_s27 }
 0x49b   : > { %1709 = vrot.lane.b32.xlu1 %v6286_v45, %s5588_s18 }
 0x513   : > { %v1587_v5 = vpop.xlane.xlu1 %1586 }
 0x514   : > { %v1591_v6 = vsub.f32 %v1530_v57, %v1587_v5 }
 0x515   : > { %v1590_v7 = vpop.xlane.xlu0 %1589 }
 0x516   : > { %v1593_v8 = vmul.f32 1.442695, %v1591_v6  ;;  %v1592_v9 = vsub.f32 %v1579_v61, %v1590_v7 }
 0x517   : > { %v1659_v10 = vpop.permute.xlu1 %1658 }
 0x518   : > { %5011 = vpow2.f32 %v1593_v8  ;;  %v1595_v12 = vmul.f32 1.442695, %v1592_v9  ;;  %v1664_v13 = vsel %vm1614_vm4, %v1659_v10, 0 }
 0x519   : > { %4572 = vmatpush3.bf16.msra.mxu0 %v1664_v13 }
 0x51a   : > { %5013 = vpow2.f32 %v1595_v12  ;;  %4583 = vmatprep.subr.bf16.mxu0 %v5584_v11 }
 0x51b   : > { %v1710_v18 = vpop.permute.xlu1 %1709 }
 0x51c   : > { %v1715_v29 = vsel %vm1489_vm3, %v1710_v18, 0 }
 0x522   : > { %v5012_v14 = vpop.eup %5011 }
 0x523   : > { %v1597_v15 = vsel %vm1489_vm3, %v5012_v14, 0.0 }
 0x524   : > { %v5014_v16 = vpop.eup %5013  ;;  %1598 = vadd.xlane.f32.xlu0 %v1597_v15 }
 0x525   : > { %v1600_v17 = vsel %vm1489_vm3, %v5014_v16, 0.0 }
 0x526   : > { %1601 = vadd.xlane.f32.xlu1 %v1600_v17 }
 0x537   : > { %1760 = vrot.lane.b32.xlu1 %v6288_v48, %s5588_s18 }
 0x53a   : > { %1609 = vrot.lane.b32.xlu0 %v6286_v45, %s5587_s27  ;;  %s5599_s27 = smov 24  }
 0x53b   : > { %1758 = vrot.lane.b32.xlu1 %v6300_v56, %s5589_s19 }
 0x53e   : > { %1707 = vrot.lane.b32.xlu0 %v6298_v55, %s5589_s19 }
 0x5b1   : > { %v1599_v19 = vpop.xlane.xlu0 %1598 }
 0x5b2   : > { %5015 = vrcp.f32 %v1599_v19 }
 0x5b3   : > { %v1602_v20 = vpop.xlane.xlu1 %1601 }
 0x5b4   : > { %5017 = vrcp.f32 %v1602_v20 }
 0x5b5   : > { %v1610_v21 = vpop.permute.xlu0 %1609 }
 0x5b6   : > { %v1616_v22 = vsel %vm1614_vm4, %v1610_v21, 0 }
 0x5b7   : > { %4566 = vmatpush3.bf16.msra.mxu1 %v1616_v22  ;;  %v1761_v28 = vpop.permute.xlu1 %1760 }
 0x5b8   : > { %4577 = vmatprep.subr.bf16.mxu1 %v5584_v11  ;;  %v1766_v31 = vsel %vm1489_vm3, %v1761_v28, 0 }
 0x5b9   : > { %v1708_v32 = vpop.permute.xlu0 %1707 }
 0x5bb   : > { %v1759_v33 = vpop.permute.xlu1 %1758 }
 0x5bc   : > { %v5016_v23 = vpop.eup %5015 }
 0x5bd   : > { %v1604_v24 = vmul.f32 %v5016_v23, %v5012_v14 }
 0x5be   : > { %v5018_v25 = vpop.eup %5017 }
 0x5bf   : > { %v1606_v26 = vmul.f32 %v5018_v25, %v5014_v16  ;;  %v1607_v27 = vpack.c.bf16 %v1604_v24, %v1604_v24 }
 0x5c1   : > { %4568 = vmatmul.mubr.msk.bf16.vlgmr.msra.gmra.mrb[4].mxu1 %vm1489_vm3, %v1607_v27  ;;  %v1608_v30 = vpack.c.bf16 %v1606_v26, %v1606_v26 }
 0x5c2   : > { %4578 = vmatpush3.bf16.xpose.msra.mxu1 %v1715_v29  ;;  %4579 = vmatprep.mubr.msk.bf16.mxu1 %vm5585_vm2, %v5584_v11 }
 0x5c3   : > { %4574 = vmatmul.mubr.msk.bf16.vlgmr.msra.gmra.mrb[8].mxu0 %vm1489_vm3, %v1608_v30  ;;  %4589 = vmatprep.subr.bf16.mxu1 %v5584_v11 }
 0x5c4   : > { %4584 = vmatpush3.bf16.xpose.msra.mxu0 %v1766_v31  ;;  %4585 = vmatprep.mubr.msk.bf16.mxu0 %vm5585_vm2, %v5584_v11 }
 0x5c5   : > { %4595 = vmatprep.subr.bf16.mxu0 %v5584_v11 }
 0x5c9   : > { %4580 = vmatmul.mubr.msk.bf16.vlgmr.msra.gmra.mrb[8].mxu1 %vm1489_vm3, %v1708_v32 }
 0x5ca   : > { %4591 = vmatprep.mubr.msk.bf16.mxu1 %vm5585_vm2, %v5584_v11 }
 0x5cb   : > { %4586 = vmatmul.mubr.msk.bf16.vlgmr.msra.gmra.mrb[12].mxu0 %vm1489_vm3, %v1759_v33 }
 0x5cc   : > { %4597 = vmatprep.mubr.msk.bf16.mxu0 %vm5585_vm2, %v5584_v11 }
 0x694   : > { %v6344_v34 = vpop.f32.mrb[4].mxu1 }
 0x695   : > { %v4569_v35 = vpop.f32.mrb[5].mxu1 }
 0x696   : > { %v1655_v36 = vpop.f32.mrb[6].mxu1  ;;  %v6346_v37 = vpop.f32.mrb[8].mxu0 }
 0x697   : > { %v4570_v38 = vpop.f32.mrb[7].mxu1  ;;  %v4575_v39 = vpop.f32.mrb[9].mxu0 }
 0x698   : > { %v1703_v40 = vpop.f32.mrb[10].mxu0 }
 0x699   : > { %v4576_v41 = vpop.f32.mrb[11].mxu0 }
 0x69c   : > { %v1751_v42 = vpop.f32.mrb[8].mxu1 }
 0x69d   : > { %v4581_v43 = vpop.f32.mrb[9].mxu1  ;;  %v1808_v44 = vsel %vm1489_vm3, %v1751_v42, -inf }
 0x69e   : > { %1809 = vmax.xlane.f32.xlu0 %v1808_v44  ;;  %v1754_v46 = vpop.f32.mrb[10].mxu1  ;;  %v1802_v47 = vpop.f32.mrb[12].mxu0 }
 0x69f   : > { %v4582_v49 = vpop.f32.mrb[11].mxu1  ;;  %v4587_v50 = vpop.f32.mrb[13].mxu0  ;;  %v1811_v51 = vsel %vm1489_vm3, %v1802_v47, -inf }
 0x6a0   : > { %1812 = vmax.xlane.f32.xlu1 %v1811_v51  ;;  %v1805_v52 = vpop.f32.mrb[14].mxu0 }
 0x6a1   : > { %v4588_v53 = vpop.f32.mrb[15].mxu0 }
 0x6b1   : > { %1880 = vrot.lane.b32.xlu1 %v6288_v48, %s5590_s28 }
 0x6b5   : > { %1930 = vrot.lane.b32.xlu1 %v6286_v45, %s5591_s16 }
 0x6b9   : > { %1980 = vrot.lane.b32.xlu1 %v6288_v48, %s5591_s16 }
 0x6bd   : > { %1978 = vrot.lane.b32.xlu1 %v6300_v56, %s5592_s21 }
 0x72b   : > { %v1810_v54 = vpop.xlane.xlu0 %1809 }
 0x72c   : > { %v1814_v57 = vsub.f32 %v1751_v42, %v1810_v54 }
 0x72d   : > { %v1813_v58 = vpop.xlane.xlu1 %1812 }
 0x72e   : > { %v1816_v59 = vmul.f32 1.442695, %v1814_v57  ;;  %v1815_v60 = vsub.f32 %v1802_v47, %v1813_v58 }
 0x730   : > { %5019 = vpow2.f32 %v1816_v59  ;;  %v1818_v61 = vmul.f32 1.442695, %v1815_v60 }
 0x731   : > { %v1881_v62 = vpop.permute.xlu1 %1880 }
 0x732   : > { %5021 = vpow2.f32 %v1818_v61  ;;  %v1886_v63 = vsel %vm1614_vm4, %v1881_v62, 0 }
 0x733   : > { %4596 = vmatpush3.bf16.msra.mxu0 %v1886_v63 }
 0x734   : > { %4607 = vmatprep.subr.bf16.mxu0 %v5584_v11 }
 0x735   : > { %v1931_v12 = vpop.permute.xlu1 %1930 }
 0x736   : > { %v1936_v18 = vsel %vm1489_vm3, %v1931_v12, 0 }
 0x739   : > { %v1981_v17 = vpop.permute.xlu1 %1980 }
 0x73a   : > { %v5020_v0 = vpop.eup %5019  ;;  %v1986_v20 = vsel %vm1489_vm3, %v1981_v17, 0 }
 0x73b   : > { %v1820_v1 = vsel %vm1489_vm3, %v5020_v0, 0.0 }
 0x73c   : > { %v5022_v4 = vpop.eup %5021  ;;  %1821 = vadd.xlane.f32.xlu0 %v1820_v1 }
 0x73d   : > { %v1823_v5 = vsel %vm1489_vm3, %v5022_v4, 0.0  ;;  %v1979_v22 = vpop.permute.xlu1 %1978 }
 0x740   : > { %1824 = vadd.xlane.f32.xlu0 %v1823_v5 }
 0x756   : > { %1832 = vrot.lane.b32.xlu0 %v6286_v45, %s5590_s28  ;;  %s6972_s28 = sld [smem:[#allocation26_spill]] }
 0x75a   : > { %1928 = vrot.lane.b32.xlu0 %v6298_v55, %s5592_s21 }
 0x75c   : > { %p4442_p7 = scmp.ne.s32.totalorder %s6972_s28, 1 }
 0x7c9   : > { %v1822_v6 = vpop.xlane.xlu0 %1821 }
 0x7ca   : > { %5023 = vrcp.f32 %v1822_v6 }
 0x7cd   : > { %v1825_v7 = vpop.xlane.xlu0 %1824 }
 0x7ce   : > { %5025 = vrcp.f32 %v1825_v7 }
 0x7d1   : > { %v1833_v8 = vpop.permute.xlu0 %1832 }
 0x7d2   : > { %v1838_v9 = vsel %vm1614_vm4, %v1833_v8, 0 }
 0x7d3   : > { %4590 = vmatpush3.bf16.msra.mxu1 %v1838_v9 }
 0x7d4   : > { %v5024_v10 = vpop.eup %5023  ;;  %4601 = vmatprep.subr.bf16.mxu1 %v5584_v11 }
 0x7d5   : > { %v1827_v13 = vmul.f32 %v5024_v10, %v5020_v0  ;;  %v1929_v21 = vpop.permute.xlu0 %1928 }
 0x7d7   : > { %v1830_v14 = vpack.c.bf16 %v1827_v13, %v1827_v13 }
 0x7d8   : > { %v5026_v15 = vpop.eup %5025 }
 0x7d9   : > { %v1829_v16 = vmul.f32 %v5026_v15, %v5022_v4  ;;  %4592 = vmatmul.mubr.msk.bf16.vlgmr.msra.gmra.mrb[12].mxu1 %vm1489_vm3, %v1830_v14 }
 0x7da   : > { %4603 = vmatprep.mubr.msk.bf16.mxu1 %vm5585_vm2, %v5584_v11 }
 0x7db   : > { %v1831_v19 = vpack.c.bf16 %v1829_v16, %v1829_v16 }
 0x7dc   : > { %4602 = vmatpush3.bf16.xpose.msra.mxu1 %v1936_v18 }
 0x7dd   : > { %4598 = vmatmul.mubr.msk.bf16.vlgmr.msra.gmra.mrb[16].mxu0 %vm1489_vm3, %v1831_v19  ;;  %4613 = vmatprep.subr.bf16.mxu1 %v5584_v11 }
 0x7de   : > { %4608 = vmatpush3.bf16.xpose.msra.mxu0 %v1986_v20  ;;  %4609 = vmatprep.mubr.msk.bf16.mxu0 %vm5585_vm2, %v5584_v11 }
 0x7df   : > { %4619 = vmatprep.subr.bf16.mxu0 %v5584_v11 }
 0x7e3   : > { %4604 = vmatmul.mubr.msk.bf16.vlgmr.msra.gmra.mrb[16].mxu1 %vm1489_vm3, %v1929_v21 }
 0x7e4   : > { %4615 = vmatprep.mubr.msk.bf16.mxu1 %vm5585_vm2, %v5584_v11 }
 0x7e5   : > { %4610 = vmatmul.mubr.msk.bf16.vlgmr.msra.gmra.mrb[20].mxu0 %vm1489_vm3, %v1979_v22 }
 0x7e6   : > { %4621 = vmatprep.mubr.msk.bf16.mxu0 %vm5585_vm2, %v5584_v11 }
 0x8ac   : > { %v6382_v23 = vpop.f32.mrb[12].mxu1 }
 0x8ad   : > { %v4593_v24 = vpop.f32.mrb[13].mxu1 }
 0x8ae   : > { %v1877_v25 = vpop.f32.mrb[14].mxu1 }
 0x8af   : > { %v4594_v26 = vpop.f32.mrb[15].mxu1 }
 0x8b0   : > { %v6384_v27 = vpop.f32.mrb[16].mxu0 }
 0x8b1   : > { %v4957_v28 = vpack.i.bf16 %v6384_v27, %v6382_v23  ;;  %v4599_v29 = vpop.f32.mrb[17].mxu0 }
 0x8b2   : > { %v1925_v30 = vpop.f32.mrb[18].mxu0 }
 0x8b3   : > { %v4600_v31 = vpop.f32.mrb[19].mxu0 }
 0x8b6   : > { %v1972_v32 = vpop.f32.mrb[16].mxu1 }
 0x8b7   : > { %v4605_v33 = vpop.f32.mrb[17].mxu1  ;;  %v2028_v35 = vsel %vm1489_vm3, %v1972_v32, -inf }
 0x8b8   : > { %2029 = vmax.xlane.f32.xlu0 %v2028_v35  ;;  %v1975_v36 = vpop.f32.mrb[18].mxu1  ;;  %v2022_v38 = vpop.f32.mrb[20].mxu0 }
 0x8b9   : > { %v4606_v39 = vpop.f32.mrb[19].mxu1  ;;  %v4611_v40 = vpop.f32.mrb[21].mxu0  ;;  %v2031_v41 = vsel %vm1489_vm3, %v2022_v38, -inf }
 0x8ba   : > { %2032 = vmax.xlane.f32.xlu1 %v2031_v41  ;;  %v2025_v42 = vpop.f32.mrb[22].mxu0 }
 0x8bb   : > { %v4612_v43 = vpop.f32.mrb[23].mxu0 }
 0x8cb   : > { %2100 = vrot.lane.b32.xlu1 %v6288_v48, %s5593_s11 }
 0x8cf   : > { %2150 = vrot.lane.b32.xlu1 %v6286_v45, %s5594_s30 }
 0x8d3   : > { %2200 = vrot.lane.b32.xlu1 %v6288_v48, %s5594_s30 }
 0x8d7   : > { %2198 = vrot.lane.b32.xlu1 %v6300_v56, %s5595_s10 }
 0x945   : > { %v2030_v44 = vpop.xlane.xlu0 %2029 }
 0x946   : > { %v2034_v46 = vsub.f32 %v1972_v32, %v2030_v44 }
 0x947   : > { %v2033_v47 = vpop.xlane.xlu1 %2032 }
 0x948   : > { %v2036_v49 = vmul.f32 1.442695, %v2034_v46  ;;  %v2035_v50 = vsub.f32 %v2022_v38, %v2033_v47 }
 0x94a   : > { %5027 = vpow2.f32 %v2036_v49  ;;  %v2038_v51 = vmul.f32 1.442695, %v2035_v50 }
 0x94b   : > { %v2101_v52 = vpop.permute.xlu1 %2100 }
 0x94c   : > { %5029 = vpow2.f32 %v2038_v51  ;;  %v2106_v53 = vsel %vm1614_vm4, %v2101_v52, 0 }
 0x94d   : > { %4620 = vmatpush3.bf16.msra.mxu0 %v2106_v53 }
 0x94e   : > { %4631 = vmatprep.subr.bf16.mxu0 %v5584_v11 }
 0x94f   : > { %v2151_v0 = vpop.permute.xlu1 %2150 }
 0x953   : > { %v2201_v7 = vpop.permute.xlu1 %2200 }
 0x954   : > { %v5028_v54 = vpop.eup %5027  ;;  %v2206_v9 = vsel %vm1489_vm3, %v2201_v7, 0 }
 0x955   : > { %v2040_v57 = vsel %vm1489_vm3, %v5028_v54, 0.0 }
 0x956   : > { %v5030_v58 = vpop.eup %5029  ;;  %2041 = vadd.xlane.f32.xlu0 %v2040_v57 }
 0x957   : > { %v2043_v56 = vsel %vm1489_vm3, %v5030_v58, 0.0  ;;  %v2199_v12 = vpop.permute.xlu1 %2198 }
 0x95a   : > { %2044 = vadd.xlane.f32.xlu0 %v2043_v56  ;;  %v4990_v56 = vld [vmem:[%s6193_s1 + $0x8] sm:$0xff]  }
 0x970   : > { %2052 = vrot.lane.b32.xlu0 %v6286_v45, %s5593_s11 }
 0x974   : > { %2148 = vrot.lane.b32.xlu0 %v6298_v55, %s5595_s10  ;;  %v2156_v55 = vsel %vm1489_vm3, %v2151_v0, 0 }
 0x9e3   : > { %v2042_v59 = vpop.xlane.xlu0 %2041 }
 0x9e4   : > { %5031 = vrcp.f32 %v2042_v59 }
 0x9e7   : > { %v2045_v60 = vpop.xlane.xlu0 %2044 }
 0x9e8   : > { %5033 = vrcp.f32 %v2045_v60 }
 0x9eb   : > { %v2053_v61 = vpop.permute.xlu0 %2052 }
 0x9ec   : > { %v2058_v62 = vsel %vm1614_vm4, %v2053_v61, 0 }
 0x9ed   : > { %4614 = vmatpush3.bf16.msra.mxu1 %v2058_v62 }
 0x9ee   : > { %v5032_v63 = vpop.eup %5031  ;;  %4625 = vmatprep.subr.bf16.mxu1 %v5584_v11 }
 0x9ef   : > { %v2047_v1 = vmul.f32 %v5032_v63, %v5028_v54  ;;  %v2149_v10 = vpop.permute.xlu0 %2148 }
 0x9f1   : > { %v2050_v4 = vpack.c.bf16 %v2047_v1, %v2047_v1 }
 0x9f2   : > { %v5034_v5 = vpop.eup %5033 }
 0x9f3   : > { %v2049_v6 = vmul.f32 %v5034_v5, %v5030_v58  ;;  %4616 = vmatmul.mubr.msk.bf16.vlgmr.msra.gmra.mrb[20].mxu1 %vm1489_vm3, %v2050_v4  ;;  %v4989_v58 = vld [vmem:[%s6193_s1] sm:$0xff]  }
 0x9f4   : > { %4627 = vmatprep.mubr.msk.bf16.mxu1 %vm5585_vm2, %v5584_v11 }
 0x9f5   : > { %v2051_v8 = vpack.c.bf16 %v2049_v6, %v2049_v6 }
 0x9f6   : > { %4626 = vmatpush3.bf16.xpose.msra.mxu1 %v2156_v55 }
 0x9f7   : > { %4622 = vmatmul.mubr.msk.bf16.vlgmr.msra.gmra.mrb[24].mxu0 %vm1489_vm3, %v2051_v8  ;;  %4637 = vmatprep.subr.bf16.mxu1 %v5584_v11 }
 0x9f8   : > { %4632 = vmatpush3.bf16.xpose.msra.mxu0 %v2206_v9  ;;  %4633 = vmatprep.mubr.msk.bf16.mxu0 %vm5585_vm2, %v5584_v11 }
 0x9f9   : > { %4643 = vmatprep.subr.bf16.mxu0 %v5584_v11 }
 0x9fd   : > { %4628 = vmatmul.mubr.msk.bf16.vlgmr.msra.gmra.mrb[24].mxu1 %vm1489_vm3, %v2149_v10 }
 0x9fe   : > { %4639 = vmatprep.mubr.msk.bf16.mxu1 %vm5585_vm2, %v5584_v11 }
 0x9ff   : > { %4634 = vmatmul.mubr.msk.bf16.vlgmr.msra.gmra.mrb[28].mxu0 %vm1489_vm3, %v2199_v12 }
 0xa00   : > { %4645 = vmatprep.mubr.msk.bf16.mxu0 %vm5585_vm2, %v5584_v11 }
 0xac6   : > { %v2094_v13 = vpop.f32.mrb[20].mxu1 }
 0xac7   : > { %v4617_v14 = vpop.f32.mrb[21].mxu1 }
 0xac8   : > { %v2097_v15 = vpop.f32.mrb[22].mxu1 }
 0xac9   : > { %v4618_v16 = vpop.f32.mrb[23].mxu1 }
 0xaca   : > { %v2142_v17 = vpop.f32.mrb[24].mxu0 }
 0xacb   : > { %v4962_v18 = vpack.i.bf16 %v2142_v17, %v2094_v13  ;;  %v4623_v19 = vpop.f32.mrb[25].mxu0 }
 0xacc   : > { %v2145_v20 = vpop.f32.mrb[26].mxu0 }
 0xacd   : > { %v4624_v21 = vpop.f32.mrb[27].mxu0 }
 0xad0   : > { %v2192_v22 = vpop.f32.mrb[24].mxu1 }
 0xad1   : > { %v4629_v24 = vpop.f32.mrb[25].mxu1  ;;  %v2248_v25 = vsel %vm1489_vm3, %v2192_v22, -inf }
 0xad2   : > { %2249 = vmax.xlane.f32.xlu0 %v2248_v25  ;;  %v2195_v26 = vpop.f32.mrb[26].mxu1  ;;  %v2242_v29 = vpop.f32.mrb[28].mxu0 }
 0xad3   : > { %v4630_v30 = vpop.f32.mrb[27].mxu1  ;;  %v4635_v31 = vpop.f32.mrb[29].mxu0  ;;  %v2251_v32 = vsel %vm1489_vm3, %v2242_v29, -inf }
 0xad4   : > { %2252 = vmax.xlane.f32.xlu1 %v2251_v32  ;;  %v2245_v33 = vpop.f32.mrb[30].mxu0 }
 0xad5   : > { %v4636_v35 = vpop.f32.mrb[31].mxu0 }
 0xae5   : > { %2320 = vrot.lane.b32.xlu1 %v6288_v48, %s5596_s13 }
 0xae9   : > { %4958 = vrot.lane.b32.xlu1 %v4957_v28, %s5597_s5 }
 0xaed   : > { %4963 = vrot.lane.b32.xlu1 %v4962_v18, %s5598_s17 }
 0xb5f   : > { %v2250_v36 = vpop.xlane.xlu0 %2249 }
 0xb60   : > { %v2254_v38 = vsub.f32 %v2192_v22, %v2250_v36 }
 0xb61   : > { %v2253_v39 = vpop.xlane.xlu1 %2252 }
 0xb62   : > { %v2256_v40 = vmul.f32 1.442695, %v2254_v38  ;;  %v2255_v41 = vsub.f32 %v2242_v29, %v2253_v39  ;;  %v4991_v38 = vld [vmem:[%s6198_s25] sm:$0xff]   ;;  %v4992_v39 = vld [vmem:[%s6198_s25 + $0x8] sm:$0xff]   ;;  %s6964_s25 = sld [smem:[#allocation53_spill]] }
 0xb64   : > { %5035 = vpow2.f32 %v2256_v40  ;;  %v2258_v42 = vmul.f32 1.442695, %v2255_v41  ;;  %v4993_v40 = vld [vmem:[%s6203_s29] sm:$0xff]   ;;  %v4994_v41 = vld [vmem:[%s6203_s29 + $0x8] sm:$0xff]  }
 0xb65   : > { %v2321_v43 = vpop.permute.xlu1 %2320 }
 0xb66   : > { %5037 = vpow2.f32 %v2258_v42  ;;  %v2326_v48 = vsel %vm1614_vm4, %v2321_v43, 0 }
 0xb67   : > { %4644 = vmatpush3.bf16.msra.mxu0 %v2326_v48 }
 0xb68   : > { %4657 = vmatprep.subr.bf16.mxu0 %v5584_v11 }
 0xb69   : > { %v4959_v6 = vpop.permute.xlu1 %4958 }
 0xb6a   : > { %v4961_v55 = vunpack.i.h.bf16 %v4959_v6  ;;  %v4960_v8 = vunpack.i.l.bf16 %v4959_v6  ;;  %v4996_v6 = vld [vmem:[%s6203_s29 + $0x18] sm:$0xff]  }
 0xb6c   : > { %v2393_v13 = vsel %vm1489_vm3, %v6346_v37, %v4961_v55  ;;  %v2392_v14 = vsel %vm1489_vm3, %v6344_v34, %v4960_v8  ;;  %v4391_v37 = vld [vmem:[%s1088_s23] ss:$0 sm:$0xff]  ;;  %v4998_v55 = vld [vmem:[%s6203_s29 + $0x28] sm:$0xff]   ;;  %v4999_v8 = vld [vmem:[%s6203_s29 + $0x30] sm:$0xff]  }
 0xb6d   : > { %v4964_v7 = vpop.permute.xlu1 %4963 }
 0xb6e   : > { %v5036_v44 = vpop.eup %5035  ;;  %v4966_v9 = vunpack.i.h.bf16 %v4964_v7  ;;  %v4965_v10 = vunpack.i.l.bf16 %v4964_v7  ;;  %v4997_v7 = vld [vmem:[%s6203_s29 + $0x20] sm:$0xff]  }
 0xb6f   : > { %v2260_v23 = vsel %vm1489_vm3, %v5036_v44, 0.0 }
 0xb70   : > { %v5038_v27 = vpop.eup %5037  ;;  %2261 = vadd.xlane.f32.xlu0 %v2260_v23  ;;  %v2395_v17 = vsel %vm2394_vm5, %v2392_v14, %v4965_v10  ;;  %v2396_v18 = vsel %vm2394_vm5, %v2393_v13, %v4966_v9  ;;  %v5000_v9 = vld [vmem:[%s6203_s29 + $0x38] sm:$0xff]   ;;  %v4397_v10 = vld [vmem:[%s1112_s14] ss:$0 sm:$0xff] }
 0xb71   : > { %v2263_v28 = vsel %vm1489_vm3, %v5038_v27, 0.0 }
 0xb74   : > { %2264 = vadd.xlane.f32.xlu0 %v2263_v28 }
 0xb8a   : > { %2272 = vrot.lane.b32.xlu0 %v6286_v45, %s5596_s13 }
 0xbfd   : > { %v2262_v46 = vpop.xlane.xlu0 %2261 }
 0xbfe   : > { %5039 = vrcp.f32 %v2262_v46 }
 0xc01   : > { %v2265_v47 = vpop.xlane.xlu0 %2264 }
 0xc02   : > { %5041 = vrcp.f32 %v2265_v47 }
 0xc05   : > { %v2273_v49 = vpop.permute.xlu0 %2272 }
 0xc06   : > { %v2278_v50 = vsel %vm1614_vm4, %v2273_v49, 0 }
 0xc07   : > { %4638 = vmatpush3.bf16.msra.mxu1 %v2278_v50 }
 0xc08   : > { %v5040_v51 = vpop.eup %5039  ;;  %4649 = vmatprep.subr.bf16.mxu1 %v5584_v11 }
 0xc09   : > { %v2267_v52 = vmul.f32 %v5040_v51, %v5036_v44 }
 0xc0b   : > { %v2270_v53 = vpack.c.bf16 %v2267_v52, %v2267_v52 }
 0xc0c   : > { %v5042_v54 = vpop.eup %5041 }
 0xc0d   : > { %v2269_v57 = vmul.f32 %v5042_v54, %v5038_v27  ;;  %4640 = vmatmul.mubr.msk.bf16.vlgmr.msra.gmra.mrb[28].mxu1 %vm1489_vm3, %v2270_v53 }
 0xc0e   : > { %4653 = vmatprep.mubr.msk.bf16.mxu1 %vm5585_vm2, %v5584_v11  ;;  %4650 = vmatpush3.bf16.msra.mxu1 %v4989_v58  ;;  %v4395_v58 = vld [vmem:[%s1096_s3] ss:$0 sm:$0xff] }
 0xc0f   : > { %v2271_v45 = vpack.c.bf16 %v2269_v57, %v2269_v57  ;;  %4651 = vmatprep.subr.bf16.mxu1 %v5584_v11 }
 0xc11   : > { %4646 = vmatmul.mubr.msk.bf16.vlgmr.msra.gmra.mrb[32].mxu0 %vm1489_vm3, %v2271_v45 }
 0xc12   : > { %4661 = vmatprep.mubr.msk.bf16.mxu0 %vm5585_vm2, %v5584_v11  ;;  %4652 = vmatpush3.bf16.msra.mxu1 %v4990_v56 }
 0xc13   : > { %4665 = vmatprep.subr.bf16.mxu1 %v5584_v11  ;;  %4658 = vmatpush3.bf16.msra.mxu0 %v4991_v38 }
 0xc14   : > { %4659 = vmatprep.subr.bf16.mxu0 %v5584_v11 }
 0xc17   : > { %4660 = vmatpush3.bf16.msra.mxu0 %v4992_v39 }
 0xc18   : > { %4685 = vmatprep.subr.bf16.mxu0 %v5584_v11 }
 0xce0   : > { %v2314_v59 = vpop.f32.mrb[28].mxu1 }
 0xce1   : > { %v4641_v60 = vpop.f32.mrb[29].mxu1 }
 0xce2   : > { %v2317_v61 = vpop.f32.mrb[30].mxu1 }
 0xce3   : > { %v4642_v62 = vpop.f32.mrb[31].mxu1 }
 0xce4   : > { %v2362_v63 = vpop.f32.mrb[32].mxu0  ;;  %v4396_v62 = vld [vmem:[%s1104_s4] ss:$0 sm:$0xff]  ;;  %s6968_s4 = sld [smem:[#allocation55_spill]] }
 0xce5   : > { %v4967_v0 = vpack.i.bf16 %v2362_v63, %v2314_v59  ;;  %v4647_v1 = vpop.f32.mrb[33].mxu0 }
 0xce6   : > { %v2365_v4 = vpop.f32.mrb[34].mxu0 }
 0xce7   : > { %4968 = vrot.lane.b32.xlu0 %v4967_v0, %s5599_s27  ;;  %v4648_v5 = vpop.f32.mrb[35].mxu0 }
 0xce8   : > { %v4995_v5 = vld [vmem:[%s6203_s29 + $0x10] sm:$0xff]   ;;  %s6965_s29 = scalar_lea.vmem %s6964_s25, %s6181_s7 }
 0xd59   : > { %v4969_v12 = vpop.permute.xlu0 %4968 }
 0xd5a   : > { %v4971_v15 = vunpack.i.h.bf16 %v4969_v12  ;;  %v4970_v16 = vunpack.i.l.bf16 %v4969_v12 }
 0xd5c   : > { %v2399_v19 = vsel %vm2397_vm6, %v2396_v18, %v4971_v15  ;;  %v2398_v20 = vsel %vm2397_vm6, %v2395_v17, %v4970_v16 }
 0xd5d   : > { %v2400_v21 = vpack.c.bf16 %v2399_v19, %v2398_v20 }
 0xd5f   : > { %4654 = vmatmul.mubr.msk.bf16.vlgmr.msra.gmra.mrb[32].mxu1 %vm1362_vm1, %v2400_v21 }
 0xd60   : > { %4681 = vmatprep.mubr.msk.bf16.mxu1 %vm5585_vm2, %v5584_v11  ;;  %4666 = vmatpush3.bf16.msra.mxu1 %v4993_v40 }
 0xd61   : > { %4667 = vmatprep.subr.bf16.mxu1 %v5584_v11 }
 0xd64   : > { %4668 = vmatpush3.bf16.msra.mxu1 %v4994_v41 }
 0xd65   : > { %4669 = vmatprep.subr.bf16.mxu1 %v5584_v11 }
 0xd68   : > { %4670 = vmatpush3.bf16.msra.mxu1 %v4995_v5  ;;  %v4411_v5 = vld [vmem:[%s1136_s0] ss:$0 sm:$0xff] }
 0xd69   : > { %4671 = vmatprep.subr.bf16.mxu1 %v5584_v11 }
 0xd6c   : > { %4672 = vmatpush3.bf16.msra.mxu1 %v4996_v6 }
 0xd6d   : > { %4673 = vmatprep.subr.bf16.mxu1 %v5584_v11 }
 0xd70   : > { %4674 = vmatpush3.bf16.msra.mxu1 %v4997_v7 }
 0xd71   : > { %4675 = vmatprep.subr.bf16.mxu1 %v5584_v11 }
 0xd74   : > { %4676 = vmatpush3.bf16.msra.mxu1 %v4998_v55 }
 0xd75   : > { %4677 = vmatprep.subr.bf16.mxu1 %v5584_v11 }
 0xd78   : > { %4678 = vmatpush3.bf16.msra.mxu1 %v4999_v8  ;;  %v5003_v8 = vld [vmem:[%s6213_s8] sm:$0xff]  }
 0xd79   : > { %4679 = vmatprep.subr.bf16.mxu1 %v5584_v11 }
 0xd7c   : > { %4680 = vmatpush3.bf16.msra.mxu1 %v5000_v9 }
 0xd7d   : > { %4713 = vmatprep.subr.bf16.mxu1 %v5584_v11 }
 0xe32   : > { %v2461_v22 = vpop.f32.mrb[32].mxu1 }
 0xe33   : > { %v2462_v34 = vadd.f32 %v4391_v37, %v2461_v22  ;;  %v4655_v24 = vpop.f32.mrb[33].mxu1 }
 0xe34   : > { %v2464_v25 = vpop.f32.mrb[34].mxu1 }
 0xe35   : > { %v6462_v26 = vadd.f32 %v2462_v34, %v6251_v2  ;;  %v2465_v29 = vadd.f32 %v4391_v37, %v2464_v25  ;;  %v4656_v30 = vpop.f32.mrb[35].mxu1 }
 0xe37   : > { %v6465_v31 = vadd.f32 %v2465_v29, %v6253_v3  ;;  %v2470_v32 = vsel %vm1362_vm1, %v6462_v26, 0.0  ;;  %v2478_v35 = vmul.f32 %v6462_v26, %v6462_v26 }
 0xe38   : > { %2471 = vadd.xlane.f32.xlu1 %v2470_v32  ;;  %v4401_v32 = vld [vmem:[%s1120_s22] ss:$0 sm:$0xff]  ;;  %s6969_s22 = scalar_lea.vmem %s6968_s4, %s6181_s7 }
 0xe39   : > { %v2473_v33 = vsel %vm1362_vm1, %v6465_v31, 0.0  ;;  %v2480_v2 = vsel %vm1362_vm1, %v2478_v35, 0.0  ;;  %v2479_v36 = vmul.f32 %v6465_v31, %v6465_v31 }
 0xe3a   : > { %2474 = vadd.xlane.f32.xlu0 %v2473_v33 }
 0xe3b   : > { %v2483_v3 = vsel %vm1362_vm1, %v2479_v36, 0.0 }
 0xe3e   : > { %2481 = vadd.xlane.f32.xlu0 %v2480_v2 }
 0xe42   : > { %2484 = vadd.xlane.f32.xlu0 %v2483_v3 }
 0xec5   : > { %v2472_v42 = vpop.xlane.xlu1 %2471 }
 0xec6   : > { %v2476_v48 = vmul.f32 0.03125, %v2472_v42 }
 0xec7   : > { %v2475_v43 = vpop.xlane.xlu0 %2474 }
 0xec8   : > { %v2488_v23 = vmul.f32 %v2476_v48, %v2476_v48  ;;  %v2477_v27 = vmul.f32 0.03125, %v2475_v43  ;;  %v2492_v54 = vsub.f32 %v6462_v26, %v2476_v48 }
 0xeca   : > { %v2489_v49 = vmul.f32 %v2477_v27, %v2477_v27  ;;  %v2493_v56 = vsub.f32 %v6465_v31, %v2477_v27 }
 0xecb   : > { %v2482_v44 = vpop.xlane.xlu0 %2481 }
 0xecc   : > { %v2486_v28 = vmul.f32 0.03125, %v2482_v44  ;;  %v5001_v44 = vld [vmem:[%s6208_s12] sm:$0xff]  }
 0xece   : > { %v2490_v46 = vsub.f32 %v2486_v28, %v2488_v23  ;;  %v5002_v23 = vld [vmem:[%s6208_s12 + $0x8] sm:$0xff]  }
 0xecf   : > { %v2485_v47 = vpop.xlane.xlu0 %2484 }
 0xed0   : > { %v2494_v50 = vadd.f32 1e-05, %v2490_v46  ;;  %v2487_v51 = vmul.f32 0.03125, %v2485_v47 }
 0xed2   : > { %5043 = vrsqrt.f32 %v2494_v50  ;;  %v2491_v52 = vsub.f32 %v2487_v51, %v2489_v49 }
 0xed4   : > { %v2495_v53 = vadd.f32 1e-05, %v2491_v52 }
 0xed6   : > { %5045 = vrsqrt.f32 %v2495_v53 }
 0xedc   : > { %v5044_v57 = vpop.eup %5043 }
 0xedd   : > { %v2498_v45 = vmul.f32 %v5044_v57, %v2492_v54 }
 0xedf   : > { %v2507_v61 = vmul.f32 %v4395_v58, %v2498_v45 }
 0xee0   : > { %v5046_v59 = vpop.eup %5045 }
 0xee1   : > { %v2499_v60 = vmul.f32 %v5046_v59, %v2493_v56  ;;  %v2516_v0 = vadd.f32 %v4396_v62, %v2507_v61  ;;  %v4410_v61 = vld [vmem:[%s1128_s24] ss:$0 sm:$0xff] }
 0xee3   : > { %v2508_v63 = vmul.f32 %v4395_v58, %v2499_v60 }
 0xee5   : > { %v2517_v1 = vadd.f32 %v4396_v62, %v2508_v63 }
 0xee7   : > { %v2518_v4 = vpack.c.bf16 %v2517_v1, %v2516_v0 }
 0xee9   : > { %4662 = vmatmul.mubr.msk.bf16.vlgmr.msra.gmra.mrb[36].mxu0 %vm1362_vm1, %v2518_v4 }
 0xeea   : > { %4689 = vmatprep.mubr.msk.bf16.mxu0 %vm5585_vm2, %v5584_v11  ;;  %4686 = vmatpush3.bf16.msra.mxu0 %v5001_v44 }
 0xeeb   : > { %4687 = vmatprep.subr.bf16.mxu0 %v5584_v11 }
 0xeee   : > { %4688 = vmatpush3.bf16.msra.mxu0 %v5002_v23 }
 0xeef   : > { %4693 = vmatprep.subr.bf16.mxu0 %v5584_v11 }
 0xfbc   : > { %v2579_v12 = vpop.f32.mrb[36].mxu0 }
 0xfbd   : > { %v2580_v13 = vadd.f32 %v4397_v10, %v2579_v12  ;;  %v4663_v14 = vpop.f32.mrb[37].mxu0  ;;  %v1360_v12 = vld [vmem:[#allocation6] sm:$0xff] }
 0xfbe   : > { %v2582_v15 = vpop.f32.mrb[38].mxu0 }
 0xfbf   : > { %v2588_v16 = vmul.f32 0.70710677, %v2580_v13  ;;  %v2583_v17 = vadd.f32 %v4397_v10, %v2582_v15  ;;  %v4664_v18 = vpop.f32.mrb[39].mxu0  ;;  %v2586_v22 = vmul.f32 0.5, %v2580_v13  ;;  %v5004_v10 = vld [vmem:[%s6213_s8 + $0x8] sm:$0xff]  }
 0xfc0   : > { %v1361_v13 = vld [vmem:[#allocation6 + $0x8] sm:$0xff] }
 0xfc1   : > { %5047 = verf.f32 %v2588_v16  ;;  %v2589_v19 = vmul.f32 0.70710677, %v2583_v17  ;;  %v2587_v34 = vmul.f32 0.5, %v2583_v17  ;;  %v2827_v14 = vpack.c.bf16 %v1361_v13, %v1360_v12 }
 0xfc3   : > { %5049 = verf.f32 %v2589_v19  ;;  %v4416_v19 = vld [vmem:[%s6965_s29] ss:$0 sm:$0xff] }
 0xfcb   : > { %v5048_v20 = vpop.eup %5047 }
 0xfcc   : > { %v2592_v21 = vadd.f32 1.0, %v5048_v20  ;;  %v4412_v20 = vld [vmem:[%s1144_s15] ss:$0 sm:$0xff]  ;;  %s6966_s15 = sld [smem:[#allocation33_spill]] }
 0xfcd   : > { %v5050_v37 = vpop.eup %5049 }
 0xfce   : > { %v2593_v24 = vadd.f32 1.0, %v5050_v37  ;;  %v2594_v25 = vmul.f32 %v2592_v21, %v2586_v22 }
 0xfd0   : > { %v2595_v29 = vmul.f32 %v2593_v24, %v2587_v34 }
 0xfd2   : > { %v2596_v30 = vpack.c.bf16 %v2595_v29, %v2594_v25 }
 0xfd4   : > { %4682 = vmatmul.mubr.bf16.vlgmr.msra.gmra.mrb[36].mxu1 %v2596_v30 }
 0xfd5   : > { %4715 = vmatprep.mubr.msk.bf16.mxu1 %vm5585_vm2, %v5584_v11 }
0x10a7   : > { %v2702_v33 = vpop.f32.mrb[36].mxu1 }
0x10a8   : > { %v2703_v35 = vadd.f32 %v4401_v32, %v2702_v33  ;;  %v4683_v2 = vpop.f32.mrb[37].mxu1 }
0x10a9   : > { %v2705_v36 = vpop.f32.mrb[38].mxu1 }
0x10aa   : > { %v6513_v3 = vadd.f32 %v2703_v35, %v6462_v26  ;;  %v2706_v38 = vadd.f32 %v4401_v32, %v2705_v36  ;;  %v4684_v39 = vpop.f32.mrb[39].mxu1 }
0x10ac   : > { %v6516_v40 = vadd.f32 %v2706_v38, %v6465_v31  ;;  %v2711_v41 = vsel %vm1362_vm1, %v6513_v3, 0.0  ;;  %v2719_v42 = vmul.f32 %v6513_v3, %v6513_v3 }
0x10ad   : > { %2712 = vadd.xlane.f32.xlu1 %v2711_v41 }
0x10ae   : > { %v2714_v43 = vsel %vm1362_vm1, %v6516_v40, 0.0  ;;  %v2720_v26 = vmul.f32 %v6516_v40, %v6516_v40  ;;  %v2721_v48 = vsel %vm1362_vm1, %v2719_v42, 0.0 }
0x10af   : > { %2715 = vadd.xlane.f32.xlu0 %v2714_v43 }
0x10b0   : > { %v2724_v31 = vsel %vm1362_vm1, %v2720_v26, 0.0 }
0x10b1   : > { %2722 = vadd.xlane.f32.xlu1 %v2721_v48 }
0x10b3   : > { %2725 = vadd.xlane.f32.xlu0 %v2724_v31 }
0x113a   : > { %v2713_v27 = vpop.xlane.xlu1 %2712 }
0x113b   : > { %v2717_v28 = vmul.f32 0.03125, %v2713_v27 }
0x113c   : > { %v2716_v46 = vpop.xlane.xlu0 %2715 }
0x113d   : > { %v2718_v47 = vmul.f32 0.03125, %v2716_v46  ;;  %v2729_v50 = vmul.f32 %v2717_v28, %v2717_v28  ;;  %v2733_v59 = vsub.f32 %v6513_v3, %v2717_v28 }
0x113e   : > { %v2723_v49 = vpop.xlane.xlu1 %2722 }
0x113f   : > { %v2727_v51 = vmul.f32 0.03125, %v2723_v49  ;;  %v2730_v53 = vmul.f32 %v2718_v47, %v2718_v47  ;;  %v2734_v62 = vsub.f32 %v6516_v40, %v2718_v47 }
0x1140   : > { %v2726_v52 = vpop.xlane.xlu0 %2725 }
0x1141   : > { %v2731_v54 = vsub.f32 %v2727_v51, %v2729_v50  ;;  %v2728_v57 = vmul.f32 0.03125, %v2726_v52 }
0x1143   : > { %v2735_v45 = vadd.f32 1e-05, %v2731_v54  ;;  %v2732_v58 = vsub.f32 %v2728_v57, %v2730_v53 }
0x1145   : > { %5051 = vrsqrt.f32 %v2735_v45  ;;  %v2736_v56 = vadd.f32 1e-05, %v2732_v58 }
0x1147   : > { %5053 = vrsqrt.f32 %v2736_v56 }
0x114f   : > { %v5052_v60 = vpop.eup %5051 }
0x1150   : > { %v2739_v63 = vmul.f32 %v5052_v60, %v2733_v59 }
0x1151   : > { %v5054_v0 = vpop.eup %5053 }
0x1152   : > { %v2740_v1 = vmul.f32 %v5054_v0, %v2734_v62  ;;  %v2748_v4 = vmul.f32 %v4410_v61, %v2739_v63 }
0x1154   : > { %v2749_v6 = vmul.f32 %v4410_v61, %v2740_v1  ;;  %v2757_v7 = vadd.f32 %v4411_v5, %v2748_v4 }
0x1156   : > { %v2758_v55 = vadd.f32 %v4411_v5, %v2749_v6 }
0x1158   : > { %v2759_v9 = vpack.c.bf16 %v2758_v55, %v2757_v7 }
0x115a   : > { %4690 = vmatmul.mubr.msk.bf16.vlgmr.msra.gmra.mrb[40].mxu0 %vm1362_vm1, %v2759_v9 }
0x115b   : > { %4694 = vmatpush3.bf16.msra.mxu0 %v5003_v8  ;;  %4697 = vmatprep.mubr.msk.bf16.mxu0 %vm5585_vm2, %v5584_v11 }
0x115c   : > { %4695 = vmatprep.subr.bf16.mxu0 %v5584_v11 }
0x115f   : > { %4696 = vmatpush3.bf16.msra.mxu0 %v5004_v10 }
0x1160   : > { %4701 = vmatprep.subr.bf16.mxu0 %v5584_v11 }
0x1162   : > { %4698 = vmatmul.mubr.msk.bf16.vlgmr.msra.gmra.mrb[44].mxu0 %vm1362_vm1, %v2827_v14 }
0x1163   : > { %4703 = vmatprep.mubr.msk.bf16.mxu0 %vm5585_vm2, %v5584_v11 }
0x122d   : > { %v2820_v15 = vpop.f32.mrb[40].mxu0 }
0x122e   : > { %v4691_v16 = vpop.f32.mrb[41].mxu0  ;;  %v2821_v24 = vadd.f32 %v4412_v20, %v2820_v15 }
0x122f   : > { %v2823_v17 = vpop.f32.mrb[42].mxu0 }
0x1230   : > { %v4692_v18 = vpop.f32.mrb[43].mxu0  ;;  %v2895_v33 = vmul.f32 0.35355338, %v2821_v24  ;;  %v2824_v36 = vadd.f32 %v4412_v20, %v2823_v17 }
0x1232   : > { %v6562_v2 = vpack.c.bf16 %v2895_v33, %v2895_v33  ;;  %v2896_v39 = vmul.f32 0.35355338, %v2824_v36 }
0x1234   : > { %v6571_v41 = vpack.c.bf16 %v2896_v39, %v2896_v39 }
0x1235   : > { %v2888_v21 = vpop.f32.mrb[44].mxu0 }
0x1236   : > { %v2889_v37 = vadd.f32 %v4416_v19, %v2888_v21  ;;  %v4699_v22 = vpop.f32.mrb[45].mxu0 }
0x1237   : > { %v2891_v34 = vpop.f32.mrb[46].mxu0 }
0x1238   : > { %v6555_v25 = vpack.c.bf16 %v2889_v37, %v2889_v37  ;;  %v4700_v29 = vpop.f32.mrb[47].mxu0  ;;  %v2892_v30 = vadd.f32 %v4416_v19, %v2891_v34 }
0x123a   : > { %v2905_v32 = vsel %vm1489_vm3, %v6555_v25, 0  ;;  %v6560_v35 = vpack.c.bf16 %v2892_v30, %v2892_v30 }
0x123b   : > { %4702 = vmatpush3.bf16.xpose.msra.mxu0 %v2905_v32 }
0x123c   : > { %4707 = vmatprep.subr.bf16.mxu0 %v5584_v11  ;;  %v2951_v38 = vsel %vm1489_vm3, %v6560_v35, 0 }
0x1242   : > { %4704 = vmatmul.mubr.msk.bf16.vlgmr.msra.gmra.mrb[48].mxu0 %vm1489_vm3, %v6562_v2 }
0x1243   : > { %4708 = vmatpush3.bf16.xpose.msra.mxu0 %v2951_v38  ;;  %4709 = vmatprep.mubr.msk.bf16.mxu0 %vm5585_vm2, %v5584_v11 }
0x1244   : > { %4719 = vmatprep.subr.bf16.mxu0 %v5584_v11 }
0x124a   : > { %4710 = vmatmul.mubr.msk.bf16.vlgmr.msra.gmra.mrb[52].mxu0 %vm1489_vm3, %v6571_v41 }
0x124b   : > { %4721 = vmatprep.mubr.msk.bf16.mxu0 %vm5585_vm2, %v5584_v11 }
0x1315   : > { %v2941_v42 = vpop.f32.mrb[48].mxu0 }
0x1316   : > { %v4705_v43 = vpop.f32.mrb[49].mxu0  ;;  %v2993_v26 = vsel %vm1489_vm3, %v2941_v42, -inf }
0x1317   : > { %2994 = vmax.xlane.f32.xlu1 %v2993_v26  ;;  %v2944_v48 = vpop.f32.mrb[50].mxu0 }
0x1318   : > { %v4706_v31 = vpop.f32.mrb[51].mxu0 }
0x131d   : > { %v2987_v44 = vpop.f32.mrb[52].mxu0 }
0x131e   : > { %v4711_v23 = vpop.f32.mrb[53].mxu0  ;;  %v2996_v27 = vsel %vm1489_vm3, %v2987_v44, -inf }
0x131f   : > { %2997 = vmax.xlane.f32.xlu0 %v2996_v27  ;;  %v2990_v28 = vpop.f32.mrb[54].mxu0 }
0x1320   : > { %v4712_v46 = vpop.f32.mrb[55].mxu0 }
0x1328   : > { %3018 = vrot.lane.b32.xlu1 %v6555_v25, %s5586_s26 }
0x13a4   : > { %v2995_v47 = vpop.xlane.xlu1 %2994 }
0x13a5   : > { %v2999_v49 = vsub.f32 %v2941_v42, %v2995_v47 }
0x13a7   : > { %v3001_v50 = vmul.f32 1.442695, %v2999_v49 }
0x13a8   : > { %v3019_v51 = vpop.permute.xlu1 %3018 }
0x13a9   : > { %5055 = vpow2.f32 %v3001_v50  ;;  %v3024_v52 = vsel %vm1614_vm4, %v3019_v51, 0 }
0x13aa   : > { %4714 = vmatpush3.bf16.msra.mxu1 %v3024_v52 }
0x13ab   : > { %4725 = vmatprep.subr.bf16.mxu1 %v5584_v11 }
0x13ac   : > { %v2998_v53 = vpop.xlane.xlu0 %2997 }
0x13ad   : > { %v3000_v54 = vsub.f32 %v2987_v44, %v2998_v53 }
0x13af   : > { %v3003_v57 = vmul.f32 1.442695, %v3000_v54 }
0x13b1   : > { %5057 = vpow2.f32 %v3003_v57 }
0x13b3   : > { %v5056_v45 = vpop.eup %5055 }
0x13b4   : > { %v3005_v58 = vsel %vm1489_vm3, %v5056_v45, 0.0 }
0x13b5   : > { %3006 = vadd.xlane.f32.xlu1 %v3005_v58 }
0x13bb   : > { %v5058_v56 = vpop.eup %5057 }
0x13bc   : > { %v3008_v59 = vsel %vm1489_vm3, %v5058_v56, 0.0 }
0x13bd   : > { %3009 = vadd.xlane.f32.xlu0 %v3008_v59 }
0x13c6   : > { %3118 = vrot.lane.b32.xlu1 %v6555_v25, %s5589_s19 }
0x13ca   : > { %3169 = vrot.lane.b32.xlu1 %v6560_v35, %s5589_s19 }
0x13ce   : > { %3116 = vrot.lane.b32.xlu1 %v6562_v2, %s5589_s19 }
0x13d3   : > { %3067 = vrot.lane.b32.xlu0 %v6560_v35, %s5586_s26 }
0x13d7   : > { %3167 = vrot.lane.b32.xlu0 %v6571_v41, %s5589_s19 }
0x1442   : > { %v3007_v60 = vpop.xlane.xlu1 %3006 }
0x1443   : > { %5059 = vrcp.f32 %v3007_v60 }
0x1446   : > { %v3119_v63 = vpop.permute.xlu1 %3118 }
0x1447   : > { %v3124_v6 = vsel %vm1489_vm3, %v3119_v63, 0 }
0x144a   : > { %v3010_v61 = vpop.xlane.xlu0 %3009  ;;  %v3170_v7 = vpop.permute.xlu1 %3169 }
0x144b   : > { %5061 = vrcp.f32 %v3010_v61  ;;  %v3175_v12 = vsel %vm1489_vm3, %v3170_v7, 0 }
0x144d   : > { %v5060_v62 = vpop.eup %5059 }
0x144e   : > { %v3012_v0 = vmul.f32 %v5060_v62, %v5056_v45  ;;  %v3068_v1 = vpop.permute.xlu0 %3067  ;;  %v3117_v10 = vpop.permute.xlu1 %3116 }
0x144f   : > { %v3073_v4 = vsel %vm1614_vm4, %v3068_v1, 0 }
0x1450   : > { %4720 = vmatpush3.bf16.msra.mxu0 %v3073_v4  ;;  %v3015_v5 = vpack.c.bf16 %v3012_v0, %v3012_v0 }
0x1451   : > { %4731 = vmatprep.subr.bf16.mxu0 %v5584_v11 }
0x1452   : > { %4716 = vmatmul.mubr.msk.bf16.vlgmr.msra.gmra.mrb[40].mxu1 %vm1489_vm3, %v3015_v5  ;;  %v3168_v13 = vpop.permute.xlu0 %3167 }
0x1453   : > { %4726 = vmatpush3.bf16.xpose.msra.mxu1 %v3124_v6  ;;  %4727 = vmatprep.mubr.msk.bf16.mxu1 %vm5585_vm2, %v5584_v11 }
0x1454   : > { %4737 = vmatprep.subr.bf16.mxu1 %v5584_v11 }
0x1455   : > { %v5062_v55 = vpop.eup %5061 }
0x1456   : > { %v3014_v8 = vmul.f32 %v5062_v55, %v5058_v56 }
0x1458   : > { %v3016_v9 = vpack.c.bf16 %v3014_v8, %v3014_v8 }
0x145a   : > { %4722 = vmatmul.mubr.msk.bf16.vlgmr.msra.gmra.mrb[56].mxu0 %vm1489_vm3, %v3016_v9  ;;  %4728 = vmatmul.mubr.msk.bf16.vlgmr.msra.gmra.mrb[44].mxu1 %vm1489_vm3, %v3117_v10 }
0x145b   : > { %4732 = vmatpush3.bf16.xpose.msra.mxu0 %v3175_v12  ;;  %4733 = vmatprep.mubr.msk.bf16.mxu0 %vm5585_vm2, %v5584_v11 }
0x145c   : > { %4743 = vmatprep.subr.bf16.mxu0 %v5584_v11  ;;  %4739 = vmatprep.mubr.msk.bf16.mxu1 %vm5585_vm2, %v5584_v11 }
0x1462   : > { %4734 = vmatmul.mubr.msk.bf16.vlgmr.msra.gmra.mrb[60].mxu0 %vm1489_vm3, %v3168_v13 }
0x1463   : > { %4745 = vmatprep.mubr.msk.bf16.mxu0 %vm5585_vm2, %v5584_v11 }
0x1525   : > { %v6613_v14 = vpop.f32.mrb[40].mxu1 }
0x1526   : > { %v4717_v15 = vpop.f32.mrb[41].mxu1 }
0x1527   : > { %v3063_v16 = vpop.f32.mrb[42].mxu1 }
0x1528   : > { %v4718_v17 = vpop.f32.mrb[43].mxu1 }
0x152d   : > { %v6615_v18 = vpop.f32.mrb[56].mxu0  ;;  %v3160_v19 = vpop.f32.mrb[44].mxu1 }
0x152e   : > { %v4723_v20 = vpop.f32.mrb[57].mxu0  ;;  %v4729_v21 = vpop.f32.mrb[45].mxu1  ;;  %v3217_v37 = vsel %vm1489_vm3, %v3160_v19, -inf }
0x152f   : > { %3218 = vmax.xlane.f32.xlu1 %v3217_v37  ;;  %v3112_v22 = vpop.f32.mrb[58].mxu0  ;;  %v3163_v34 = vpop.f32.mrb[46].mxu1 }
0x1530   : > { %v4724_v24 = vpop.f32.mrb[59].mxu0  ;;  %v4730_v29 = vpop.f32.mrb[47].mxu1 }
0x1535   : > { %v3211_v30 = vpop.f32.mrb[60].mxu0 }
0x1536   : > { %v4735_v32 = vpop.f32.mrb[61].mxu0  ;;  %v3220_v33 = vsel %vm1489_vm3, %v3211_v30, -inf }
0x1537   : > { %3221 = vmax.xlane.f32.xlu0 %v3220_v33  ;;  %v3214_v36 = vpop.f32.mrb[62].mxu0 }
0x1538   : > { %v4736_v38 = vpop.f32.mrb[63].mxu0 }
0x1540   : > { %3241 = vrot.lane.b32.xlu1 %v6555_v25, %s5588_s18 }
0x1544   : > { %3339 = vrot.lane.b32.xlu1 %v6555_v25, %s5592_s21 }
0x1548   : > { %3389 = vrot.lane.b32.xlu1 %v6560_v35, %s5592_s21 }
0x154c   : > { %3337 = vrot.lane.b32.xlu1 %v6562_v2, %s5592_s21 }
0x15bc   : > { %v3219_v39 = vpop.xlane.xlu1 %3218 }
0x15bd   : > { %v3223_v42 = vsub.f32 %v3160_v19, %v3219_v39 }
0x15bf   : > { %v3225_v43 = vmul.f32 1.442695, %v3223_v42 }
0x15c0   : > { %v3242_v26 = vpop.permute.xlu1 %3241 }
0x15c1   : > { %5063 = vpow2.f32 %v3225_v43  ;;  %v3247_v48 = vsel %vm1614_vm4, %v3242_v26, 0 }
0x15c2   : > { %4738 = vmatpush3.bf16.msra.mxu1 %v3247_v48 }
0x15c3   : > { %4749 = vmatprep.subr.bf16.mxu1 %v5584_v11 }
0x15c4   : > { %v3222_v31 = vpop.xlane.xlu0 %3221  ;;  %v3340_v52 = vpop.permute.xlu1 %3339 }
0x15c5   : > { %v3224_v44 = vsub.f32 %v3211_v30, %v3222_v31  ;;  %v3345_v58 = vsel %vm1489_vm3, %v3340_v52, 0 }
0x15c7   : > { %v3227_v23 = vmul.f32 1.442695, %v3224_v44 }
0x15c8   : > { %v3390_v56 = vpop.permute.xlu1 %3389 }
0x15c9   : > { %5065 = vpow2.f32 %v3227_v23  ;;  %v3395_v63 = vsel %vm1489_vm3, %v3390_v56, 0 }
0x15cb   : > { %v5064_v27 = vpop.eup %5063 }
0x15cc   : > { %v3229_v28 = vsel %vm1489_vm3, %v5064_v27, 0.0  ;;  %v3338_v62 = vpop.permute.xlu1 %3337 }
0x15cd   : > { %3230 = vadd.xlane.f32.xlu0 %v3229_v28 }
0x15d3   : > { %v5066_v46 = vpop.eup %5065 }
0x15d4   : > { %v3232_v47 = vsel %vm1489_vm3, %v5066_v46, 0.0 }
0x15d5   : > { %3233 = vadd.xlane.f32.xlu0 %v3232_v47 }
0x15eb   : > { %3289 = vrot.lane.b32.xlu0 %v6560_v35, %s5588_s18 }
0x15ef   : > { %3387 = vrot.lane.b32.xlu0 %v6571_v41, %s5592_s21 }
0x165a   : > { %v3231_v49 = vpop.xlane.xlu0 %3230 }
0x165b   : > { %5067 = vrcp.f32 %v3231_v49 }
0x1662   : > { %v3234_v50 = vpop.xlane.xlu0 %3233 }
0x1663   : > { %5069 = vrcp.f32 %v3234_v50 }
0x1665   : > { %v5068_v51 = vpop.eup %5067 }
0x1666   : > { %v3236_v53 = vmul.f32 %v5068_v51, %v5064_v27  ;;  %v3290_v54 = vpop.permute.xlu0 %3289 }
0x1667   : > { %v3295_v57 = vsel %vm1614_vm4, %v3290_v54, 0 }
0x1668   : > { %4744 = vmatpush3.bf16.msra.mxu0 %v3295_v57  ;;  %v3239_v45 = vpack.c.bf16 %v3236_v53, %v3236_v53 }
0x1669   : > { %4755 = vmatprep.subr.bf16.mxu0 %v5584_v11 }
0x166a   : > { %4740 = vmatmul.mubr.msk.bf16.vlgmr.msra.gmra.mrb[48].mxu1 %vm1489_vm3, %v3239_v45  ;;  %v3388_v0 = vpop.permute.xlu0 %3387 }
0x166b   : > { %4750 = vmatpush3.bf16.xpose.msra.mxu1 %v3345_v58  ;;  %4751 = vmatprep.mubr.msk.bf16.mxu1 %vm5585_vm2, %v5584_v11 }
0x166c   : > { %4761 = vmatprep.subr.bf16.mxu1 %v5584_v11 }
0x166d   : > { %v5070_v59 = vpop.eup %5069 }
0x166e   : > { %v3238_v60 = vmul.f32 %v5070_v59, %v5066_v46 }
0x1670   : > { %v3240_v61 = vpack.c.bf16 %v3238_v60, %v3238_v60 }
0x1672   : > { %4746 = vmatmul.mubr.msk.bf16.vlgmr.msra.gmra.mrb[64].mxu0 %vm1489_vm3, %v3240_v61  ;;  %4752 = vmatmul.mubr.msk.bf16.vlgmr.msra.gmra.mrb[52].mxu1 %vm1489_vm3, %v3338_v62 }
0x1673   : > { %4756 = vmatpush3.bf16.xpose.msra.mxu0 %v3395_v63  ;;  %4757 = vmatprep.mubr.msk.bf16.mxu0 %vm5585_vm2, %v5584_v11 }
0x1674   : > { %4767 = vmatprep.subr.bf16.mxu0 %v5584_v11  ;;  %4763 = vmatprep.mubr.msk.bf16.mxu1 %vm5585_vm2, %v5584_v11 }
0x167a   : > { %4758 = vmatmul.mubr.msk.bf16.vlgmr.msra.gmra.mrb[68].mxu0 %vm1489_vm3, %v3388_v0 }
0x167b   : > { %4769 = vmatprep.mubr.msk.bf16.mxu0 %vm5585_vm2, %v5584_v11 }
0x173d   : > { %v6653_v1 = vpop.f32.mrb[48].mxu1 }
0x173e   : > { %v4741_v4 = vpop.f32.mrb[49].mxu1 }
0x173f   : > { %v3286_v5 = vpop.f32.mrb[50].mxu1 }
0x1740   : > { %v4742_v6 = vpop.f32.mrb[51].mxu1 }
0x1745   : > { %v6655_v7 = vpop.f32.mrb[64].mxu0  ;;  %v3381_v55 = vpop.f32.mrb[52].mxu1 }
0x1746   : > { %v4972_v8 = vpack.i.bf16 %v6655_v7, %v6653_v1  ;;  %v4747_v9 = vpop.f32.mrb[65].mxu0  ;;  %v4753_v10 = vpop.f32.mrb[53].mxu1  ;;  %v3437_v12 = vsel %vm1489_vm3, %v3381_v55, -inf }
0x1747   : > { %3438 = vmax.xlane.f32.xlu1 %v3437_v12  ;;  %v3334_v13 = vpop.f32.mrb[66].mxu0  ;;  %v3384_v15 = vpop.f32.mrb[54].mxu1 }
0x1748   : > { %v4748_v16 = vpop.f32.mrb[67].mxu0  ;;  %v4754_v17 = vpop.f32.mrb[55].mxu1 }
0x174d   : > { %v3431_v19 = vpop.f32.mrb[68].mxu0 }
0x174e   : > { %v4759_v20 = vpop.f32.mrb[69].mxu0  ;;  %v3440_v21 = vsel %vm1489_vm3, %v3431_v19, -inf }
0x174f   : > { %3441 = vmax.xlane.f32.xlu0 %v3440_v21  ;;  %v3434_v37 = vpop.f32.mrb[70].mxu0 }
0x1750   : > { %v4760_v22 = vpop.f32.mrb[71].mxu0 }
0x1758   : > { %3461 = vrot.lane.b32.xlu1 %v6555_v25, %s5591_s16 }
0x175c   : > { %3559 = vrot.lane.b32.xlu1 %v6555_v25, %s5595_s10 }
0x1760   : > { %3609 = vrot.lane.b32.xlu1 %v6560_v35, %s5595_s10 }
0x1764   : > { %3557 = vrot.lane.b32.xlu1 %v6562_v2, %s5595_s10 }
0x17d4   : > { %v3439_v34 = vpop.xlane.xlu1 %3438 }
0x17d5   : > { %v3443_v24 = vsub.f32 %v3381_v55, %v3439_v34 }
0x17d7   : > { %v3445_v29 = vmul.f32 1.442695, %v3443_v24 }
0x17d8   : > { %v3462_v30 = vpop.permute.xlu1 %3461 }
0x17d9   : > { %5071 = vpow2.f32 %v3445_v29  ;;  %v3467_v32 = vsel %vm1614_vm4, %v3462_v30, 0 }
0x17da   : > { %4762 = vmatpush3.bf16.msra.mxu1 %v3467_v32 }
0x17db   : > { %4773 = vmatprep.subr.bf16.mxu1 %v5584_v11 }
0x17dc   : > { %v3442_v33 = vpop.xlane.xlu0 %3441  ;;  %v3560_v44 = vpop.permute.xlu1 %3559 }
0x17dd   : > { %v3444_v36 = vsub.f32 %v3431_v19, %v3442_v33  ;;  %v3565_v47 = vsel %vm1489_vm3, %v3560_v44, 0 }
0x17df   : > { %v3447_v38 = vmul.f32 1.442695, %v3444_v36 }
0x17e0   : > { %v3610_v49 = vpop.permute.xlu1 %3609 }
0x17e1   : > { %5073 = vpow2.f32 %v3447_v38  ;;  %v3615_v53 = vsel %vm1489_vm3, %v3610_v49, 0 }
0x17e3   : > { %v5072_v39 = vpop.eup %5071 }
0x17e4   : > { %v3449_v42 = vsel %vm1489_vm3, %v5072_v39, 0.0  ;;  %v3558_v52 = vpop.permute.xlu1 %3557 }
0x17e5   : > { %3450 = vadd.xlane.f32.xlu0 %v3449_v42 }
0x17eb   : > { %v5074_v43 = vpop.eup %5073 }
0x17ec   : > { %v3452_v2 = vsel %vm1489_vm3, %v5074_v43, 0.0 }
0x17ed   : > { %3453 = vadd.xlane.f32.xlu0 %v3452_v2  ;;  %v5006_v2 = vld [vmem:[%s6966_s15 + $0x8] sm:$0xff]  }
0x1803   : > { %3509 = vrot.lane.b32.xlu0 %v6560_v35, %s5591_s16 }
0x1807   : > { %3607 = vrot.lane.b32.xlu0 %v6571_v41, %s5595_s10 }
0x1872   : > { %v3451_v26 = vpop.xlane.xlu0 %3450 }
0x1873   : > { %5075 = vrcp.f32 %v3451_v26 }
0x187a   : > { %v3454_v48 = vpop.xlane.xlu0 %3453 }
0x187b   : > { %5077 = vrcp.f32 %v3454_v48 }
0x187d   : > { %v5076_v31 = vpop.eup %5075 }
0x187e   : > { %v3456_v23 = vmul.f32 %v5076_v31, %v5072_v39  ;;  %v3510_v27 = vpop.permute.xlu0 %3509 }
0x187f   : > { %v3515_v28 = vsel %vm1614_vm4, %v3510_v27, 0 }
0x1880   : > { %4768 = vmatpush3.bf16.msra.mxu0 %v3515_v28  ;;  %v3459_v46 = vpack.c.bf16 %v3456_v23, %v3456_v23 }
0x1881   : > { %4779 = vmatprep.subr.bf16.mxu0 %v5584_v11 }
0x1882   : > { %4764 = vmatmul.mubr.msk.bf16.vlgmr.msra.gmra.mrb[56].mxu1 %vm1489_vm3, %v3459_v46  ;;  %v3608_v54 = vpop.permute.xlu0 %3607 }
0x1883   : > { %4774 = vmatpush3.bf16.xpose.msra.mxu1 %v3565_v47  ;;  %4775 = vmatprep.mubr.msk.bf16.mxu1 %vm5585_vm2, %v5584_v11 }
0x1884   : > { %4785 = vmatprep.subr.bf16.mxu1 %v5584_v11 }
0x1885   : > { %v5078_v41 = vpop.eup %5077 }
0x1886   : > { %v3458_v50 = vmul.f32 %v5078_v41, %v5074_v43  ;;  %v5005_v43 = vld [vmem:[%s6966_s15] sm:$0xff]  }
0x1888   : > { %v3460_v51 = vpack.c.bf16 %v3458_v50, %v3458_v50 }
0x188a   : > { %4770 = vmatmul.mubr.msk.bf16.vlgmr.msra.gmra.mrb[72].mxu0 %vm1489_vm3, %v3460_v51  ;;  %4776 = vmatmul.mubr.msk.bf16.vlgmr.msra.gmra.mrb[60].mxu1 %vm1489_vm3, %v3558_v52 }
0x188b   : > { %4780 = vmatpush3.bf16.xpose.msra.mxu0 %v3615_v53  ;;  %4781 = vmatprep.mubr.msk.bf16.mxu0 %vm5585_vm2, %v5584_v11 }
0x188c   : > { %4791 = vmatprep.subr.bf16.mxu0 %v5584_v11  ;;  %4787 = vmatprep.mubr.msk.bf16.mxu1 %vm5585_vm2, %v5584_v11 }
0x1892   : > { %4782 = vmatmul.mubr.msk.bf16.vlgmr.msra.gmra.mrb[76].mxu0 %vm1489_vm3, %v3608_v54 }
0x1893   : > { %4793 = vmatprep.mubr.msk.bf16.mxu0 %vm5585_vm2, %v5584_v11 }
0x1955   : > { %v3503_v57 = vpop.f32.mrb[56].mxu1 }
0x1956   : > { %v4765_v45 = vpop.f32.mrb[57].mxu1 }
0x1957   : > { %v3506_v58 = vpop.f32.mrb[58].mxu1 }
0x1958   : > { %v4766_v56 = vpop.f32.mrb[59].mxu1 }
0x195d   : > { %v3551_v59 = vpop.f32.mrb[72].mxu0  ;;  %v3601_v60 = vpop.f32.mrb[60].mxu1 }
0x195e   : > { %v4977_v61 = vpack.i.bf16 %v3551_v59, %v3503_v57  ;;  %v4771_v62 = vpop.f32.mrb[73].mxu0  ;;  %v4777_v63 = vpop.f32.mrb[61].mxu1  ;;  %v3657_v0 = vsel %vm1489_vm3, %v3601_v60, -inf }
0x195f   : > { %3658 = vmax.xlane.f32.xlu1 %v3657_v0  ;;  %v3554_v4 = vpop.f32.mrb[74].mxu0  ;;  %v3604_v5 = vpop.f32.mrb[62].mxu1 }
0x1960   : > { %v4772_v6 = vpop.f32.mrb[75].mxu0  ;;  %v4778_v55 = vpop.f32.mrb[63].mxu1  ;;  %v4436_v5 = vld [vmem:[%s6969_s22] ss:$0 sm:$0xff] }
0x1965   : > { %v3651_v9 = vpop.f32.mrb[76].mxu0 }
0x1966   : > { %v4783_v10 = vpop.f32.mrb[77].mxu0  ;;  %v3660_v12 = vsel %vm1489_vm3, %v3651_v9, -inf }
0x1967   : > { %3661 = vmax.xlane.f32.xlu0 %v3660_v12  ;;  %v3654_v13 = vpop.f32.mrb[78].mxu0 }
0x1968   : > { %v4784_v15 = vpop.f32.mrb[79].mxu0 }
0x1970   : > { %3681 = vrot.lane.b32.xlu1 %v6555_v25, %s5594_s30 }
0x1974   : > { %4973 = vrot.lane.b32.xlu1 %v4972_v8, %s5597_s5 }
0x1978   : > { %4978 = vrot.lane.b32.xlu1 %v4977_v61, %s5598_s17 }
0x19ec   : > { %v3659_v16 = vpop.xlane.xlu1 %3658 }
0x19ed   : > { %v3663_v17 = vsub.f32 %v3601_v60, %v3659_v16 }
0x19ef   : > { %v3665_v19 = vmul.f32 1.442695, %v3663_v17 }
0x19f0   : > { %v3682_v20 = vpop.permute.xlu1 %3681 }
0x19f1   : > { %5079 = vpow2.f32 %v3665_v19  ;;  %v3687_v21 = vsel %vm1614_vm4, %v3682_v20, 0 }
0x19f2   : > { %4786 = vmatpush3.bf16.msra.mxu1 %v3687_v21 }
0x19f3   : > { %4797 = vmatprep.subr.bf16.mxu1 %v5584_v11 }
0x19f4   : > { %v3662_v37 = vpop.xlane.xlu0 %3661  ;;  %v4974_v49 = vpop.permute.xlu1 %4973 }
0x19f5   : > { %v3664_v22 = vsub.f32 %v3651_v9, %v3662_v37  ;;  %v4976_v50 = vunpack.i.h.bf16 %v4974_v49  ;;  %v4975_v51 = vunpack.i.l.bf16 %v4974_v49 }
0x19f7   : > { %v3667_v25 = vmul.f32 1.442695, %v3664_v22  ;;  %v3802_v54 = vsel %vm1489_vm3, %v6615_v18, %v4976_v50  ;;  %v3801_v57 = vsel %vm1489_vm3, %v6613_v14, %v4975_v51  ;;  %v3875_v18 = vld [vmem:[%s1340_s9] sm:$0x1]  ;;  %v3878_v14 = vlaneseq }
0x19f8   : > { %v4979_v41 = vpop.permute.xlu1 %4978 }
0x19f9   : > { %5081 = vpow2.f32 %v3667_v25  ;;  %v4981_v52 = vunpack.i.h.bf16 %v4979_v41  ;;  %v3879_v63 = vshrl.u32 %v3878_v14, 7 }
0x19fb   : > { %v5080_v34 = vpop.eup %5079  ;;  %v3804_v56 = vsel %vm2394_vm5, %v3802_v54, %v4981_v52  ;;  %v3880_v0 = vsub.s32 0, %v3879_v63 }
0x19fc   : > { %v3669_v1 = vsel %vm1489_vm3, %v5080_v34, 0.0 }
0x19fd   : > { %3670 = vadd.xlane.f32.xlu0 %v3669_v1 }
0x1a03   : > { %v5082_v7 = vpop.eup %5081 }
0x1a04   : > { %v3672_v8 = vsel %vm1489_vm3, %v5082_v7, 0.0 }
0x1a05   : > { %3673 = vadd.xlane.f32.xlu0 %v3672_v8 }
0x1a1b   : > { %3729 = vrot.lane.b32.xlu0 %v6560_v35, %s5594_s30 }
0x1a8a   : > { %v3671_v24 = vpop.xlane.xlu0 %3670 }
0x1a8b   : > { %5083 = vrcp.f32 %v3671_v24 }
0x1a92   : > { %v3674_v29 = vpop.xlane.xlu0 %3673 }
0x1a93   : > { %5085 = vrcp.f32 %v3674_v29 }
0x1a94   : > { %5087 = vtanh.f32 %v3875_v18 }
0x1a95   : > { %v5084_v30 = vpop.eup %5083 }
0x1a96   : > { %v3676_v32 = vmul.f32 %v5084_v30, %v5080_v34  ;;  %v3730_v33 = vpop.permute.xlu0 %3729 }
0x1a97   : > { %v3735_v36 = vsel %vm1614_vm4, %v3730_v33, 0 }
0x1a98   : > { %4792 = vmatpush3.bf16.msra.mxu0 %v3735_v36  ;;  %v3679_v38 = vpack.c.bf16 %v3676_v32, %v3676_v32 }
0x1a9a   : > { %4788 = vmatmul.mubr.msk.bf16.vlgmr.msra.gmra.mrb[64].mxu1 %vm1489_vm3, %v3679_v38 }
0x1a9b   : > { %4801 = vmatprep.mubr.msk.bf16.mxu1 %vm5585_vm2, %v5584_v11  ;;  %4798 = vmatpush3.bf16.msra.mxu1 %v5005_v43 }
0x1a9c   : > { %4799 = vmatprep.subr.bf16.mxu1 %v5584_v11  ;;  %v4980_v11 = vunpack.i.l.bf16 %v4979_v41 }
0x1a9d   : > { %v5086_v39 = vpop.eup %5085 }
0x1a9e   : > { %v3678_v35 = vmul.f32 %v5086_v39, %v5082_v7  ;;  %v3803_v59 = vsel %vm2394_vm5, %v3801_v57, %v4980_v11  ;;  %v5088_v4 = vpop.eup %5087 }
0x1a9f   : > { %4800 = vmatpush3.bf16.msra.mxu1 %v5006_v2  ;;  %v3881_v6 = vrot.slane %v5088_v4, %v3880_v0 }
0x1aa0   : > { %v3680_v42 = vpack.c.bf16 %v3678_v35, %v3678_v35 }
0x1aa2   : > { %4794 = vmatmul.mubr.msk.bf16.vlgmr.msra.gmra.mrb[80].mxu0 %vm1489_vm3, %v3680_v42 }
0x1b6d   : > { %v3723_v26 = vpop.f32.mrb[64].mxu1 }
0x1b6e   : > { %v4789_v48 = vpop.f32.mrb[65].mxu1 }
0x1b6f   : > { %v3726_v31 = vpop.f32.mrb[66].mxu1 }
0x1b70   : > { %v4790_v44 = vpop.f32.mrb[67].mxu1  ;;  %v4441_v31 = vld [vmem:[%s1346_s6] ss:$0 sm:$0xff] }
0x1b75   : > { %v3771_v23 = vpop.f32.mrb[80].mxu0 }
0x1b76   : > { %v4982_v27 = vpack.i.bf16 %v3771_v23, %v3723_v26  ;;  %v4795_v28 = vpop.f32.mrb[81].mxu0  ;;  %v4440_v26 = vld [vmem:[%s1343_s2] ss:$0 sm:$0xff] }
0x1b77   : > { %v3774_v46 = vpop.f32.mrb[82].mxu0 }
0x1b78   : > { %4983 = vrot.lane.b32.xlu1 %v4982_v27, %s5599_s27  ;;  %v4796_v47 = vpop.f32.mrb[83].mxu0 }
0x1bea   : > { %v4984_v53 = vpop.permute.xlu1 %4983 }
0x1beb   : > { %v4986_v45 = vunpack.i.h.bf16 %v4984_v53  ;;  %v4985_v58 = vunpack.i.l.bf16 %v4984_v53 }
0x1bed   : > { %v3806_v60 = vsel %vm2397_vm6, %v3804_v56, %v4986_v45  ;;  %v3805_v61 = vsel %vm2397_vm6, %v3803_v59, %v4985_v58 }
0x1bee   : > { %v3807_v62 = vpack.c.bf16 %v3806_v60, %v3805_v61 }
0x1bf0   : > { %4802 = vmatmul.mubr.msk.bf16.vlgmr.msra.gmra.mrb[68].mxu1 %vm1362_vm1, %v3807_v62 }
0x1cc3   : > { %v3868_v55 = vpop.f32.mrb[68].mxu1 }
0x1cc4   : > { %v3869_v9 = vadd.f32 %v4436_v5, %v3868_v55  ;;  %v4803_v10 = vpop.f32.mrb[69].mxu1 }
0x1cc5   : > { %v3871_v12 = vpop.f32.mrb[70].mxu1 }
0x1cc6   : > { %v3883_v13 = vmul.f32 %v3881_v6, %v3869_v9  ;;  %v3872_v15 = vadd.f32 %v4436_v5, %v3871_v12  ;;  %v4804_v16 = vpop.f32.mrb[71].mxu1 }
0x1cc8   : > { %v3885_v17 = vadd.f32 %v3883_v13, %v6513_v3  ;;  %v3884_v19 = vmul.f32 %v3881_v6, %v3872_v15 }
0x1cca   : > { %v3886_v20 = vadd.f32 %v3884_v19, %v6516_v40  ;;  %v3887_v21 = vsel %vm1362_vm1, %v3885_v17, 0.0  ;;  %v3895_v37 = vmul.f32 %v3885_v17, %v3885_v17 }
0x1ccb   : > { %3888 = vadd.xlane.f32.xlu0 %v3887_v21 }
0x1ccc   : > { %v3890_v22 = vsel %vm1362_vm1, %v3886_v20, 0.0  ;;  %v3897_v25 = vsel %vm1362_vm1, %v3895_v37, 0.0  ;;  %v3896_v34 = vmul.f32 %v3886_v20, %v3886_v20 }
0x1ccd   : > { %3891 = vadd.xlane.f32.xlu1 %v3890_v22 }
0x1cce   : > { %v3900_v1 = vsel %vm1362_vm1, %v3896_v34, 0.0 }
0x1ccf   : > { %3898 = vadd.xlane.f32.xlu0 %v3897_v25 }
0x1cd3   : > { %3901 = vadd.xlane.f32.xlu0 %v3900_v1 }
0x1d58   : > { %v3889_v7 = vpop.xlane.xlu0 %3888 }
0x1d59   : > { %v3893_v8 = vmul.f32 0.03125, %v3889_v7 }
0x1d5a   : > { %v3892_v3 = vpop.xlane.xlu1 %3891 }
0x1d5b   : > { %v3905_v40 = vmul.f32 %v3893_v8, %v3893_v8  ;;  %v3894_v29 = vmul.f32 0.03125, %v3892_v3  ;;  %v3909_v43 = vsub.f32 %v3885_v17, %v3893_v8 }
0x1d5c   : > { %v3899_v24 = vpop.xlane.xlu0 %3898 }
0x1d5d   : > { %v3903_v30 = vmul.f32 0.03125, %v3899_v24  ;;  %v3906_v36 = vmul.f32 %v3894_v29, %v3894_v29  ;;  %v3910_v44 = vsub.f32 %v3886_v20, %v3894_v29 }
0x1d5f   : > { %v3907_v32 = vsub.f32 %v3903_v30, %v3905_v40 }
0x1d60   : > { %v3902_v33 = vpop.xlane.xlu0 %3901 }
0x1d61   : > { %v3911_v38 = vadd.f32 1e-05, %v3907_v32  ;;  %v3904_v39 = vmul.f32 0.03125, %v3902_v33 }
0x1d63   : > { %5089 = vrsqrt.f32 %v3911_v38  ;;  %v3908_v35 = vsub.f32 %v3904_v39, %v3906_v36 }
0x1d65   : > { %v3912_v42 = vadd.f32 1e-05, %v3908_v35 }
0x1d67   : > { %5091 = vrsqrt.f32 %v3912_v42 }
0x1d6d   : > { %v5090_v2 = vpop.eup %5089 }
0x1d6e   : > { %v3915_v48 = vmul.f32 %v5090_v2, %v3909_v43 }
0x1d70   : > { %v3924_v23 = vmul.f32 %v4440_v26, %v3915_v48 }
0x1d71   : > { %v5092_v27 = vpop.eup %5091 }
0x1d72   : > { %v3933_v28 = vadd.f32 %v4441_v31, %v3924_v23  ;;  %v3916_v46 = vmul.f32 %v5092_v27, %v3910_v44  ;;  %3940 = sbr.rel (%p4442_p7) target bundleno = 7545 (0x1d79), region = 180 }
0x1d74   : > { %3935 = vst.msk [vmem:[#allocation2] sm:$0xff] %vm1362_vm1, %v3933_v28  ;;  %v3925_v47 = vmul.f32 %v4440_v26, %v3916_v46  ;;  %3941 = vst.msk [vmem:[#allocation19] sm:$0xff] (!%p4442_p7), %vm1362_vm1, %v3933_v28 }
0x1d76   : > { %v3934_v49 = vadd.f32 %v4441_v31, %v3925_v47 }
0x1d78   : > { %3936 = vst.msk [vmem:[#allocation2 + $0x8] sm:$0xff] %vm1362_vm1, %v3934_v49  ;;  %3942 = vst.msk [vmem:[#allocation19 + $0x8] sm:$0xff] (!%p4442_p7), %vm1362_vm1, %v3934_v49 }
0x1d79 PF: > { %s6973_s2 = sld [smem:[#allocation29_spill]]  ;;  %s5600_s7 = smov [#allocation19]  }
0x1d7a   : > { %s3952_s6 = sshll.u32 %s5600_s7, 4  ;;  %s3953_s6 = int_to_ptr.vmem [resolvable:$true] %s3952_s6 }
0x1d7b   : > { %s5479_s16 = scalar_lea.vmem %s3953_s6, 256  ;;  %p5486_p9 = scmp.lt.s32.totalorder %s3953_s6, %s3953_s6 }
0x1d7c   : > { %p5480_p13 = scmp.ne.s32.totalorder %s3953_s6, %s5479_s16  ;;  %p5487_p5 = scmp.lt.s32.totalorder %s5479_s16, %s5479_s16 }
0x1d7e   : > { %p5488_p6 = por %p5487_p5, %p5486_p9 }
0x1d7f   : > { %p4885_p2 = scmp.eq.s32.totalorder %s6973_s2, 1 }
0x1d81   : > { %p5481_p3 = pnand %p5480_p13, %p4885_p2 }
0x1d83   : > { %p5482_p8 = pneg %p5481_p3 }
0x1d85   : > { %p5489_p11 = pnand %p5488_p6, %p5482_p8 }
0x1d87   : > { %5492 = shalt.err (!%p5489_p11)
}
0x1d88   : > { %s6974_s30 = sld [smem:[#allocation59_spill]] }
0x1d8e   : > { %s6975_s10 = smov %s6974_s30  ;;  %s5493_s13 = scalar_lea.hbm %s6974_s30, 256 }
0x1d8f   : > { %p5494_p0 = scmp.ne.s32.totalorder %s6975_s10, %s5493_s13  ;;  %p5499_p1 = scmp.lt.u32.totalorder %s5493_s13, %s6975_s10 }
0x1d91   : > { %p5495_p4 = pnand %p5494_p0, %p4885_p2 }
0x1d93   : > { %p5496_p10 = pneg %p5495_p4 }
0x1d95   : > { %p5501_p12 = pnand %p5499_p1, %p5496_p10 }
0x1d97   : > { %5504 = shalt.err (!%p5501_p12)
}
0x1d98   : > { %s5601_s25 = smov 128  }
0x1d99   : > { %4836 = dma.vmem_to_hbm [thread:$0]  (%p4885_p2), %s3953_s6, 256, %s6975_s10, [#allocation5], %s5601_s25, %s5601_s25, %s5597_s5  }
0x1d9a   : > { %5542 = dma.done.wait (%p4885_p2), [#allocation5], 256  }
0x1d9b   : > { %5544 = vsyncadd (%p4885_p2), [#allocation5], 4294967040 }
0x1d9c PF: > { %s6976_s20 = sld [smem:[#allocation28_spill]]  ;;  %s6977_s29 = sld [smem:[#allocation24_spill]] }
0x1d9d   : > { %s6978_s2 = sld [smem:[#allocation25_spill]]  ;;  %s6979_s6 = sld [smem:[#allocation32_spill]] }
0x1d9e   : > { %s6980_s30 = sld [smem:[#allocation27_spill]]  ;;  %s6981_s7 = sld [smem:[#allocation30_spill]] }
0x1da2   : > { %s38_s3 = sadd.s32 1, %s6976_s20  }
0x1da3   : > { %p35_p7 = scmp.ge.s32.totalorder %s38_s3, 4  }
0x1da5   :  { %37 = sbr.rel (!%p35_p7) target bundleno = 32 (0x20), region = 321 }
0x1dac   :  { %3968 = vsyncpa [#allocation4], 1 }
0x1dad   :  { %3970 = vsyncpa [#allocation4 + $0x1], 1 }
0x1dae   :  { %3971 = vsyncpa [#allocation7], 1 }
0x1daf   :  { %3972 = vsyncpa [#allocation5], 1 }
0x1db0   :  { %3974 = vsyncpa [#allocation5 + $0x1], 1 }

</bundles_post_ra>
